<compile_context>
chip_gen: v7x
topology: tpu7x:2x2x1
jax: 0.10.0
libtpu: 0.0.40
codegen_flags: <defaults>
</compile_context>

<pallas_src>
import functools

import jax
import jax.numpy as jnp
from jax import lax
from jax.experimental import pallas as pl
from jax.experimental.pallas import tpu as pltpu

LEAKY_SLOPE = 0.01   # nn.LeakyReLU default negative_slope
GN_EPS = 1e-6        # GroupNorm eps in ConvBnReLu


def _round_up(v, m):
    return (v + m - 1) // m * m


def _pad_axis(x, axis, mult):
    size = x.shape[axis]
    extra = _round_up(size, mult) - size
    if extra == 0:
        return x
    widths = [(0, 0)] * x.ndim
    widths[axis] = (0, extra)
    return jnp.pad(x, widths)


# -----------------------------------------------------------------------------
# Pallas kernels (channel-major: output tile is (Cout, P) with P on the lane axis)
# -----------------------------------------------------------------------------
def _tap_matmul_acc(x_ref, w_ref, tap_starts, seg):
    """sum_t  W[t](Cout,Cin) @ x[:, start_t : start_t+seg]  ->  (Cout, seg) f32."""
    acc = jnp.dot(w_ref[0], x_ref[0, :, pl.ds(tap_starts[0], seg)],
                  preferred_element_type=jnp.float32)
    for t in range(1, len(tap_starts)):
        acc = acc + jnp.dot(w_ref[t], x_ref[0, :, pl.ds(tap_starts[t], seg)],
                            preferred_element_type=jnp.float32)
    return acc


def _conv_gn_lrelu_kernel(x_ref, w_ref, mask_ref, gamma_ref, beta_ref, gmat_ref,
                          out_ref, *, tap_starts, seg):
    """One batch element: conv (tap-accumulated bf16 matmuls) + GroupNorm + LeakyReLU."""
    y = _tap_matmul_acc(x_ref, w_ref, tap_starts, seg) * mask_ref[...]      # (Cout, seg)
    s = jnp.sum(y, axis=1, keepdims=True)                                   # (Cout, 1)
    sq = jnp.sum(y * y, axis=1, keepdims=True)                              # (Cout, 1)
    # gmat is the group-indicator matrix pre-scaled by 1/count -> broadcast group means.
    mean = jnp.dot(gmat_ref[...], s, preferred_element_type=jnp.float32)    # (Cout, 1)
    msq = jnp.dot(gmat_ref[...], sq, preferred_element_type=jnp.float32)    # (Cout, 1)
    var = jnp.maximum(msq - mean * mean, 0.0)
    scale = lax.rsqrt(var + GN_EPS) * gamma_ref[...]
    shift = beta_ref[...] - mean * scale
    z = y * scale + shift
    out_ref[0] = jnp.maximum(z, LEAKY_SLOPE * z)


def _conv_bias_kernel(x_ref, w_ref, b_ref, out_ref, *, tap_starts, seg):
    out_ref[0] = _tap_matmul_acc(x_ref, w_ref, tap_starts, seg) + b_ref[...]


def _conv_bias_add_kernel(x_ref, w_ref, b_ref, res_ref, out_ref, *, tap_starts, seg):
    out_ref[0] = (_tap_matmul_acc(x_ref, w_ref, tap_starts, seg) + b_ref[...]
                  + res_ref[0])


# -----------------------------------------------------------------------------
# pallas_call helpers
# -----------------------------------------------------------------------------
def _call_gn(xf, w_t, mask, gamma, beta, gmat, tap_starts, seg):
    n, cin_p, l = xf.shape
    t, cout, _ = w_t.shape
    return pl.pallas_call(
        functools.partial(_conv_gn_lrelu_kernel, tap_starts=tap_starts, seg=seg),
        out_shape=jax.ShapeDtypeStruct((n, cout, seg), jnp.float32),
        grid_spec=pltpu.PrefetchScalarGridSpec(
            num_scalar_prefetch=0,
            grid=(n,),
            in_specs=[
                pl.BlockSpec((1, cin_p, l), lambda b_: (b_, 0, 0)),
                pl.BlockSpec((t, cout, cin_p), lambda b_: (0, 0, 0)),
                pl.BlockSpec((1, seg), lambda b_: (0, 0)),
                pl.BlockSpec((cout, 1), lambda b_: (0, 0)),
                pl.BlockSpec((cout, 1), lambda b_: (0, 0)),
                pl.BlockSpec((cout, cout), lambda b_: (0, 0)),
            ],
            out_specs=pl.BlockSpec((1, cout, seg), lambda b_: (b_, 0, 0)),
        ),
        compiler_params=pltpu.CompilerParams(dimension_semantics=("parallel",)),
    )(xf, w_t, mask, gamma, beta, gmat)


def _call_bias(xf, w_t, b, tap_starts, seg, residual=None):
    n, cin_p, l = xf.shape
    t, cout, _ = w_t.shape
    in_specs = [
        pl.BlockSpec((1, cin_p, l), lambda b_: (b_, 0, 0)),
        pl.BlockSpec((t, cout, cin_p), lambda b_: (0, 0, 0)),
        pl.BlockSpec((cout, 1), lambda b_: (0, 0)),
    ]
    args = [xf, w_t, b]
    if residual is None:
        kernel = functools.partial(_conv_bias_kernel, tap_starts=tap_starts, seg=seg)
    else:
        kernel = functools.partial(_conv_bias_add_kernel, tap_starts=tap_starts, seg=seg)
        in_specs.append(pl.BlockSpec((1, cout, seg), lambda b_: (b_, 0, 0)))
        args.append(residual)
    return pl.pallas_call(
        kernel,
        out_shape=jax.ShapeDtypeStruct((n, cout, seg), jnp.float32),
        grid_spec=pltpu.PrefetchScalarGridSpec(
            num_scalar_prefetch=0,
            grid=(n,),
            in_specs=in_specs,
            out_specs=pl.BlockSpec((1, cout, seg), lambda b_: (b_, 0, 0)),
        ),
        compiler_params=pltpu.CompilerParams(dimension_semantics=("parallel",)),
    )(*args)


# -----------------------------------------------------------------------------
# Conv wrappers (activations stay NCHW / channel-major throughout)
# -----------------------------------------------------------------------------
def conv_gn_lrelu_s1(x, w_oihw, gamma, beta, *, pad, groups):
    """Odd-k 'same' stride-1 conv + GroupNorm + LeakyReLU.  x: (N, Cin, H, W) f32."""
    n, cin, h, w = x.shape
    cout, _, k, _ = w_oihw.shape
    assert k % 2 == 1 and pad == k // 2
    wp = w + 2 * pad
    hg = h + 2 * pad + 2                      # conv padding + 1 guard row top & bottom
    seg = h * wp                              # extended (uncropped) output length
    tap_starts = tuple((1 + dh) * wp + dw - pad for dh in range(k) for dw in range(k))

    xp = jnp.pad(x, ((0, 0), (0, 0), (pad + 1, pad + 1), (pad, pad)))
    xf = _pad_axis(xp.reshape(n, cin, hg * wp), 1, 8).astype(jnp.bfloat16)

    w_t = jnp.transpose(w_oihw, (2, 3, 0, 1)).reshape(k * k, cout, cin)
    w_t = _pad_axis(w_t, 2, 8).astype(jnp.bfloat16)

    col = jnp.arange(wp)
    mask = jnp.tile(((col >= pad) & (col < pad + w)).astype(jnp.float32), h).reshape(1, seg)

    cg = cout // groups
    ch = jnp.arange(cout)
    gmat = (ch[:, None] // cg == ch[None, :] // cg).astype(jnp.float32) / float(cg * h * w)

    out = _call_gn(xf, w_t, mask, gamma.reshape(cout, 1), beta.reshape(cout, 1),
                   gmat, tap_starts, seg)
    return out.reshape(n, cout, h, wp)[:, :, :, pad:pad + w]


def conv_gn_lrelu_s2(x, w_oihw, gamma, beta, *, stride, pad, groups):
    """5x5 stride-2 conv + GroupNorm + LeakyReLU via channel-major (K, P) im2col."""
    n, cin, h, w = x.shape
    cout, _, kh, kw = w_oihw.shape
    ho = (h + 2 * pad - kh) // stride + 1
    wo = (w + 2 * pad - kw) // stride + 1
    p = ho * wo

    xp = jnp.pad(x, ((0, 0), (0, 0), (pad, pad), (pad, pad)))
    taps = [xp[:, :, dh:dh + stride * ho:stride, dw:dw + stride * wo:stride]
            for dh in range(kh) for dw in range(kw)]
    patches = jnp.stack(taps, axis=1).reshape(n, kh * kw * cin, p)
    patches = _pad_axis(patches, 1, 8).astype(jnp.bfloat16)

    w_t = jnp.transpose(w_oihw, (0, 2, 3, 1)).reshape(1, cout, kh * kw * cin)
    w_t = _pad_axis(w_t, 2, 8).astype(jnp.bfloat16)

    mask = jnp.ones((1, p), jnp.float32)
    cg = cout // groups
    ch = jnp.arange(cout)
    gmat = (ch[:, None] // cg == ch[None, :] // cg).astype(jnp.float32) / float(cg * p)

    out = _call_gn(patches, w_t, mask, gamma.reshape(cout, 1), beta.reshape(cout, 1),
                   gmat, (0,), p)
    return out.reshape(n, cout, ho, wo)


def conv_bias(x, w_oihw, b, *, pad, residual=None):
    """Stride-1 Conv2d (1x1 or 3x3 'same') with bias; optional fused residual add."""
    n, cin, h, w = x.shape
    cout, _, k, _ = w_oihw.shape

    if k == 1:
        seg = h * w
        tap_starts = (0,)
        xf = _pad_axis(x.reshape(n, cin, seg), 1, 8).astype(jnp.bfloat16)
    else:
        assert k % 2 == 1 and pad == k // 2
        wp = w + 2 * pad
        hg = h + 2 * pad + 2
        seg = h * wp
        tap_starts = tuple((1 + dh) * wp + dw - pad for dh in range(k) for dw in range(k))
        xp = jnp.pad(x, ((0, 0), (0, 0), (pad + 1, pad + 1), (pad, pad)))
        xf = _pad_axis(xp.reshape(n, cin, hg * wp), 1, 8).astype(jnp.bfloat16)

    w_t = jnp.transpose(w_oihw, (2, 3, 0, 1)).reshape(k * k, cout, cin)
    w_t = _pad_axis(w_t, 2, 8).astype(jnp.bfloat16)

    res = None
    if residual is not None:
        assert k == 1
        res = residual.reshape(n, cout, seg).astype(jnp.float32)

    out = _call_bias(xf, w_t, b.reshape(cout, 1), tap_starts, seg, residual=res)
    if k == 1:
        return out.reshape(n, cout, h, w)
    return out.reshape(n, cout, h, wp)[:, :, :, pad:pad + w]


# -----------------------------------------------------------------------------
# Glue: bilinear x2 upsample (align_corners=True), NCHW
# -----------------------------------------------------------------------------
def upsample2x_align_corners(x):
    n, c, h, w = x.shape
    ho, wo = 2 * h, 2 * w

    def coords(n_in, n_out):
        if n_in == 1:
            zf = jnp.zeros((n_out,), jnp.float32)
            zi = jnp.zeros((n_out,), jnp.int32)
            return zf, zi, zi
        pos = jnp.arange(n_out, dtype=jnp.float32) * (n_in - 1) / (n_out - 1)
        lo = jnp.floor(pos).astype(jnp.int32)
        hi = jnp.minimum(lo + 1, n_in - 1)
        return pos - lo.astype(jnp.float32), lo, hi

    fh, hlo, hhi = coords(h, ho)
    fw, wlo, whi = coords(w, wo)
    xh = (x[:, :, hlo, :] * (1.0 - fh)[None, None, :, None]
          + x[:, :, hhi, :] * fh[None, None, :, None])
    return (xh[:, :, :, wlo] * (1.0 - fw)[None, None, None, :]
            + xh[:, :, :, whi] * fw[None, None, None, :])


# -----------------------------------------------------------------------------
# FeatureNet parameters & forward
# -----------------------------------------------------------------------------
def init_featurenet_params(key):
    specs_cbr = {   # name: (cin, cout, k)
        "conv0_0": (6, 8, 3), "conv0_1": (8, 8, 3),
        "conv1_0": (8, 16, 5), "conv1_1": (16, 16, 3), "conv1_2": (16, 16, 3),
        "conv2_0": (16, 32, 5), "conv2_1": (32, 32, 3), "conv2_2": (32, 32, 3),
    }
    specs_conv = {  # name: (cin, cout, k)
        "toplayer": (32, 32, 1), "lat1": (16, 32, 1), "lat0": (8, 32, 1),
        "smooth1": (32, 16, 3), "smooth0": (32, 8, 3),
    }
    names = list(specs_cbr) + list(specs_conv)
    keys = dict(zip(names, jax.random.split(key, len(names))))
    params = {}
    for name, (cin, cout, k) in specs_cbr.items():
        w = jax.random.normal(keys[name], (cout, cin, k, k), jnp.float32) / jnp.sqrt(cin * k * k)
        params[name] = {
            "w": w,
            "gamma": jnp.ones((cout,), jnp.float32),
            "beta": jnp.zeros((cout,), jnp.float32),
        }
    for name, (cin, cout, k) in specs_conv.items():
        k1, k2 = jax.random.split(keys[name])
        w = jax.random.normal(k1, (cout, cin, k, k), jnp.float32) / jnp.sqrt(cin * k * k)
        b = 0.01 * jax.random.normal(k2, (cout,), jnp.float32)
        params[name] = {"w": w, "b": b}
    return params


def featurenet_forward(params, x_nchw):
    x = x_nchw.astype(jnp.float32)   # NCHW (channel-major) end to end

    def cbr(name, h, stride, pad):
        p = params[name]
        cout = p["w"].shape[0]
        groups = min(cout // 2, 16)  # GroupNorm(min(out//2, 16), out)
        if stride == 1:
            return conv_gn_lrelu_s1(h, p["w"], p["gamma"], p["beta"], pad=pad, groups=groups)
        return conv_gn_lrelu_s2(h, p["w"], p["gamma"], p["beta"],
                                stride=stride, pad=pad, groups=groups)

    def cvb(name, h, pad, residual=None):
        p = params[name]
        return conv_bias(h, p["w"], p["b"], pad=pad, residual=residual)

    c0 = cbr("conv0_1", cbr("conv0_0", x, 1, 1), 1, 1)                         # (N, 8,  H,   W)
    c1 = cbr("conv1_2", cbr("conv1_1", cbr("conv1_0", c0, 2, 2), 1, 1), 1, 1)  # (N, 16, H/2, W/2)
    c2 = cbr("conv2_2", cbr("conv2_1", cbr("conv2_0", c1, 2, 2), 1, 1), 1, 1)  # (N, 32, H/4, W/4)

    feat2 = cvb("toplayer", c2, 0)                                             # (N, 32, H/4, W/4)
    # TODO(synk): the original source calls _upsample_add(lat1(conv1), feat2), which is
    # shape-inconsistent; implemented the standard FPN order (upsample coarse, add lateral),
    # with the elementwise add fused into the lateral 1x1 conv kernel.
    feat1 = cvb("lat1", c1, 0, residual=upsample2x_align_corners(feat2))       # (N, 32, H/2, W/2)
    feat0 = cvb("lat0", c0, 0, residual=upsample2x_align_corners(feat1))       # (N, 32, H,   W)
    feat1 = cvb("smooth1", feat1, 1)                                           # (N, 16, H/2, W/2)
    feat0 = cvb("smooth0", feat0, 1)                                           # (N, 8,  H,   W)
    return [feat2, feat1, feat0]


if __name__ == "__main__":
    key = jax.random.PRNGKey(0)
    pkey, xkey = jax.random.split(key)
    params = init_featurenet_params(pkey)

    # img_ch = 3 * 2 = 6 input channels; small spatial size 16x16, batch 2 (NCHW).
    x = jax.random.normal(xkey, (2, 6, 16, 16), jnp.float32)

    fwd = jax.jit(featurenet_forward)
    feats = fwd(params, x)
    feats = jax.block_until_ready(feats)

    assert feats[0].shape == (2, 32, 4, 4)
    assert feats[1].shape == (2, 16, 8, 8)
    assert feats[2].shape == (2, 8, 16, 16)
    assert all(bool(jnp.all(jnp.isfinite(f))) for f in feats)
    print("KERNEL_OK")
</pallas_src>

<mosaic_0001>
module attributes {stable_mosaic.version = 11 : i64} {
  func.func @_conv_gn_lrelu_kernel(%arg0: i32, %arg1: memref<1x8x360xbf16, #tpu.memory_space<vmem>>, %arg2: memref<9x8x8xbf16, #tpu.memory_space<vmem>>, %arg3: memref<1x288xf32, #tpu.memory_space<vmem>>, %arg4: memref<8x1xf32, #tpu.memory_space<vmem>>, %arg5: memref<8x1xf32, #tpu.memory_space<vmem>>, %arg6: memref<8x8xf32, #tpu.memory_space<vmem>>, %arg7: memref<1x8x288xf32, #tpu.memory_space<vmem>>) attributes {dimension_semantics = [#tpu.dimension_semantics<parallel>], iteration_bounds = array<i64: 2>, scalar_prefetch = 0 : i64, scratch_operands = 0 : i64, tpu.core_type = #tpu.core_type<tc>, window_params = [{transform_indices = @transform_0, window_bounds = array<i64: 1, 8, 360>}, {pipeline_mode = #tpu.pipeline_mode<synchronous>, transform_indices = @transform_1, window_bounds = array<i64: 9, 8, 8>}, {pipeline_mode = #tpu.pipeline_mode<synchronous>, transform_indices = @transform_2, window_bounds = array<i64: 1, 288>}, {pipeline_mode = #tpu.pipeline_mode<synchronous>, transform_indices = @transform_3, window_bounds = array<i64: 8, 1>}, {pipeline_mode = #tpu.pipeline_mode<synchronous>, transform_indices = @transform_4, window_bounds = array<i64: 8, 1>}, {pipeline_mode = #tpu.pipeline_mode<synchronous>, transform_indices = @transform_5, window_bounds = array<i64: 8, 8>}, {transform_indices = @transform_6, window_bounds = array<i64: 1, 8, 288>}]} {
    %c0 = arith.constant 0 : index
    %c0_0 = arith.constant 0 : index
    %c0_1 = arith.constant 0 : index
    %0 = vector.load %arg2[%c0, %c0_0, %c0_1] : memref<9x8x8xbf16, #tpu.memory_space<vmem>>, vector<1x8x8xbf16>
    %1 = vector.shape_cast %0 : vector<1x8x8xbf16> to vector<8x8xbf16>
    %c0_2 = arith.constant 0 : index
    %c0_3 = arith.constant 0 : index
    %c17 = arith.constant 17 : index
    %2 = vector.load %arg1[%c0_2, %c0_3, %c17] : memref<1x8x360xbf16, #tpu.memory_space<vmem>>, vector<1x8x288xbf16>
    %3 = vector.shape_cast %2 : vector<1x8x288xbf16> to vector<8x288xbf16>
    %cst = arith.constant dense<0.000000e+00> : vector<8x288xf32>
    %4 = tpu.matmul %1, %3, %cst {dimension_numbers = #tpu.dot_dimension_numbers<[1], [0], [0], [1], [0, 0, 1, 1], [], []>} : vector<8x8xbf16>, vector<8x288xbf16>, vector<8x288xf32> -> vector<8x288xf32>
    %c1 = arith.constant 1 : index
    %c0_4 = arith.constant 0 : index
    %c0_5 = arith.constant 0 : index
    %5 = vector.load %arg2[%c1, %c0_4, %c0_5] : memref<9x8x8xbf16, #tpu.memory_space<vmem>>, vector<1x8x8xbf16>
    %6 = vector.shape_cast %5 : vector<1x8x8xbf16> to vector<8x8xbf16>
    %c0_6 = arith.constant 0 : index
    %c0_7 = arith.constant 0 : index
    %c18 = arith.constant 18 : index
    %7 = vector.load %arg1[%c0_6, %c0_7, %c18] : memref<1x8x360xbf16, #tpu.memory_space<vmem>>, vector<1x8x288xbf16>
    %8 = vector.shape_cast %7 : vector<1x8x288xbf16> to vector<8x288xbf16>
    %cst_8 = arith.constant dense<0.000000e+00> : vector<8x288xf32>
    %9 = tpu.matmul %6, %8, %cst_8 {dimension_numbers = #tpu.dot_dimension_numbers<[1], [0], [0], [1], [0, 0, 1, 1], [], []>} : vector<8x8xbf16>, vector<8x288xbf16>, vector<8x288xf32> -> vector<8x288xf32>
    %10 = arith.addf %4, %9 : vector<8x288xf32>
    %c2 = arith.constant 2 : index
    %c0_9 = arith.constant 0 : index
    %c0_10 = arith.constant 0 : index
    %11 = vector.load %arg2[%c2, %c0_9, %c0_10] : memref<9x8x8xbf16, #tpu.memory_space<vmem>>, vector<1x8x8xbf16>
    %12 = vector.shape_cast %11 : vector<1x8x8xbf16> to vector<8x8xbf16>
    %c0_11 = arith.constant 0 : index
    %c0_12 = arith.constant 0 : index
    %c19 = arith.constant 19 : index
    %13 = vector.load %arg1[%c0_11, %c0_12, %c19] : memref<1x8x360xbf16, #tpu.memory_space<vmem>>, vector<1x8x288xbf16>
    %14 = vector.shape_cast %13 : vector<1x8x288xbf16> to vector<8x288xbf16>
    %cst_13 = arith.constant dense<0.000000e+00> : vector<8x288xf32>
    %15 = tpu.matmul %12, %14, %cst_13 {dimension_numbers = #tpu.dot_dimension_numbers<[1], [0], [0], [1], [0, 0, 1, 1], [], []>} : vector<8x8xbf16>, vector<8x288xbf16>, vector<8x288xf32> -> vector<8x288xf32>
    %16 = arith.addf %10, %15 : vector<8x288xf32>
    %c3 = arith.constant 3 : index
    %c0_14 = arith.constant 0 : index
    %c0_15 = arith.constant 0 : index
    %17 = vector.load %arg2[%c3, %c0_14, %c0_15] : memref<9x8x8xbf16, #tpu.memory_space<vmem>>, vector<1x8x8xbf16>
    %18 = vector.shape_cast %17 : vector<1x8x8xbf16> to vector<8x8xbf16>
    %c0_16 = arith.constant 0 : index
    %c0_17 = arith.constant 0 : index
    %c35 = arith.constant 35 : index
    %19 = vector.load %arg1[%c0_16, %c0_17, %c35] : memref<1x8x360xbf16, #tpu.memory_space<vmem>>, vector<1x8x288xbf16>
    %20 = vector.shape_cast %19 : vector<1x8x288xbf16> to vector<8x288xbf16>
    %cst_18 = arith.constant dense<0.000000e+00> : vector<8x288xf32>
    %21 = tpu.matmul %18, %20, %cst_18 {dimension_numbers = #tpu.dot_dimension_numbers<[1], [0], [0], [1], [0, 0, 1, 1], [], []>} : vector<8x8xbf16>, vector<8x288xbf16>, vector<8x288xf32> -> vector<8x288xf32>
    %22 = arith.addf %16, %21 : vector<8x288xf32>
    %c4 = arith.constant 4 : index
    %c0_19 = arith.constant 0 : index
    %c0_20 = arith.constant 0 : index
    %23 = vector.load %arg2[%c4, %c0_19, %c0_20] : memref<9x8x8xbf16, #tpu.memory_space<vmem>>, vector<1x8x8xbf16>
    %24 = vector.shape_cast %23 : vector<1x8x8xbf16> to vector<8x8xbf16>
    %c0_21 = arith.constant 0 : index
    %c0_22 = arith.constant 0 : index
    %c36 = arith.constant 36 : index
    %25 = vector.load %arg1[%c0_21, %c0_22, %c36] : memref<1x8x360xbf16, #tpu.memory_space<vmem>>, vector<1x8x288xbf16>
    %26 = vector.shape_cast %25 : vector<1x8x288xbf16> to vector<8x288xbf16>
    %cst_23 = arith.constant dense<0.000000e+00> : vector<8x288xf32>
    %27 = tpu.matmul %24, %26, %cst_23 {dimension_numbers = #tpu.dot_dimension_numbers<[1], [0], [0], [1], [0, 0, 1, 1], [], []>} : vector<8x8xbf16>, vector<8x288xbf16>, vector<8x288xf32> -> vector<8x288xf32>
    %28 = arith.addf %22, %27 : vector<8x288xf32>
    %c5 = arith.constant 5 : index
    %c0_24 = arith.constant 0 : index
    %c0_25 = arith.constant 0 : index
    %29 = vector.load %arg2[%c5, %c0_24, %c0_25] : memref<9x8x8xbf16, #tpu.memory_space<vmem>>, vector<1x8x8xbf16>
    %30 = vector.shape_cast %29 : vector<1x8x8xbf16> to vector<8x8xbf16>
    %c0_26 = arith.constant 0 : index
    %c0_27 = arith.constant 0 : index
    %c37 = arith.constant 37 : index
    %31 = vector.load %arg1[%c0_26, %c0_27, %c37] : memref<1x8x360xbf16, #tpu.memory_space<vmem>>, vector<1x8x288xbf16>
    %32 = vector.shape_cast %31 : vector<1x8x288xbf16> to vector<8x288xbf16>
    %cst_28 = arith.constant dense<0.000000e+00> : vector<8x288xf32>
    %33 = tpu.matmul %30, %32, %cst_28 {dimension_numbers = #tpu.dot_dimension_numbers<[1], [0], [0], [1], [0, 0, 1, 1], [], []>} : vector<8x8xbf16>, vector<8x288xbf16>, vector<8x288xf32> -> vector<8x288xf32>
    %34 = arith.addf %28, %33 : vector<8x288xf32>
    %c6 = arith.constant 6 : index
    %c0_29 = arith.constant 0 : index
    %c0_30 = arith.constant 0 : index
    %35 = vector.load %arg2[%c6, %c0_29, %c0_30] : memref<9x8x8xbf16, #tpu.memory_space<vmem>>, vector<1x8x8xbf16>
    %36 = vector.shape_cast %35 : vector<1x8x8xbf16> to vector<8x8xbf16>
    %c0_31 = arith.constant 0 : index
    %c0_32 = arith.constant 0 : index
    %c53 = arith.constant 53 : index
    %37 = vector.load %arg1[%c0_31, %c0_32, %c53] : memref<1x8x360xbf16, #tpu.memory_space<vmem>>, vector<1x8x288xbf16>
    %38 = vector.shape_cast %37 : vector<1x8x288xbf16> to vector<8x288xbf16>
    %cst_33 = arith.constant dense<0.000000e+00> : vector<8x288xf32>
    %39 = tpu.matmul %36, %38, %cst_33 {dimension_numbers = #tpu.dot_dimension_numbers<[1], [0], [0], [1], [0, 0, 1, 1], [], []>} : vector<8x8xbf16>, vector<8x288xbf16>, vector<8x288xf32> -> vector<8x288xf32>
    %40 = arith.addf %34, %39 : vector<8x288xf32>
    %c7 = arith.constant 7 : index
    %c0_34 = arith.constant 0 : index
    %c0_35 = arith.constant 0 : index
    %41 = vector.load %arg2[%c7, %c0_34, %c0_35] : memref<9x8x8xbf16, #tpu.memory_space<vmem>>, vector<1x8x8xbf16>
    %42 = vector.shape_cast %41 : vector<1x8x8xbf16> to vector<8x8xbf16>
    %c0_36 = arith.constant 0 : index
    %c0_37 = arith.constant 0 : index
    %c54 = arith.constant 54 : index
    %43 = vector.load %arg1[%c0_36, %c0_37, %c54] : memref<1x8x360xbf16, #tpu.memory_space<vmem>>, vector<1x8x288xbf16>
    %44 = vector.shape_cast %43 : vector<1x8x288xbf16> to vector<8x288xbf16>
    %cst_38 = arith.constant dense<0.000000e+00> : vector<8x288xf32>
    %45 = tpu.matmul %42, %44, %cst_38 {dimension_numbers = #tpu.dot_dimension_numbers<[1], [0], [0], [1], [0, 0, 1, 1], [], []>} : vector<8x8xbf16>, vector<8x288xbf16>, vector<8x288xf32> -> vector<8x288xf32>
    %46 = arith.addf %40, %45 : vector<8x288xf32>
    %c8 = arith.constant 8 : index
    %c0_39 = arith.constant 0 : index
    %c0_40 = arith.constant 0 : index
    %47 = vector.load %arg2[%c8, %c0_39, %c0_40] : memref<9x8x8xbf16, #tpu.memory_space<vmem>>, vector<1x8x8xbf16>
    %48 = vector.shape_cast %47 : vector<1x8x8xbf16> to vector<8x8xbf16>
    %c0_41 = arith.constant 0 : index
    %c0_42 = arith.constant 0 : index
    %c55 = arith.constant 55 : index
    %49 = vector.load %arg1[%c0_41, %c0_42, %c55] : memref<1x8x360xbf16, #tpu.memory_space<vmem>>, vector<1x8x288xbf16>
    %50 = vector.shape_cast %49 : vector<1x8x288xbf16> to vector<8x288xbf16>
    %cst_43 = arith.constant dense<0.000000e+00> : vector<8x288xf32>
    %51 = tpu.matmul %48, %50, %cst_43 {dimension_numbers = #tpu.dot_dimension_numbers<[1], [0], [0], [1], [0, 0, 1, 1], [], []>} : vector<8x8xbf16>, vector<8x288xbf16>, vector<8x288xf32> -> vector<8x288xf32>
    %52 = arith.addf %46, %51 : vector<8x288xf32>
    %c0_44 = arith.constant 0 : index
    %c0_45 = arith.constant 0 : index
    %53 = vector.load %arg3[%c0_44, %c0_45] : memref<1x288xf32, #tpu.memory_space<vmem>>, vector<1x288xf32>
    %54 = vector.broadcast %53 : vector<1x288xf32> to vector<8x288xf32>
    %55 = arith.mulf %52, %54 : vector<8x288xf32>
    %cst_46 = arith.constant dense<0.000000e+00> : vector<8xf32>
    %56 = vector.multi_reduction <add>, %55, %cst_46 [1] : vector<8x288xf32> to vector<8xf32>
    %57 = vector.shape_cast %56 : vector<8xf32> to vector<8x1xf32>
    %58 = arith.mulf %55, %55 : vector<8x288xf32>
    %cst_47 = arith.constant dense<0.000000e+00> : vector<8xf32>
    %59 = vector.multi_reduction <add>, %58, %cst_47 [1] : vector<8x288xf32> to vector<8xf32>
    %60 = vector.shape_cast %59 : vector<8xf32> to vector<8x1xf32>
    %c0_48 = arith.constant 0 : index
    %c0_49 = arith.constant 0 : index
    %61 = vector.load %arg6[%c0_48, %c0_49] : memref<8x8xf32, #tpu.memory_space<vmem>>, vector<8x8xf32>
    %cst_50 = arith.constant dense<0.000000e+00> : vector<8x1xf32>
    %62 = tpu.matmul %61, %57, %cst_50 {dimension_numbers = #tpu.dot_dimension_numbers<[1], [0], [0], [1], [0, 0, 1, 1], [], []>} : vector<8x8xf32>, vector<8x1xf32>, vector<8x1xf32> -> vector<8x1xf32>
    %c0_51 = arith.constant 0 : index
    %c0_52 = arith.constant 0 : index
    %63 = vector.load %arg6[%c0_51, %c0_52] : memref<8x8xf32, #tpu.memory_space<vmem>>, vector<8x8xf32>
    %cst_53 = arith.constant dense<0.000000e+00> : vector<8x1xf32>
    %64 = tpu.matmul %63, %60, %cst_53 {dimension_numbers = #tpu.dot_dimension_numbers<[1], [0], [0], [1], [0, 0, 1, 1], [], []>} : vector<8x8xf32>, vector<8x1xf32>, vector<8x1xf32> -> vector<8x1xf32>
    %65 = arith.mulf %62, %62 : vector<8x1xf32>
    %66 = arith.subf %64, %65 : vector<8x1xf32>
    %cst_54 = arith.constant 0.000000e+00 : f32
    %67 = vector.broadcast %cst_54 : f32 to vector<8x1xf32>
    %68 = arith.maximumf %66, %67 : vector<8x1xf32>
    %cst_55 = arith.constant 9.99999997E-7 : f32
    %69 = vector.broadcast %cst_55 : f32 to vector<8x1xf32>
    %70 = arith.addf %68, %69 : vector<8x1xf32>
    %71 = math.rsqrt %70 : vector<8x1xf32>
    %c0_56 = arith.constant 0 : index
    %c0_57 = arith.constant 0 : index
    %72 = vector.load %arg4[%c0_56, %c0_57] : memref<8x1xf32, #tpu.memory_space<vmem>>, vector<8x1xf32>
    %73 = arith.mulf %71, %72 : vector<8x1xf32>
    %c0_58 = arith.constant 0 : index
    %c0_59 = arith.constant 0 : index
    %74 = vector.load %arg5[%c0_58, %c0_59] : memref<8x1xf32, #tpu.memory_space<vmem>>, vector<8x1xf32>
    %75 = arith.mulf %62, %73 : vector<8x1xf32>
    %76 = arith.subf %74, %75 : vector<8x1xf32>
    %77 = vector.broadcast %73 : vector<8x1xf32> to vector<8x288xf32>
    %78 = arith.mulf %55, %77 : vector<8x288xf32>
    %79 = vector.broadcast %76 : vector<8x1xf32> to vector<8x288xf32>
    %80 = arith.addf %78, %79 : vector<8x288xf32>
    %cst_60 = arith.constant 0.00999999977 : f32
    %81 = vector.broadcast %cst_60 : f32 to vector<8x288xf32>
    %82 = arith.mulf %81, %80 : vector<8x288xf32>
    %83 = arith.maximumf %80, %82 : vector<8x288xf32>
    %c0_61 = arith.constant 0 : index
    %c0_62 = arith.constant 0 : index
    %c0_63 = arith.constant 0 : index
    %84 = vector.load %arg7[%c0_61, %c0_62, %c0_63] : memref<1x8x288xf32, #tpu.memory_space<vmem>>, vector<1x8x288xf32>
    %85 = vector.shape_cast %84 : vector<1x8x288xf32> to vector<8x288xf32>
    %86 = vector.shape_cast %83 : vector<8x288xf32> to vector<1x8x288xf32>
    tpu.vector_store %arg7[%c0_61, %c0_62, %c0_63], %86 {strides = array<i32>} : memref<1x8x288xf32, #tpu.memory_space<vmem>>, vector<1x8x288xf32>,
    return
  }
  func.func @transform_0(%arg0: i32) -> (i32, i32, i32) {
    %c0_i32 = arith.constant 0 : i32
    %c0_i32_0 = arith.constant 0 : i32
    %c0_i32_1 = arith.constant 0 : i32
    return %arg0, %c0_i32, %c0_i32_0 : i32, i32, i32
  }
  func.func @transform_1(%arg0: i32) -> (i32, i32, i32) {
    %c0_i32 = arith.constant 0 : i32
    %c0_i32_0 = arith.constant 0 : i32
    %c0_i32_1 = arith.constant 0 : i32
    %c0_i32_2 = arith.constant 0 : i32
    return %c0_i32, %c0_i32_0, %c0_i32_1 : i32, i32, i32
  }
  func.func @transform_2(%arg0: i32) -> (i32, i32) {
    %c0_i32 = arith.constant 0 : i32
    %c0_i32_0 = arith.constant 0 : i32
    %c0_i32_1 = arith.constant 0 : i32
    return %c0_i32, %c0_i32_0 : i32, i32
  }
  func.func @transform_3(%arg0: i32) -> (i32, i32) {
    %c0_i32 = arith.constant 0 : i32
    %c0_i32_0 = arith.constant 0 : i32
    %c0_i32_1 = arith.constant 0 : i32
    return %c0_i32, %c0_i32_0 : i32, i32
  }
  func.func @transform_4(%arg0: i32) -> (i32, i32) {
    %c0_i32 = arith.constant 0 : i32
    %c0_i32_0 = arith.constant 0 : i32
    %c0_i32_1 = arith.constant 0 : i32
    return %c0_i32, %c0_i32_0 : i32, i32
  }
  func.func @transform_5(%arg0: i32) -> (i32, i32) {
    %c0_i32 = arith.constant 0 : i32
    %c0_i32_0 = arith.constant 0 : i32
    %c0_i32_1 = arith.constant 0 : i32
    return %c0_i32, %c0_i32_0 : i32, i32
  }
  func.func @transform_6(%arg0: i32) -> (i32, i32, i32) {
    %c0_i32 = arith.constant 0 : i32
    %c0_i32_0 = arith.constant 0 : i32
    %c0_i32_1 = arith.constant 0 : i32
    return %arg0, %c0_i32, %c0_i32_0 : i32, i32, i32
  }
}

module attributes {stable_mosaic.version = 11 : i64} {
  func.func @_conv_gn_lrelu_kernel(%arg0: i32, %arg1: memref<1x200x64xbf16, #tpu.memory_space<vmem>>, %arg2: memref<1x16x200xbf16, #tpu.memory_space<vmem>>, %arg3: memref<1x64xf32, #tpu.memory_space<vmem>>, %arg4: memref<16x1xf32, #tpu.memory_space<vmem>>, %arg5: memref<16x1xf32, #tpu.memory_space<vmem>>, %arg6: memref<16x16xf32, #tpu.memory_space<vmem>>, %arg7: memref<1x16x64xf32, #tpu.memory_space<vmem>>) attributes {dimension_semantics = [#tpu.dimension_semantics<parallel>], iteration_bounds = array<i64: 2>, scalar_prefetch = 0 : i64, scratch_operands = 0 : i64, tpu.core_type = #tpu.core_type<tc>, window_params = [{transform_indices = @transform_0, window_bounds = array<i64: 1, 200, 64>}, {pipeline_mode = #tpu.pipeline_mode<synchronous>, transform_indices = @transform_1, window_bounds = array<i64: 1, 16, 200>}, {pipeline_mode = #tpu.pipeline_mode<synchronous>, transform_indices = @transform_2, window_bounds = array<i64: 1, 64>}, {pipeline_mode = #tpu.pipeline_mode<synchronous>, transform_indices = @transform_3, window_bounds = array<i64: 16, 1>}, {pipeline_mode = #tpu.pipeline_mode<synchronous>, transform_indices = @transform_4, window_bounds = array<i64: 16, 1>}, {pipeline_mode = #tpu.pipeline_mode<synchronous>, transform_indices = @transform_5, window_bounds = array<i64: 16, 16>}, {transform_indices = @transform_6, window_bounds = array<i64: 1, 16, 64>}]} {
    %c0 = arith.constant 0 : index
    %c0_0 = arith.constant 0 : index
    %c0_1 = arith.constant 0 : index
    %0 = vector.load %arg2[%c0, %c0_0, %c0_1] : memref<1x16x200xbf16, #tpu.memory_space<vmem>>, vector<1x16x200xbf16>
    %1 = vector.shape_cast %0 : vector<1x16x200xbf16> to vector<16x200xbf16>
    %c0_2 = arith.constant 0 : index
    %c0_3 = arith.constant 0 : index
    %c0_4 = arith.constant 0 : index
    %2 = vector.load %arg1[%c0_2, %c0_3, %c0_4] : memref<1x200x64xbf16, #tpu.memory_space<vmem>>, vector<1x200x64xbf16>
    %3 = vector.shape_cast %2 : vector<1x200x64xbf16> to vector<200x64xbf16>
    %cst = arith.constant dense<0.000000e+00> : vector<16x64xf32>
    %4 = tpu.matmul %1, %3, %cst {dimension_numbers = #tpu.dot_dimension_numbers<[1], [0], [0], [1], [0, 0, 1, 1], [], []>} : vector<16x200xbf16>, vector<200x64xbf16>, vector<16x64xf32> -> vector<16x64xf32>
    %c0_5 = arith.constant 0 : index
    %c0_6 = arith.constant 0 : index
    %5 = vector.load %arg3[%c0_5, %c0_6] : memref<1x64xf32, #tpu.memory_space<vmem>>, vector<1x64xf32>
    %6 = vector.broadcast %5 : vector<1x64xf32> to vector<16x64xf32>
    %7 = arith.mulf %4, %6 : vector<16x64xf32>
    %cst_7 = arith.constant dense<0.000000e+00> : vector<16xf32>
    %8 = vector.multi_reduction <add>, %7, %cst_7 [1] : vector<16x64xf32> to vector<16xf32>
    %9 = vector.shape_cast %8 : vector<16xf32> to vector<16x1xf32>
    %10 = arith.mulf %7, %7 : vector<16x64xf32>
    %cst_8 = arith.constant dense<0.000000e+00> : vector<16xf32>
    %11 = vector.multi_reduction <add>, %10, %cst_8 [1] : vector<16x64xf32> to vector<16xf32>
    %12 = vector.shape_cast %11 : vector<16xf32> to vector<16x1xf32>
    %c0_9 = arith.constant 0 : index
    %c0_10 = arith.constant 0 : index
    %13 = vector.load %arg6[%c0_9, %c0_10] : memref<16x16xf32, #tpu.memory_space<vmem>>, vector<16x16xf32>
    %cst_11 = arith.constant dense<0.000000e+00> : vector<16x1xf32>
    %14 = tpu.matmul %13, %9, %cst_11 {dimension_numbers = #tpu.dot_dimension_numbers<[1], [0], [0], [1], [0, 0, 1, 1], [], []>} : vector<16x16xf32>, vector<16x1xf32>, vector<16x1xf32> -> vector<16x1xf32>
    %c0_12 = arith.constant 0 : index
    %c0_13 = arith.constant 0 : index
    %15 = vector.load %arg6[%c0_12, %c0_13] : memref<16x16xf32, #tpu.memory_space<vmem>>, vector<16x16xf32>
    %cst_14 = arith.constant dense<0.000000e+00> : vector<16x1xf32>
    %16 = tpu.matmul %15, %12, %cst_14 {dimension_numbers = #tpu.dot_dimension_numbers<[1], [0], [0], [1], [0, 0, 1, 1], [], []>} : vector<16x16xf32>, vector<16x1xf32>, vector<16x1xf32> -> vector<16x1xf32>
    %17 = arith.mulf %14, %14 : vector<16x1xf32>
    %18 = arith.subf %16, %17 : vector<16x1xf32>
    %cst_15 = arith.constant 0.000000e+00 : f32
    %19 = vector.broadcast %cst_15 : f32 to vector<16x1xf32>
    %20 = arith.maximumf %18, %19 : vector<16x1xf32>
    %cst_16 = arith.constant 9.99999997E-7 : f32
    %21 = vector.broadcast %cst_16 : f32 to vector<16x1xf32>
    %22 = arith.addf %20, %21 : vector<16x1xf32>
    %23 = math.rsqrt %22 : vector<16x1xf32>
    %c0_17 = arith.constant 0 : index
    %c0_18 = arith.constant 0 : index
    %24 = vector.load %arg4[%c0_17, %c0_18] : memref<16x1xf32, #tpu.memory_space<vmem>>, vector<16x1xf32>
    %25 = arith.mulf %23, %24 : vector<16x1xf32>
    %c0_19 = arith.constant 0 : index
    %c0_20 = arith.constant 0 : index
    %26 = vector.load %arg5[%c0_19, %c0_20] : memref<16x1xf32, #tpu.memory_space<vmem>>, vector<16x1xf32>
    %27 = arith.mulf %14, %25 : vector<16x1xf32>
    %28 = arith.subf %26, %27 : vector<16x1xf32>
    %29 = vector.broadcast %25 : vector<16x1xf32> to vector<16x64xf32>
    %30 = arith.mulf %7, %29 : vector<16x64xf32>
    %31 = vector.broadcast %28 : vector<16x1xf32> to vector<16x64xf32>
    %32 = arith.addf %30, %31 : vector<16x64xf32>
    %cst_21 = arith.constant 0.00999999977 : f32
    %33 = vector.broadcast %cst_21 : f32 to vector<16x64xf32>
    %34 = arith.mulf %33, %32 : vector<16x64xf32>
    %35 = arith.maximumf %32, %34 : vector<16x64xf32>
    %c0_22 = arith.constant 0 : index
    %c0_23 = arith.constant 0 : index
    %c0_24 = arith.constant 0 : index
    %36 = vector.load %arg7[%c0_22, %c0_23, %c0_24] : memref<1x16x64xf32, #tpu.memory_space<vmem>>, vector<1x16x64xf32>
    %37 = vector.shape_cast %36 : vector<1x16x64xf32> to vector<16x64xf32>
    %38 = vector.shape_cast %35 : vector<16x64xf32> to vector<1x16x64xf32>
    tpu.vector_store %arg7[%c0_22, %c0_23, %c0_24], %38 {strides = array<i32>} : memref<1x16x64xf32, #tpu.memory_space<vmem>>, vector<1x16x64xf32>,
    return
  }
  func.func @transform_0(%arg0: i32) -> (i32, i32, i32) {
    %c0_i32 = arith.constant 0 : i32
    %c0_i32_0 = arith.constant 0 : i32
    %c0_i32_1 = arith.constant 0 : i32
    return %arg0, %c0_i32, %c0_i32_0 : i32, i32, i32
  }
  func.func @transform_1(%arg0: i32) -> (i32, i32, i32) {
    %c0_i32 = arith.constant 0 : i32
    %c0_i32_0 = arith.constant 0 : i32
    %c0_i32_1 = arith.constant 0 : i32
    %c0_i32_2 = arith.constant 0 : i32
    return %c0_i32, %c0_i32_0, %c0_i32_1 : i32, i32, i32
  }
  func.func @transform_2(%arg0: i32) -> (i32, i32) {
    %c0_i32 = arith.constant 0 : i32
    %c0_i32_0 = arith.constant 0 : i32
    %c0_i32_1 = arith.constant 0 : i32
    return %c0_i32, %c0_i32_0 : i32, i32
  }
  func.func @transform_3(%arg0: i32) -> (i32, i32) {
    %c0_i32 = arith.constant 0 : i32
    %c0_i32_0 = arith.constant 0 : i32
    %c0_i32_1 = arith.constant 0 : i32
    return %c0_i32, %c0_i32_0 : i32, i32
  }
  func.func @transform_4(%arg0: i32) -> (i32, i32) {
    %c0_i32 = arith.constant 0 : i32
    %c0_i32_0 = arith.constant 0 : i32
    %c0_i32_1 = arith.constant 0 : i32
    return %c0_i32, %c0_i32_0 : i32, i32
  }
  func.func @transform_5(%arg0: i32) -> (i32, i32) {
    %c0_i32 = arith.constant 0 : i32
    %c0_i32_0 = arith.constant 0 : i32
    %c0_i32_1 = arith.constant 0 : i32
    return %c0_i32, %c0_i32_0 : i32, i32
  }
  func.func @transform_6(%arg0: i32) -> (i32, i32, i32) {
    %c0_i32 = arith.constant 0 : i32
    %c0_i32_0 = arith.constant 0 : i32
    %c0_i32_1 = arith.constant 0 : i32
    return %arg0, %c0_i32, %c0_i32_0 : i32, i32, i32
  }
}

module attributes {stable_mosaic.version = 11 : i64} {
  func.func @_conv_gn_lrelu_kernel(%arg0: i32, %arg1: memref<1x16x120xbf16, #tpu.memory_space<vmem>>, %arg2: memref<9x16x16xbf16, #tpu.memory_space<vmem>>, %arg3: memref<1x80xf32, #tpu.memory_space<vmem>>, %arg4: memref<16x1xf32, #tpu.memory_space<vmem>>, %arg5: memref<16x1xf32, #tpu.memory_space<vmem>>, %arg6: memref<16x16xf32, #tpu.memory_space<vmem>>, %arg7: memref<1x16x80xf32, #tpu.memory_space<vmem>>) attributes {dimension_semantics = [#tpu.dimension_semantics<parallel>], iteration_bounds = array<i64: 2>, scalar_prefetch = 0 : i64, scratch_operands = 0 : i64, tpu.core_type = #tpu.core_type<tc>, window_params = [{transform_indices = @transform_0, window_bounds = array<i64: 1, 16, 120>}, {pipeline_mode = #tpu.pipeline_mode<synchronous>, transform_indices = @transform_1, window_bounds = array<i64: 9, 16, 16>}, {pipeline_mode = #tpu.pipeline_mode<synchronous>, transform_indices = @transform_2, window_bounds = array<i64: 1, 80>}, {pipeline_mode = #tpu.pipeline_mode<synchronous>, transform_indices = @transform_3, window_bounds = array<i64: 16, 1>}, {pipeline_mode = #tpu.pipeline_mode<synchronous>, transform_indices = @transform_4, window_bounds = array<i64: 16, 1>}, {pipeline_mode = #tpu.pipeline_mode<synchronous>, transform_indices = @transform_5, window_bounds = array<i64: 16, 16>}, {transform_indices = @transform_6, window_bounds = array<i64: 1, 16, 80>}]} {
    %c0 = arith.constant 0 : index
    %c0_0 = arith.constant 0 : index
    %c0_1 = arith.constant 0 : index
    %0 = vector.load %arg2[%c0, %c0_0, %c0_1] : memref<9x16x16xbf16, #tpu.memory_space<vmem>>, vector<1x16x16xbf16>
    %1 = vector.shape_cast %0 : vector<1x16x16xbf16> to vector<16x16xbf16>
    %c0_2 = arith.constant 0 : index
    %c0_3 = arith.constant 0 : index
    %c9 = arith.constant 9 : index
    %2 = vector.load %arg1[%c0_2, %c0_3, %c9] : memref<1x16x120xbf16, #tpu.memory_space<vmem>>, vector<1x16x80xbf16>
    %3 = vector.shape_cast %2 : vector<1x16x80xbf16> to vector<16x80xbf16>
    %cst = arith.constant dense<0.000000e+00> : vector<16x80xf32>
    %4 = tpu.matmul %1, %3, %cst {dimension_numbers = #tpu.dot_dimension_numbers<[1], [0], [0], [1], [0, 0, 1, 1], [], []>} : vector<16x16xbf16>, vector<16x80xbf16>, vector<16x80xf32> -> vector<16x80xf32>
    %c1 = arith.constant 1 : index
    %c0_4 = arith.constant 0 : index
    %c0_5 = arith.constant 0 : index
    %5 = vector.load %arg2[%c1, %c0_4, %c0_5] : memref<9x16x16xbf16, #tpu.memory_space<vmem>>, vector<1x16x16xbf16>
    %6 = vector.shape_cast %5 : vector<1x16x16xbf16> to vector<16x16xbf16>
    %c0_6 = arith.constant 0 : index
    %c0_7 = arith.constant 0 : index
    %c10 = arith.constant 10 : index
    %7 = vector.load %arg1[%c0_6, %c0_7, %c10] : memref<1x16x120xbf16, #tpu.memory_space<vmem>>, vector<1x16x80xbf16>
    %8 = vector.shape_cast %7 : vector<1x16x80xbf16> to vector<16x80xbf16>
    %cst_8 = arith.constant dense<0.000000e+00> : vector<16x80xf32>
    %9 = tpu.matmul %6, %8, %cst_8 {dimension_numbers = #tpu.dot_dimension_numbers<[1], [0], [0], [1], [0, 0, 1, 1], [], []>} : vector<16x16xbf16>, vector<16x80xbf16>, vector<16x80xf32> -> vector<16x80xf32>
    %10 = arith.addf %4, %9 : vector<16x80xf32>
    %c2 = arith.constant 2 : index
    %c0_9 = arith.constant 0 : index
    %c0_10 = arith.constant 0 : index
    %11 = vector.load %arg2[%c2, %c0_9, %c0_10] : memref<9x16x16xbf16, #tpu.memory_space<vmem>>, vector<1x16x16xbf16>
    %12 = vector.shape_cast %11 : vector<1x16x16xbf16> to vector<16x16xbf16>
    %c0_11 = arith.constant 0 : index
    %c0_12 = arith.constant 0 : index
    %c11 = arith.constant 11 : index
    %13 = vector.load %arg1[%c0_11, %c0_12, %c11] : memref<1x16x120xbf16, #tpu.memory_space<vmem>>, vector<1x16x80xbf16>
    %14 = vector.shape_cast %13 : vector<1x16x80xbf16> to vector<16x80xbf16>
    %cst_13 = arith.constant dense<0.000000e+00> : vector<16x80xf32>
    %15 = tpu.matmul %12, %14, %cst_13 {dimension_numbers = #tpu.dot_dimension_numbers<[1], [0], [0], [1], [0, 0, 1, 1], [], []>} : vector<16x16xbf16>, vector<16x80xbf16>, vector<16x80xf32> -> vector<16x80xf32>
    %16 = arith.addf %10, %15 : vector<16x80xf32>
    %c3 = arith.constant 3 : index
    %c0_14 = arith.constant 0 : index
    %c0_15 = arith.constant 0 : index
    %17 = vector.load %arg2[%c3, %c0_14, %c0_15] : memref<9x16x16xbf16, #tpu.memory_space<vmem>>, vector<1x16x16xbf16>
    %18 = vector.shape_cast %17 : vector<1x16x16xbf16> to vector<16x16xbf16>
    %c0_16 = arith.constant 0 : index
    %c0_17 = arith.constant 0 : index
    %c19 = arith.constant 19 : index
    %19 = vector.load %arg1[%c0_16, %c0_17, %c19] : memref<1x16x120xbf16, #tpu.memory_space<vmem>>, vector<1x16x80xbf16>
    %20 = vector.shape_cast %19 : vector<1x16x80xbf16> to vector<16x80xbf16>
    %cst_18 = arith.constant dense<0.000000e+00> : vector<16x80xf32>
    %21 = tpu.matmul %18, %20, %cst_18 {dimension_numbers = #tpu.dot_dimension_numbers<[1], [0], [0], [1], [0, 0, 1, 1], [], []>} : vector<16x16xbf16>, vector<16x80xbf16>, vector<16x80xf32> -> vector<16x80xf32>
    %22 = arith.addf %16, %21 : vector<16x80xf32>
    %c4 = arith.constant 4 : index
    %c0_19 = arith.constant 0 : index
    %c0_20 = arith.constant 0 : index
    %23 = vector.load %arg2[%c4, %c0_19, %c0_20] : memref<9x16x16xbf16, #tpu.memory_space<vmem>>, vector<1x16x16xbf16>
    %24 = vector.shape_cast %23 : vector<1x16x16xbf16> to vector<16x16xbf16>
    %c0_21 = arith.constant 0 : index
    %c0_22 = arith.constant 0 : index
    %c20 = arith.constant 20 : index
    %25 = vector.load %arg1[%c0_21, %c0_22, %c20] : memref<1x16x120xbf16, #tpu.memory_space<vmem>>, vector<1x16x80xbf16>
    %26 = vector.shape_cast %25 : vector<1x16x80xbf16> to vector<16x80xbf16>
    %cst_23 = arith.constant dense<0.000000e+00> : vector<16x80xf32>
    %27 = tpu.matmul %24, %26, %cst_23 {dimension_numbers = #tpu.dot_dimension_numbers<[1], [0], [0], [1], [0, 0, 1, 1], [], []>} : vector<16x16xbf16>, vector<16x80xbf16>, vector<16x80xf32> -> vector<16x80xf32>
    %28 = arith.addf %22, %27 : vector<16x80xf32>
    %c5 = arith.constant 5 : index
    %c0_24 = arith.constant 0 : index
    %c0_25 = arith.constant 0 : index
    %29 = vector.load %arg2[%c5, %c0_24, %c0_25] : memref<9x16x16xbf16, #tpu.memory_space<vmem>>, vector<1x16x16xbf16>
    %30 = vector.shape_cast %29 : vector<1x16x16xbf16> to vector<16x16xbf16>
    %c0_26 = arith.constant 0 : index
    %c0_27 = arith.constant 0 : index
    %c21 = arith.constant 21 : index
    %31 = vector.load %arg1[%c0_26, %c0_27, %c21] : memref<1x16x120xbf16, #tpu.memory_space<vmem>>, vector<1x16x80xbf16>
    %32 = vector.shape_cast %31 : vector<1x16x80xbf16> to vector<16x80xbf16>
    %cst_28 = arith.constant dense<0.000000e+00> : vector<16x80xf32>
    %33 = tpu.matmul %30, %32, %cst_28 {dimension_numbers = #tpu.dot_dimension_numbers<[1], [0], [0], [1], [0, 0, 1, 1], [], []>} : vector<16x16xbf16>, vector<16x80xbf16>, vector<16x80xf32> -> vector<16x80xf32>
    %34 = arith.addf %28, %33 : vector<16x80xf32>
    %c6 = arith.constant 6 : index
    %c0_29 = arith.constant 0 : index
    %c0_30 = arith.constant 0 : index
    %35 = vector.load %arg2[%c6, %c0_29, %c0_30] : memref<9x16x16xbf16, #tpu.memory_space<vmem>>, vector<1x16x16xbf16>
    %36 = vector.shape_cast %35 : vector<1x16x16xbf16> to vector<16x16xbf16>
    %c0_31 = arith.constant 0 : index
    %c0_32 = arith.constant 0 : index
    %c29 = arith.constant 29 : index
    %37 = vector.load %arg1[%c0_31, %c0_32, %c29] : memref<1x16x120xbf16, #tpu.memory_space<vmem>>, vector<1x16x80xbf16>
    %38 = vector.shape_cast %37 : vector<1x16x80xbf16> to vector<16x80xbf16>
    %cst_33 = arith.constant dense<0.000000e+00> : vector<16x80xf32>
    %39 = tpu.matmul %36, %38, %cst_33 {dimension_numbers = #tpu.dot_dimension_numbers<[1], [0], [0], [1], [0, 0, 1, 1], [], []>} : vector<16x16xbf16>, vector<16x80xbf16>, vector<16x80xf32> -> vector<16x80xf32>
    %40 = arith.addf %34, %39 : vector<16x80xf32>
    %c7 = arith.constant 7 : index
    %c0_34 = arith.constant 0 : index
    %c0_35 = arith.constant 0 : index
    %41 = vector.load %arg2[%c7, %c0_34, %c0_35] : memref<9x16x16xbf16, #tpu.memory_space<vmem>>, vector<1x16x16xbf16>
    %42 = vector.shape_cast %41 : vector<1x16x16xbf16> to vector<16x16xbf16>
    %c0_36 = arith.constant 0 : index
    %c0_37 = arith.constant 0 : index
    %c30 = arith.constant 30 : index
    %43 = vector.load %arg1[%c0_36, %c0_37, %c30] : memref<1x16x120xbf16, #tpu.memory_space<vmem>>, vector<1x16x80xbf16>
    %44 = vector.shape_cast %43 : vector<1x16x80xbf16> to vector<16x80xbf16>
    %cst_38 = arith.constant dense<0.000000e+00> : vector<16x80xf32>
    %45 = tpu.matmul %42, %44, %cst_38 {dimension_numbers = #tpu.dot_dimension_numbers<[1], [0], [0], [1], [0, 0, 1, 1], [], []>} : vector<16x16xbf16>, vector<16x80xbf16>, vector<16x80xf32> -> vector<16x80xf32>
    %46 = arith.addf %40, %45 : vector<16x80xf32>
    %c8 = arith.constant 8 : index
    %c0_39 = arith.constant 0 : index
    %c0_40 = arith.constant 0 : index
    %47 = vector.load %arg2[%c8, %c0_39, %c0_40] : memref<9x16x16xbf16, #tpu.memory_space<vmem>>, vector<1x16x16xbf16>
    %48 = vector.shape_cast %47 : vector<1x16x16xbf16> to vector<16x16xbf16>
    %c0_41 = arith.constant 0 : index
    %c0_42 = arith.constant 0 : index
    %c31 = arith.constant 31 : index
    %49 = vector.load %arg1[%c0_41, %c0_42, %c31] : memref<1x16x120xbf16, #tpu.memory_space<vmem>>, vector<1x16x80xbf16>
    %50 = vector.shape_cast %49 : vector<1x16x80xbf16> to vector<16x80xbf16>
    %cst_43 = arith.constant dense<0.000000e+00> : vector<16x80xf32>
    %51 = tpu.matmul %48, %50, %cst_43 {dimension_numbers = #tpu.dot_dimension_numbers<[1], [0], [0], [1], [0, 0, 1, 1], [], []>} : vector<16x16xbf16>, vector<16x80xbf16>, vector<16x80xf32> -> vector<16x80xf32>
    %52 = arith.addf %46, %51 : vector<16x80xf32>
    %c0_44 = arith.constant 0 : index
    %c0_45 = arith.constant 0 : index
    %53 = vector.load %arg3[%c0_44, %c0_45] : memref<1x80xf32, #tpu.memory_space<vmem>>, vector<1x80xf32>
    %54 = vector.broadcast %53 : vector<1x80xf32> to vector<16x80xf32>
    %55 = arith.mulf %52, %54 : vector<16x80xf32>
    %cst_46 = arith.constant dense<0.000000e+00> : vector<16xf32>
    %56 = vector.multi_reduction <add>, %55, %cst_46 [1] : vector<16x80xf32> to vector<16xf32>
    %57 = vector.shape_cast %56 : vector<16xf32> to vector<16x1xf32>
    %58 = arith.mulf %55, %55 : vector<16x80xf32>
    %cst_47 = arith.constant dense<0.000000e+00> : vector<16xf32>
    %59 = vector.multi_reduction <add>, %58, %cst_47 [1] : vector<16x80xf32> to vector<16xf32>
    %60 = vector.shape_cast %59 : vector<16xf32> to vector<16x1xf32>
    %c0_48 = arith.constant 0 : index
    %c0_49 = arith.constant 0 : index
    %61 = vector.load %arg6[%c0_48, %c0_49] : memref<16x16xf32, #tpu.memory_space<vmem>>, vector<16x16xf32>
    %cst_50 = arith.constant dense<0.000000e+00> : vector<16x1xf32>
    %62 = tpu.matmul %61, %57, %cst_50 {dimension_numbers = #tpu.dot_dimension_numbers<[1], [0], [0], [1], [0, 0, 1, 1], [], []>} : vector<16x16xf32>, vector<16x1xf32>, vector<16x1xf32> -> vector<16x1xf32>
    %c0_51 = arith.constant 0 : index
    %c0_52 = arith.constant 0 : index
    %63 = vector.load %arg6[%c0_51, %c0_52] : memref<16x16xf32, #tpu.memory_space<vmem>>, vector<16x16xf32>
    %cst_53 = arith.constant dense<0.000000e+00> : vector<16x1xf32>
    %64 = tpu.matmul %63, %60, %cst_53 {dimension_numbers = #tpu.dot_dimension_numbers<[1], [0], [0], [1], [0, 0, 1, 1], [], []>} : vector<16x16xf32>, vector<16x1xf32>, vector<16x1xf32> -> vector<16x1xf32>
    %65 = arith.mulf %62, %62 : vector<16x1xf32>
    %66 = arith.subf %64, %65 : vector<16x1xf32>
    %cst_54 = arith.constant 0.000000e+00 : f32
    %67 = vector.broadcast %cst_54 : f32 to vector<16x1xf32>
    %68 = arith.maximumf %66, %67 : vector<16x1xf32>
    %cst_55 = arith.constant 9.99999997E-7 : f32
    %69 = vector.broadcast %cst_55 : f32 to vector<16x1xf32>
    %70 = arith.addf %68, %69 : vector<16x1xf32>
    %71 = math.rsqrt %70 : vector<16x1xf32>
    %c0_56 = arith.constant 0 : index
    %c0_57 = arith.constant 0 : index
    %72 = vector.load %arg4[%c0_56, %c0_57] : memref<16x1xf32, #tpu.memory_space<vmem>>, vector<16x1xf32>
    %73 = arith.mulf %71, %72 : vector<16x1xf32>
    %c0_58 = arith.constant 0 : index
    %c0_59 = arith.constant 0 : index
    %74 = vector.load %arg5[%c0_58, %c0_59] : memref<16x1xf32, #tpu.memory_space<vmem>>, vector<16x1xf32>
    %75 = arith.mulf %62, %73 : vector<16x1xf32>
    %76 = arith.subf %74, %75 : vector<16x1xf32>
    %77 = vector.broadcast %73 : vector<16x1xf32> to vector<16x80xf32>
    %78 = arith.mulf %55, %77 : vector<16x80xf32>
    %79 = vector.broadcast %76 : vector<16x1xf32> to vector<16x80xf32>
    %80 = arith.addf %78, %79 : vector<16x80xf32>
    %cst_60 = arith.constant 0.00999999977 : f32
    %81 = vector.broadcast %cst_60 : f32 to vector<16x80xf32>
    %82 = arith.mulf %81, %80 : vector<16x80xf32>
    %83 = arith.maximumf %80, %82 : vector<16x80xf32>
    %c0_61 = arith.constant 0 : index
    %c0_62 = arith.constant 0 : index
    %c0_63 = arith.constant 0 : index
    %84 = vector.load %arg7[%c0_61, %c0_62, %c0_63] : memref<1x16x80xf32, #tpu.memory_space<vmem>>, vector<1x16x80xf32>
    %85 = vector.shape_cast %84 : vector<1x16x80xf32> to vector<16x80xf32>
    %86 = vector.shape_cast %83 : vector<16x80xf32> to vector<1x16x80xf32>
    tpu.vector_store %arg7[%c0_61, %c0_62, %c0_63], %86 {strides = array<i32>} : memref<1x16x80xf32, #tpu.memory_space<vmem>>, vector<1x16x80xf32>,
    return
  }
  func.func @transform_0(%arg0: i32) -> (i32, i32, i32) {
    %c0_i32 = arith.constant 0 : i32
    %c0_i32_0 = arith.constant 0 : i32
    %c0_i32_1 = arith.constant 0 : i32
    return %arg0, %c0_i32, %c0_i32_0 : i32, i32, i32
  }
  func.func @transform_1(%arg0: i32) -> (i32, i32, i32) {
    %c0_i32 = arith.constant 0 : i32
    %c0_i32_0 = arith.constant 0 : i32
    %c0_i32_1 = arith.constant 0 : i32
    %c0_i32_2 = arith.constant 0 : i32
    return %c0_i32, %c0_i32_0, %c0_i32_1 : i32, i32, i32
  }
  func.func @transform_2(%arg0: i32) -> (i32, i32) {
    %c0_i32 = arith.constant 0 : i32
    %c0_i32_0 = arith.constant 0 : i32
    %c0_i32_1 = arith.constant 0 : i32
    return %c0_i32, %c0_i32_0 : i32, i32
  }
  func.func @transform_3(%arg0: i32) -> (i32, i32) {
    %c0_i32 = arith.constant 0 : i32
    %c0_i32_0 = arith.constant 0 : i32
    %c0_i32_1 = arith.constant 0 : i32
    return %c0_i32, %c0_i32_0 : i32, i32
  }
  func.func @transform_4(%arg0: i32) -> (i32, i32) {
    %c0_i32 = arith.constant 0 : i32
    %c0_i32_0 = arith.constant 0 : i32
    %c0_i32_1 = arith.constant 0 : i32
    return %c0_i32, %c0_i32_0 : i32, i32
  }
  func.func @transform_5(%arg0: i32) -> (i32, i32) {
    %c0_i32 = arith.constant 0 : i32
    %c0_i32_0 = arith.constant 0 : i32
    %c0_i32_1 = arith.constant 0 : i32
    return %c0_i32, %c0_i32_0 : i32, i32
  }
  func.func @transform_6(%arg0: i32) -> (i32, i32, i32) {
    %c0_i32 = arith.constant 0 : i32
    %c0_i32_0 = arith.constant 0 : i32
    %c0_i32_1 = arith.constant 0 : i32
    return %arg0, %c0_i32, %c0_i32_0 : i32, i32, i32
  }
}

module attributes {stable_mosaic.version = 11 : i64} {
  func.func @_conv_gn_lrelu_kernel(%arg0: i32, %arg1: memref<1x400x16xbf16, #tpu.memory_space<vmem>>, %arg2: memref<1x32x400xbf16, #tpu.memory_space<vmem>>, %arg3: memref<1x16xf32, #tpu.memory_space<vmem>>, %arg4: memref<32x1xf32, #tpu.memory_space<vmem>>, %arg5: memref<32x1xf32, #tpu.memory_space<vmem>>, %arg6: memref<32x32xf32, #tpu.memory_space<vmem>>, %arg7: memref<1x32x16xf32, #tpu.memory_space<vmem>>) attributes {dimension_semantics = [#tpu.dimension_semantics<parallel>], iteration_bounds = array<i64: 2>, scalar_prefetch = 0 : i64, scratch_operands = 0 : i64, tpu.core_type = #tpu.core_type<tc>, window_params = [{transform_indices = @transform_0, window_bounds = array<i64: 1, 400, 16>}, {pipeline_mode = #tpu.pipeline_mode<synchronous>, transform_indices = @transform_1, window_bounds = array<i64: 1, 32, 400>}, {pipeline_mode = #tpu.pipeline_mode<synchronous>, transform_indices = @transform_2, window_bounds = array<i64: 1, 16>}, {pipeline_mode = #tpu.pipeline_mode<synchronous>, transform_indices = @transform_3, window_bounds = array<i64: 32, 1>}, {pipeline_mode = #tpu.pipeline_mode<synchronous>, transform_indices = @transform_4, window_bounds = array<i64: 32, 1>}, {pipeline_mode = #tpu.pipeline_mode<synchronous>, transform_indices = @transform_5, window_bounds = array<i64: 32, 32>}, {transform_indices = @transform_6, window_bounds = array<i64: 1, 32, 16>}]} {
    %c0 = arith.constant 0 : index
    %c0_0 = arith.constant 0 : index
    %c0_1 = arith.constant 0 : index
    %0 = vector.load %arg2[%c0, %c0_0, %c0_1] : memref<1x32x400xbf16, #tpu.memory_space<vmem>>, vector<1x32x400xbf16>
    %1 = vector.shape_cast %0 : vector<1x32x400xbf16> to vector<32x400xbf16>
    %c0_2 = arith.constant 0 : index
    %c0_3 = arith.constant 0 : index
    %c0_4 = arith.constant 0 : index
    %2 = vector.load %arg1[%c0_2, %c0_3, %c0_4] : memref<1x400x16xbf16, #tpu.memory_space<vmem>>, vector<1x400x16xbf16>
    %3 = vector.shape_cast %2 : vector<1x400x16xbf16> to vector<400x16xbf16>
    %cst = arith.constant dense<0.000000e+00> : vector<32x16xf32>
    %4 = tpu.matmul %1, %3, %cst {dimension_numbers = #tpu.dot_dimension_numbers<[1], [0], [0], [1], [0, 0, 1, 1], [], []>} : vector<32x400xbf16>, vector<400x16xbf16>, vector<32x16xf32> -> vector<32x16xf32>
    %c0_5 = arith.constant 0 : index
    %c0_6 = arith.constant 0 : index
    %5 = vector.load %arg3[%c0_5, %c0_6] : memref<1x16xf32, #tpu.memory_space<vmem>>, vector<1x16xf32>
    %6 = vector.broadcast %5 : vector<1x16xf32> to vector<32x16xf32>
    %7 = arith.mulf %4, %6 : vector<32x16xf32>
    %cst_7 = arith.constant dense<0.000000e+00> : vector<32xf32>
    %8 = vector.multi_reduction <add>, %7, %cst_7 [1] : vector<32x16xf32> to vector<32xf32>
    %9 = vector.shape_cast %8 : vector<32xf32> to vector<32x1xf32>
    %10 = arith.mulf %7, %7 : vector<32x16xf32>
    %cst_8 = arith.constant dense<0.000000e+00> : vector<32xf32>
    %11 = vector.multi_reduction <add>, %10, %cst_8 [1] : vector<32x16xf32> to vector<32xf32>
    %12 = vector.shape_cast %11 : vector<32xf32> to vector<32x1xf32>
    %c0_9 = arith.constant 0 : index
    %c0_10 = arith.constant 0 : index
    %13 = vector.load %arg6[%c0_9, %c0_10] : memref<32x32xf32, #tpu.memory_space<vmem>>, vector<32x32xf32>
    %cst_11 = arith.constant dense<0.000000e+00> : vector<32x1xf32>
    %14 = tpu.matmul %13, %9, %cst_11 {dimension_numbers = #tpu.dot_dimension_numbers<[1], [0], [0], [1], [0, 0, 1, 1], [], []>} : vector<32x32xf32>, vector<32x1xf32>, vector<32x1xf32> -> vector<32x1xf32>
    %c0_12 = arith.constant 0 : index
    %c0_13 = arith.constant 0 : index
    %15 = vector.load %arg6[%c0_12, %c0_13] : memref<32x32xf32, #tpu.memory_space<vmem>>, vector<32x32xf32>
    %cst_14 = arith.constant dense<0.000000e+00> : vector<32x1xf32>
    %16 = tpu.matmul %15, %12, %cst_14 {dimension_numbers = #tpu.dot_dimension_numbers<[1], [0], [0], [1], [0, 0, 1, 1], [], []>} : vector<32x32xf32>, vector<32x1xf32>, vector<32x1xf32> -> vector<32x1xf32>
    %17 = arith.mulf %14, %14 : vector<32x1xf32>
    %18 = arith.subf %16, %17 : vector<32x1xf32>
    %cst_15 = arith.constant 0.000000e+00 : f32
    %19 = vector.broadcast %cst_15 : f32 to vector<32x1xf32>
    %20 = arith.maximumf %18, %19 : vector<32x1xf32>
    %cst_16 = arith.constant 9.99999997E-7 : f32
    %21 = vector.broadcast %cst_16 : f32 to vector<32x1xf32>
    %22 = arith.addf %20, %21 : vector<32x1xf32>
    %23 = math.rsqrt %22 : vector<32x1xf32>
    %c0_17 = arith.constant 0 : index
    %c0_18 = arith.constant 0 : index
    %24 = vector.load %arg4[%c0_17, %c0_18] : memref<32x1xf32, #tpu.memory_space<vmem>>, vector<32x1xf32>
    %25 = arith.mulf %23, %24 : vector<32x1xf32>
    %c0_19 = arith.constant 0 : index
    %c0_20 = arith.constant 0 : index
    %26 = vector.load %arg5[%c0_19, %c0_20] : memref<32x1xf32, #tpu.memory_space<vmem>>, vector<32x1xf32>
    %27 = arith.mulf %14, %25 : vector<32x1xf32>
    %28 = arith.subf %26, %27 : vector<32x1xf32>
    %29 = vector.broadcast %25 : vector<32x1xf32> to vector<32x16xf32>
    %30 = arith.mulf %7, %29 : vector<32x16xf32>
    %31 = vector.broadcast %28 : vector<32x1xf32> to vector<32x16xf32>
    %32 = arith.addf %30, %31 : vector<32x16xf32>
    %cst_21 = arith.constant 0.00999999977 : f32
    %33 = vector.broadcast %cst_21 : f32 to vector<32x16xf32>
    %34 = arith.mulf %33, %32 : vector<32x16xf32>
    %35 = arith.maximumf %32, %34 : vector<32x16xf32>
    %c0_22 = arith.constant 0 : index
    %c0_23 = arith.constant 0 : index
    %c0_24 = arith.constant 0 : index
    %36 = vector.load %arg7[%c0_22, %c0_23, %c0_24] : memref<1x32x16xf32, #tpu.memory_space<vmem>>, vector<1x32x16xf32>
    %37 = vector.shape_cast %36 : vector<1x32x16xf32> to vector<32x16xf32>
    %38 = vector.shape_cast %35 : vector<32x16xf32> to vector<1x32x16xf32>
    tpu.vector_store %arg7[%c0_22, %c0_23, %c0_24], %38 {strides = array<i32>} : memref<1x32x16xf32, #tpu.memory_space<vmem>>, vector<1x32x16xf32>,
    return
  }
  func.func @transform_0(%arg0: i32) -> (i32, i32, i32) {
    %c0_i32 = arith.constant 0 : i32
    %c0_i32_0 = arith.constant 0 : i32
    %c0_i32_1 = arith.constant 0 : i32
    return %arg0, %c0_i32, %c0_i32_0 : i32, i32, i32
  }
  func.func @transform_1(%arg0: i32) -> (i32, i32, i32) {
    %c0_i32 = arith.constant 0 : i32
    %c0_i32_0 = arith.constant 0 : i32
    %c0_i32_1 = arith.constant 0 : i32
    %c0_i32_2 = arith.constant 0 : i32
    return %c0_i32, %c0_i32_0, %c0_i32_1 : i32, i32, i32
  }
  func.func @transform_2(%arg0: i32) -> (i32, i32) {
    %c0_i32 = arith.constant 0 : i32
    %c0_i32_0 = arith.constant 0 : i32
    %c0_i32_1 = arith.constant 0 : i32
    return %c0_i32, %c0_i32_0 : i32, i32
  }
  func.func @transform_3(%arg0: i32) -> (i32, i32) {
    %c0_i32 = arith.constant 0 : i32
    %c0_i32_0 = arith.constant 0 : i32
    %c0_i32_1 = arith.constant 0 : i32
    return %c0_i32, %c0_i32_0 : i32, i32
  }
  func.func @transform_4(%arg0: i32) -> (i32, i32) {
    %c0_i32 = arith.constant 0 : i32
    %c0_i32_0 = arith.constant 0 : i32
    %c0_i32_1 = arith.constant 0 : i32
    return %c0_i32, %c0_i32_0 : i32, i32
  }
  func.func @transform_5(%arg0: i32) -> (i32, i32) {
    %c0_i32 = arith.constant 0 : i32
    %c0_i32_0 = arith.constant 0 : i32
    %c0_i32_1 = arith.constant 0 : i32
    return %c0_i32, %c0_i32_0 : i32, i32
  }
  func.func @transform_6(%arg0: i32) -> (i32, i32, i32) {
    %c0_i32 = arith.constant 0 : i32
    %c0_i32_0 = arith.constant 0 : i32
    %c0_i32_1 = arith.constant 0 : i32
    return %arg0, %c0_i32, %c0_i32_0 : i32, i32, i32
  }
}

module attributes {stable_mosaic.version = 11 : i64} {
  func.func @_conv_gn_lrelu_kernel(%arg0: i32, %arg1: memref<1x32x48xbf16, #tpu.memory_space<vmem>>, %arg2: memref<9x32x32xbf16, #tpu.memory_space<vmem>>, %arg3: memref<1x24xf32, #tpu.memory_space<vmem>>, %arg4: memref<32x1xf32, #tpu.memory_space<vmem>>, %arg5: memref<32x1xf32, #tpu.memory_space<vmem>>, %arg6: memref<32x32xf32, #tpu.memory_space<vmem>>, %arg7: memref<1x32x24xf32, #tpu.memory_space<vmem>>) attributes {dimension_semantics = [#tpu.dimension_semantics<parallel>], iteration_bounds = array<i64: 2>, scalar_prefetch = 0 : i64, scratch_operands = 0 : i64, tpu.core_type = #tpu.core_type<tc>, window_params = [{transform_indices = @transform_0, window_bounds = array<i64: 1, 32, 48>}, {pipeline_mode = #tpu.pipeline_mode<synchronous>, transform_indices = @transform_1, window_bounds = array<i64: 9, 32, 32>}, {pipeline_mode = #tpu.pipeline_mode<synchronous>, transform_indices = @transform_2, window_bounds = array<i64: 1, 24>}, {pipeline_mode = #tpu.pipeline_mode<synchronous>, transform_indices = @transform_3, window_bounds = array<i64: 32, 1>}, {pipeline_mode = #tpu.pipeline_mode<synchronous>, transform_indices = @transform_4, window_bounds = array<i64: 32, 1>}, {pipeline_mode = #tpu.pipeline_mode<synchronous>, transform_indices = @transform_5, window_bounds = array<i64: 32, 32>}, {transform_indices = @transform_6, window_bounds = array<i64: 1, 32, 24>}]} {
    %c0 = arith.constant 0 : index
    %c0_0 = arith.constant 0 : index
    %c0_1 = arith.constant 0 : index
    %0 = vector.load %arg2[%c0, %c0_0, %c0_1] : memref<9x32x32xbf16, #tpu.memory_space<vmem>>, vector<1x32x32xbf16>
    %1 = vector.shape_cast %0 : vector<1x32x32xbf16> to vector<32x32xbf16>
    %c0_2 = arith.constant 0 : index
    %c0_3 = arith.constant 0 : index
    %c5 = arith.constant 5 : index
    %2 = vector.load %arg1[%c0_2, %c0_3, %c5] : memref<1x32x48xbf16, #tpu.memory_space<vmem>>, vector<1x32x24xbf16>
    %3 = vector.shape_cast %2 : vector<1x32x24xbf16> to vector<32x24xbf16>
    %cst = arith.constant dense<0.000000e+00> : vector<32x24xf32>
    %4 = tpu.matmul %1, %3, %cst {dimension_numbers = #tpu.dot_dimension_numbers<[1], [0], [0], [1], [0, 0, 1, 1], [], []>} : vector<32x32xbf16>, vector<32x24xbf16>, vector<32x24xf32> -> vector<32x24xf32>
    %c1 = arith.constant 1 : index
    %c0_4 = arith.constant 0 : index
    %c0_5 = arith.constant 0 : index
    %5 = vector.load %arg2[%c1, %c0_4, %c0_5] : memref<9x32x32xbf16, #tpu.memory_space<vmem>>, vector<1x32x32xbf16>
    %6 = vector.shape_cast %5 : vector<1x32x32xbf16> to vector<32x32xbf16>
    %c0_6 = arith.constant 0 : index
    %c0_7 = arith.constant 0 : index
    %c6 = arith.constant 6 : index
    %7 = vector.load %arg1[%c0_6, %c0_7, %c6] : memref<1x32x48xbf16, #tpu.memory_space<vmem>>, vector<1x32x24xbf16>
    %8 = vector.shape_cast %7 : vector<1x32x24xbf16> to vector<32x24xbf16>
    %cst_8 = arith.constant dense<0.000000e+00> : vector<32x24xf32>
    %9 = tpu.matmul %6, %8, %cst_8 {dimension_numbers = #tpu.dot_dimension_numbers<[1], [0], [0], [1], [0, 0, 1, 1], [], []>} : vector<32x32xbf16>, vector<32x24xbf16>, vector<32x24xf32> -> vector<32x24xf32>
    %10 = arith.addf %4, %9 : vector<32x24xf32>
    %c2 = arith.constant 2 : index
    %c0_9 = arith.constant 0 : index
    %c0_10 = arith.constant 0 : index
    %11 = vector.load %arg2[%c2, %c0_9, %c0_10] : memref<9x32x32xbf16, #tpu.memory_space<vmem>>, vector<1x32x32xbf16>
    %12 = vector.shape_cast %11 : vector<1x32x32xbf16> to vector<32x32xbf16>
    %c0_11 = arith.constant 0 : index
    %c0_12 = arith.constant 0 : index
    %c7 = arith.constant 7 : index
    %13 = vector.load %arg1[%c0_11, %c0_12, %c7] : memref<1x32x48xbf16, #tpu.memory_space<vmem>>, vector<1x32x24xbf16>
    %14 = vector.shape_cast %13 : vector<1x32x24xbf16> to vector<32x24xbf16>
    %cst_13 = arith.constant dense<0.000000e+00> : vector<32x24xf32>
    %15 = tpu.matmul %12, %14, %cst_13 {dimension_numbers = #tpu.dot_dimension_numbers<[1], [0], [0], [1], [0, 0, 1, 1], [], []>} : vector<32x32xbf16>, vector<32x24xbf16>, vector<32x24xf32> -> vector<32x24xf32>
    %16 = arith.addf %10, %15 : vector<32x24xf32>
    %c3 = arith.constant 3 : index
    %c0_14 = arith.constant 0 : index
    %c0_15 = arith.constant 0 : index
    %17 = vector.load %arg2[%c3, %c0_14, %c0_15] : memref<9x32x32xbf16, #tpu.memory_space<vmem>>, vector<1x32x32xbf16>
    %18 = vector.shape_cast %17 : vector<1x32x32xbf16> to vector<32x32xbf16>
    %c0_16 = arith.constant 0 : index
    %c0_17 = arith.constant 0 : index
    %c11 = arith.constant 11 : index
    %19 = vector.load %arg1[%c0_16, %c0_17, %c11] : memref<1x32x48xbf16, #tpu.memory_space<vmem>>, vector<1x32x24xbf16>
    %20 = vector.shape_cast %19 : vector<1x32x24xbf16> to vector<32x24xbf16>
    %cst_18 = arith.constant dense<0.000000e+00> : vector<32x24xf32>
    %21 = tpu.matmul %18, %20, %cst_18 {dimension_numbers = #tpu.dot_dimension_numbers<[1], [0], [0], [1], [0, 0, 1, 1], [], []>} : vector<32x32xbf16>, vector<32x24xbf16>, vector<32x24xf32> -> vector<32x24xf32>
    %22 = arith.addf %16, %21 : vector<32x24xf32>
    %c4 = arith.constant 4 : index
    %c0_19 = arith.constant 0 : index
    %c0_20 = arith.constant 0 : index
    %23 = vector.load %arg2[%c4, %c0_19, %c0_20] : memref<9x32x32xbf16, #tpu.memory_space<vmem>>, vector<1x32x32xbf16>
    %24 = vector.shape_cast %23 : vector<1x32x32xbf16> to vector<32x32xbf16>
    %c0_21 = arith.constant 0 : index
    %c0_22 = arith.constant 0 : index
    %c12 = arith.constant 12 : index
    %25 = vector.load %arg1[%c0_21, %c0_22, %c12] : memref<1x32x48xbf16, #tpu.memory_space<vmem>>, vector<1x32x24xbf16>
    %26 = vector.shape_cast %25 : vector<1x32x24xbf16> to vector<32x24xbf16>
    %cst_23 = arith.constant dense<0.000000e+00> : vector<32x24xf32>
    %27 = tpu.matmul %24, %26, %cst_23 {dimension_numbers = #tpu.dot_dimension_numbers<[1], [0], [0], [1], [0, 0, 1, 1], [], []>} : vector<32x32xbf16>, vector<32x24xbf16>, vector<32x24xf32> -> vector<32x24xf32>
    %28 = arith.addf %22, %27 : vector<32x24xf32>
    %c5_24 = arith.constant 5 : index
    %c0_25 = arith.constant 0 : index
    %c0_26 = arith.constant 0 : index
    %29 = vector.load %arg2[%c5_24, %c0_25, %c0_26] : memref<9x32x32xbf16, #tpu.memory_space<vmem>>, vector<1x32x32xbf16>
    %30 = vector.shape_cast %29 : vector<1x32x32xbf16> to vector<32x32xbf16>
    %c0_27 = arith.constant 0 : index
    %c0_28 = arith.constant 0 : index
    %c13 = arith.constant 13 : index
    %31 = vector.load %arg1[%c0_27, %c0_28, %c13] : memref<1x32x48xbf16, #tpu.memory_space<vmem>>, vector<1x32x24xbf16>
    %32 = vector.shape_cast %31 : vector<1x32x24xbf16> to vector<32x24xbf16>
    %cst_29 = arith.constant dense<0.000000e+00> : vector<32x24xf32>
    %33 = tpu.matmul %30, %32, %cst_29 {dimension_numbers = #tpu.dot_dimension_numbers<[1], [0], [0], [1], [0, 0, 1, 1], [], []>} : vector<32x32xbf16>, vector<32x24xbf16>, vector<32x24xf32> -> vector<32x24xf32>
    %34 = arith.addf %28, %33 : vector<32x24xf32>
    %c6_30 = arith.constant 6 : index
    %c0_31 = arith.constant 0 : index
    %c0_32 = arith.constant 0 : index
    %35 = vector.load %arg2[%c6_30, %c0_31, %c0_32] : memref<9x32x32xbf16, #tpu.memory_space<vmem>>, vector<1x32x32xbf16>
    %36 = vector.shape_cast %35 : vector<1x32x32xbf16> to vector<32x32xbf16>
    %c0_33 = arith.constant 0 : index
    %c0_34 = arith.constant 0 : index
    %c17 = arith.constant 17 : index
    %37 = vector.load %arg1[%c0_33, %c0_34, %c17] : memref<1x32x48xbf16, #tpu.memory_space<vmem>>, vector<1x32x24xbf16>
    %38 = vector.shape_cast %37 : vector<1x32x24xbf16> to vector<32x24xbf16>
    %cst_35 = arith.constant dense<0.000000e+00> : vector<32x24xf32>
    %39 = tpu.matmul %36, %38, %cst_35 {dimension_numbers = #tpu.dot_dimension_numbers<[1], [0], [0], [1], [0, 0, 1, 1], [], []>} : vector<32x32xbf16>, vector<32x24xbf16>, vector<32x24xf32> -> vector<32x24xf32>
    %40 = arith.addf %34, %39 : vector<32x24xf32>
    %c7_36 = arith.constant 7 : index
    %c0_37 = arith.constant 0 : index
    %c0_38 = arith.constant 0 : index
    %41 = vector.load %arg2[%c7_36, %c0_37, %c0_38] : memref<9x32x32xbf16, #tpu.memory_space<vmem>>, vector<1x32x32xbf16>
    %42 = vector.shape_cast %41 : vector<1x32x32xbf16> to vector<32x32xbf16>
    %c0_39 = arith.constant 0 : index
    %c0_40 = arith.constant 0 : index
    %c18 = arith.constant 18 : index
    %43 = vector.load %arg1[%c0_39, %c0_40, %c18] : memref<1x32x48xbf16, #tpu.memory_space<vmem>>, vector<1x32x24xbf16>
    %44 = vector.shape_cast %43 : vector<1x32x24xbf16> to vector<32x24xbf16>
    %cst_41 = arith.constant dense<0.000000e+00> : vector<32x24xf32>
    %45 = tpu.matmul %42, %44, %cst_41 {dimension_numbers = #tpu.dot_dimension_numbers<[1], [0], [0], [1], [0, 0, 1, 1], [], []>} : vector<32x32xbf16>, vector<32x24xbf16>, vector<32x24xf32> -> vector<32x24xf32>
    %46 = arith.addf %40, %45 : vector<32x24xf32>
    %c8 = arith.constant 8 : index
    %c0_42 = arith.constant 0 : index
    %c0_43 = arith.constant 0 : index
    %47 = vector.load %arg2[%c8, %c0_42, %c0_43] : memref<9x32x32xbf16, #tpu.memory_space<vmem>>, vector<1x32x32xbf16>
    %48 = vector.shape_cast %47 : vector<1x32x32xbf16> to vector<32x32xbf16>
    %c0_44 = arith.constant 0 : index
    %c0_45 = arith.constant 0 : index
    %c19 = arith.constant 19 : index
    %49 = vector.load %arg1[%c0_44, %c0_45, %c19] : memref<1x32x48xbf16, #tpu.memory_space<vmem>>, vector<1x32x24xbf16>
    %50 = vector.shape_cast %49 : vector<1x32x24xbf16> to vector<32x24xbf16>
    %cst_46 = arith.constant dense<0.000000e+00> : vector<32x24xf32>
    %51 = tpu.matmul %48, %50, %cst_46 {dimension_numbers = #tpu.dot_dimension_numbers<[1], [0], [0], [1], [0, 0, 1, 1], [], []>} : vector<32x32xbf16>, vector<32x24xbf16>, vector<32x24xf32> -> vector<32x24xf32>
    %52 = arith.addf %46, %51 : vector<32x24xf32>
    %c0_47 = arith.constant 0 : index
    %c0_48 = arith.constant 0 : index
    %53 = vector.load %arg3[%c0_47, %c0_48] : memref<1x24xf32, #tpu.memory_space<vmem>>, vector<1x24xf32>
    %54 = vector.broadcast %53 : vector<1x24xf32> to vector<32x24xf32>
    %55 = arith.mulf %52, %54 : vector<32x24xf32>
    %cst_49 = arith.constant dense<0.000000e+00> : vector<32xf32>
    %56 = vector.multi_reduction <add>, %55, %cst_49 [1] : vector<32x24xf32> to vector<32xf32>
    %57 = vector.shape_cast %56 : vector<32xf32> to vector<32x1xf32>
    %58 = arith.mulf %55, %55 : vector<32x24xf32>
    %cst_50 = arith.constant dense<0.000000e+00> : vector<32xf32>
    %59 = vector.multi_reduction <add>, %58, %cst_50 [1] : vector<32x24xf32> to vector<32xf32>
    %60 = vector.shape_cast %59 : vector<32xf32> to vector<32x1xf32>
    %c0_51 = arith.constant 0 : index
    %c0_52 = arith.constant 0 : index
    %61 = vector.load %arg6[%c0_51, %c0_52] : memref<32x32xf32, #tpu.memory_space<vmem>>, vector<32x32xf32>
    %cst_53 = arith.constant dense<0.000000e+00> : vector<32x1xf32>
    %62 = tpu.matmul %61, %57, %cst_53 {dimension_numbers = #tpu.dot_dimension_numbers<[1], [0], [0], [1], [0, 0, 1, 1], [], []>} : vector<32x32xf32>, vector<32x1xf32>, vector<32x1xf32> -> vector<32x1xf32>
    %c0_54 = arith.constant 0 : index
    %c0_55 = arith.constant 0 : index
    %63 = vector.load %arg6[%c0_54, %c0_55] : memref<32x32xf32, #tpu.memory_space<vmem>>, vector<32x32xf32>
    %cst_56 = arith.constant dense<0.000000e+00> : vector<32x1xf32>
    %64 = tpu.matmul %63, %60, %cst_56 {dimension_numbers = #tpu.dot_dimension_numbers<[1], [0], [0], [1], [0, 0, 1, 1], [], []>} : vector<32x32xf32>, vector<32x1xf32>, vector<32x1xf32> -> vector<32x1xf32>
    %65 = arith.mulf %62, %62 : vector<32x1xf32>
    %66 = arith.subf %64, %65 : vector<32x1xf32>
    %cst_57 = arith.constant 0.000000e+00 : f32
    %67 = vector.broadcast %cst_57 : f32 to vector<32x1xf32>
    %68 = arith.maximumf %66, %67 : vector<32x1xf32>
    %cst_58 = arith.constant 9.99999997E-7 : f32
    %69 = vector.broadcast %cst_58 : f32 to vector<32x1xf32>
    %70 = arith.addf %68, %69 : vector<32x1xf32>
    %71 = math.rsqrt %70 : vector<32x1xf32>
    %c0_59 = arith.constant 0 : index
    %c0_60 = arith.constant 0 : index
    %72 = vector.load %arg4[%c0_59, %c0_60] : memref<32x1xf32, #tpu.memory_space<vmem>>, vector<32x1xf32>
    %73 = arith.mulf %71, %72 : vector<32x1xf32>
    %c0_61 = arith.constant 0 : index
    %c0_62 = arith.constant 0 : index
    %74 = vector.load %arg5[%c0_61, %c0_62] : memref<32x1xf32, #tpu.memory_space<vmem>>, vector<32x1xf32>
    %75 = arith.mulf %62, %73 : vector<32x1xf32>
    %76 = arith.subf %74, %75 : vector<32x1xf32>
    %77 = vector.broadcast %73 : vector<32x1xf32> to vector<32x24xf32>
    %78 = arith.mulf %55, %77 : vector<32x24xf32>
    %79 = vector.broadcast %76 : vector<32x1xf32> to vector<32x24xf32>
    %80 = arith.addf %78, %79 : vector<32x24xf32>
    %cst_63 = arith.constant 0.00999999977 : f32
    %81 = vector.broadcast %cst_63 : f32 to vector<32x24xf32>
    %82 = arith.mulf %81, %80 : vector<32x24xf32>
    %83 = arith.maximumf %80, %82 : vector<32x24xf32>
    %c0_64 = arith.constant 0 : index
    %c0_65 = arith.constant 0 : index
    %c0_66 = arith.constant 0 : index
    %84 = vector.load %arg7[%c0_64, %c0_65, %c0_66] : memref<1x32x24xf32, #tpu.memory_space<vmem>>, vector<1x32x24xf32>
    %85 = vector.shape_cast %84 : vector<1x32x24xf32> to vector<32x24xf32>
    %86 = vector.shape_cast %83 : vector<32x24xf32> to vector<1x32x24xf32>
    tpu.vector_store %arg7[%c0_64, %c0_65, %c0_66], %86 {strides = array<i32>} : memref<1x32x24xf32, #tpu.memory_space<vmem>>, vector<1x32x24xf32>,
    return
  }
  func.func @transform_0(%arg0: i32) -> (i32, i32, i32) {
    %c0_i32 = arith.constant 0 : i32
    %c0_i32_0 = arith.constant 0 : i32
    %c0_i32_1 = arith.constant 0 : i32
    return %arg0, %c0_i32, %c0_i32_0 : i32, i32, i32
  }
  func.func @transform_1(%arg0: i32) -> (i32, i32, i32) {
    %c0_i32 = arith.constant 0 : i32
    %c0_i32_0 = arith.constant 0 : i32
    %c0_i32_1 = arith.constant 0 : i32
    %c0_i32_2 = arith.constant 0 : i32
    return %c0_i32, %c0_i32_0, %c0_i32_1 : i32, i32, i32
  }
  func.func @transform_2(%arg0: i32) -> (i32, i32) {
    %c0_i32 = arith.constant 0 : i32
    %c0_i32_0 = arith.constant 0 : i32
    %c0_i32_1 = arith.constant 0 : i32
    return %c0_i32, %c0_i32_0 : i32, i32
  }
  func.func @transform_3(%arg0: i32) -> (i32, i32) {
    %c0_i32 = arith.constant 0 : i32
    %c0_i32_0 = arith.constant 0 : i32
    %c0_i32_1 = arith.constant 0 : i32
    return %c0_i32, %c0_i32_0 : i32, i32
  }
  func.func @transform_4(%arg0: i32) -> (i32, i32) {
    %c0_i32 = arith.constant 0 : i32
    %c0_i32_0 = arith.constant 0 : i32
    %c0_i32_1 = arith.constant 0 : i32
    return %c0_i32, %c0_i32_0 : i32, i32
  }
  func.func @transform_5(%arg0: i32) -> (i32, i32) {
    %c0_i32 = arith.constant 0 : i32
    %c0_i32_0 = arith.constant 0 : i32
    %c0_i32_1 = arith.constant 0 : i32
    return %c0_i32, %c0_i32_0 : i32, i32
  }
  func.func @transform_6(%arg0: i32) -> (i32, i32, i32) {
    %c0_i32 = arith.constant 0 : i32
    %c0_i32_0 = arith.constant 0 : i32
    %c0_i32_1 = arith.constant 0 : i32
    return %arg0, %c0_i32, %c0_i32_0 : i32, i32, i32
  }
}

module attributes {stable_mosaic.version = 11 : i64} {
  func.func @_conv_bias_kernel(%arg0: i32, %arg1: memref<1x32x16xbf16, #tpu.memory_space<vmem>>, %arg2: memref<1x32x32xbf16, #tpu.memory_space<vmem>>, %arg3: memref<32x1xf32, #tpu.memory_space<vmem>>, %arg4: memref<1x32x16xf32, #tpu.memory_space<vmem>>) attributes {dimension_semantics = [#tpu.dimension_semantics<parallel>], iteration_bounds = array<i64: 2>, scalar_prefetch = 0 : i64, scratch_operands = 0 : i64, tpu.core_type = #tpu.core_type<tc>, window_params = [{transform_indices = @transform_0, window_bounds = array<i64: 1, 32, 16>}, {pipeline_mode = #tpu.pipeline_mode<synchronous>, transform_indices = @transform_1, window_bounds = array<i64: 1, 32, 32>}, {pipeline_mode = #tpu.pipeline_mode<synchronous>, transform_indices = @transform_2, window_bounds = array<i64: 32, 1>}, {transform_indices = @transform_3, window_bounds = array<i64: 1, 32, 16>}]} {
    %c0 = arith.constant 0 : index
    %c0_0 = arith.constant 0 : index
    %c0_1 = arith.constant 0 : index
    %0 = vector.load %arg2[%c0, %c0_0, %c0_1] : memref<1x32x32xbf16, #tpu.memory_space<vmem>>, vector<1x32x32xbf16>
    %1 = vector.shape_cast %0 : vector<1x32x32xbf16> to vector<32x32xbf16>
    %c0_2 = arith.constant 0 : index
    %c0_3 = arith.constant 0 : index
    %c0_4 = arith.constant 0 : index
    %2 = vector.load %arg1[%c0_2, %c0_3, %c0_4] : memref<1x32x16xbf16, #tpu.memory_space<vmem>>, vector<1x32x16xbf16>
    %3 = vector.shape_cast %2 : vector<1x32x16xbf16> to vector<32x16xbf16>
    %cst = arith.constant dense<0.000000e+00> : vector<32x16xf32>
    %4 = tpu.matmul %1, %3, %cst {dimension_numbers = #tpu.dot_dimension_numbers<[1], [0], [0], [1], [0, 0, 1, 1], [], []>} : vector<32x32xbf16>, vector<32x16xbf16>, vector<32x16xf32> -> vector<32x16xf32>
    %c0_5 = arith.constant 0 : index
    %c0_6 = arith.constant 0 : index
    %5 = vector.load %arg3[%c0_5, %c0_6] : memref<32x1xf32, #tpu.memory_space<vmem>>, vector<32x1xf32>
    %6 = vector.broadcast %5 : vector<32x1xf32> to vector<32x16xf32>
    %7 = arith.addf %4, %6 : vector<32x16xf32>
    %c0_7 = arith.constant 0 : index
    %c0_8 = arith.constant 0 : index
    %c0_9 = arith.constant 0 : index
    %8 = vector.load %arg4[%c0_7, %c0_8, %c0_9] : memref<1x32x16xf32, #tpu.memory_space<vmem>>, vector<1x32x16xf32>
    %9 = vector.shape_cast %8 : vector<1x32x16xf32> to vector<32x16xf32>
    %10 = vector.shape_cast %7 : vector<32x16xf32> to vector<1x32x16xf32>
    tpu.vector_store %arg4[%c0_7, %c0_8, %c0_9], %10 {strides = array<i32>} : memref<1x32x16xf32, #tpu.memory_space<vmem>>, vector<1x32x16xf32>,
    return
  }
  func.func @transform_0(%arg0: i32) -> (i32, i32, i32) {
    %c0_i32 = arith.constant 0 : i32
    %c0_i32_0 = arith.constant 0 : i32
    %c0_i32_1 = arith.constant 0 : i32
    return %arg0, %c0_i32, %c0_i32_0 : i32, i32, i32
  }
  func.func @transform_1(%arg0: i32) -> (i32, i32, i32) {
    %c0_i32 = arith.constant 0 : i32
    %c0_i32_0 = arith.constant 0 : i32
    %c0_i32_1 = arith.constant 0 : i32
    %c0_i32_2 = arith.constant 0 : i32
    return %c0_i32, %c0_i32_0, %c0_i32_1 : i32, i32, i32
  }
  func.func @transform_2(%arg0: i32) -> (i32, i32) {
    %c0_i32 = arith.constant 0 : i32
    %c0_i32_0 = arith.constant 0 : i32
    %c0_i32_1 = arith.constant 0 : i32
    return %c0_i32, %c0_i32_0 : i32, i32
  }
  func.func @transform_3(%arg0: i32) -> (i32, i32, i32) {
    %c0_i32 = arith.constant 0 : i32
    %c0_i32_0 = arith.constant 0 : i32
    %c0_i32_1 = arith.constant 0 : i32
    return %arg0, %c0_i32, %c0_i32_0 : i32, i32, i32
  }
}

module attributes {stable_mosaic.version = 11 : i64} {
  func.func @_conv_bias_add_kernel(%arg0: i32, %arg1: memref<1x16x64xbf16, #tpu.memory_space<vmem>>, %arg2: memref<1x32x16xbf16, #tpu.memory_space<vmem>>, %arg3: memref<32x1xf32, #tpu.memory_space<vmem>>, %arg4: memref<1x32x64xf32, #tpu.memory_space<vmem>>, %arg5: memref<1x32x64xf32, #tpu.memory_space<vmem>>) attributes {dimension_semantics = [#tpu.dimension_semantics<parallel>], iteration_bounds = array<i64: 2>, scalar_prefetch = 0 : i64, scratch_operands = 0 : i64, tpu.core_type = #tpu.core_type<tc>, window_params = [{transform_indices = @transform_0, window_bounds = array<i64: 1, 16, 64>}, {pipeline_mode = #tpu.pipeline_mode<synchronous>, transform_indices = @transform_1, window_bounds = array<i64: 1, 32, 16>}, {pipeline_mode = #tpu.pipeline_mode<synchronous>, transform_indices = @transform_2, window_bounds = array<i64: 32, 1>}, {transform_indices = @transform_3, window_bounds = array<i64: 1, 32, 64>}, {transform_indices = @transform_4, window_bounds = array<i64: 1, 32, 64>}]} {
    %c0 = arith.constant 0 : index
    %c0_0 = arith.constant 0 : index
    %c0_1 = arith.constant 0 : index
    %0 = vector.load %arg2[%c0, %c0_0, %c0_1] : memref<1x32x16xbf16, #tpu.memory_space<vmem>>, vector<1x32x16xbf16>
    %1 = vector.shape_cast %0 : vector<1x32x16xbf16> to vector<32x16xbf16>
    %c0_2 = arith.constant 0 : index
    %c0_3 = arith.constant 0 : index
    %c0_4 = arith.constant 0 : index
    %2 = vector.load %arg1[%c0_2, %c0_3, %c0_4] : memref<1x16x64xbf16, #tpu.memory_space<vmem>>, vector<1x16x64xbf16>
    %3 = vector.shape_cast %2 : vector<1x16x64xbf16> to vector<16x64xbf16>
    %cst = arith.constant dense<0.000000e+00> : vector<32x64xf32>
    %4 = tpu.matmul %1, %3, %cst {dimension_numbers = #tpu.dot_dimension_numbers<[1], [0], [0], [1], [0, 0, 1, 1], [], []>} : vector<32x16xbf16>, vector<16x64xbf16>, vector<32x64xf32> -> vector<32x64xf32>
    %c0_5 = arith.constant 0 : index
    %c0_6 = arith.constant 0 : index
    %5 = vector.load %arg3[%c0_5, %c0_6] : memref<32x1xf32, #tpu.memory_space<vmem>>, vector<32x1xf32>
    %6 = vector.broadcast %5 : vector<32x1xf32> to vector<32x64xf32>
    %7 = arith.addf %4, %6 : vector<32x64xf32>
    %c0_7 = arith.constant 0 : index
    %c0_8 = arith.constant 0 : index
    %c0_9 = arith.constant 0 : index
    %8 = vector.load %arg4[%c0_7, %c0_8, %c0_9] : memref<1x32x64xf32, #tpu.memory_space<vmem>>, vector<1x32x64xf32>
    %9 = vector.shape_cast %8 : vector<1x32x64xf32> to vector<32x64xf32>
    %10 = arith.addf %7, %9 : vector<32x64xf32>
    %c0_10 = arith.constant 0 : index
    %c0_11 = arith.constant 0 : index
    %c0_12 = arith.constant 0 : index
    %11 = vector.load %arg5[%c0_10, %c0_11, %c0_12] : memref<1x32x64xf32, #tpu.memory_space<vmem>>, vector<1x32x64xf32>
    %12 = vector.shape_cast %11 : vector<1x32x64xf32> to vector<32x64xf32>
    %13 = vector.shape_cast %10 : vector<32x64xf32> to vector<1x32x64xf32>
    tpu.vector_store %arg5[%c0_10, %c0_11, %c0_12], %13 {strides = array<i32>} : memref<1x32x64xf32, #tpu.memory_space<vmem>>, vector<1x32x64xf32>,
    return
  }
  func.func @transform_0(%arg0: i32) -> (i32, i32, i32) {
    %c0_i32 = arith.constant 0 : i32
    %c0_i32_0 = arith.constant 0 : i32
    %c0_i32_1 = arith.constant 0 : i32
    return %arg0, %c0_i32, %c0_i32_0 : i32, i32, i32
  }
  func.func @transform_1(%arg0: i32) -> (i32, i32, i32) {
    %c0_i32 = arith.constant 0 : i32
    %c0_i32_0 = arith.constant 0 : i32
    %c0_i32_1 = arith.constant 0 : i32
    %c0_i32_2 = arith.constant 0 : i32
    return %c0_i32, %c0_i32_0, %c0_i32_1 : i32, i32, i32
  }
  func.func @transform_2(%arg0: i32) -> (i32, i32) {
    %c0_i32 = arith.constant 0 : i32
    %c0_i32_0 = arith.constant 0 : i32
    %c0_i32_1 = arith.constant 0 : i32
    return %c0_i32, %c0_i32_0 : i32, i32
  }
  func.func @transform_3(%arg0: i32) -> (i32, i32, i32) {
    %c0_i32 = arith.constant 0 : i32
    %c0_i32_0 = arith.constant 0 : i32
    %c0_i32_1 = arith.constant 0 : i32
    return %arg0, %c0_i32, %c0_i32_0 : i32, i32, i32
  }
  func.func @transform_4(%arg0: i32) -> (i32, i32, i32) {
    %c0_i32 = arith.constant 0 : i32
    %c0_i32_0 = arith.constant 0 : i32
    %c0_i32_1 = arith.constant 0 : i32
    return %arg0, %c0_i32, %c0_i32_0 : i32, i32, i32
  }
}

module attributes {stable_mosaic.version = 11 : i64} {
  func.func @_conv_bias_add_kernel(%arg0: i32, %arg1: memref<1x8x256xbf16, #tpu.memory_space<vmem>>, %arg2: memref<1x32x8xbf16, #tpu.memory_space<vmem>>, %arg3: memref<32x1xf32, #tpu.memory_space<vmem>>, %arg4: memref<1x32x256xf32, #tpu.memory_space<vmem>>, %arg5: memref<1x32x256xf32, #tpu.memory_space<vmem>>) attributes {dimension_semantics = [#tpu.dimension_semantics<parallel>], iteration_bounds = array<i64: 2>, scalar_prefetch = 0 : i64, scratch_operands = 0 : i64, tpu.core_type = #tpu.core_type<tc>, window_params = [{transform_indices = @transform_0, window_bounds = array<i64: 1, 8, 256>}, {pipeline_mode = #tpu.pipeline_mode<synchronous>, transform_indices = @transform_1, window_bounds = array<i64: 1, 32, 8>}, {pipeline_mode = #tpu.pipeline_mode<synchronous>, transform_indices = @transform_2, window_bounds = array<i64: 32, 1>}, {transform_indices = @transform_3, window_bounds = array<i64: 1, 32, 256>}, {transform_indices = @transform_4, window_bounds = array<i64: 1, 32, 256>}]} {
    %c0 = arith.constant 0 : index
    %c0_0 = arith.constant 0 : index
    %c0_1 = arith.constant 0 : index
    %0 = vector.load %arg2[%c0, %c0_0, %c0_1] : memref<1x32x8xbf16, #tpu.memory_space<vmem>>, vector<1x32x8xbf16>
    %1 = vector.shape_cast %0 : vector<1x32x8xbf16> to vector<32x8xbf16>
    %c0_2 = arith.constant 0 : index
    %c0_3 = arith.constant 0 : index
    %c0_4 = arith.constant 0 : index
    %2 = vector.load %arg1[%c0_2, %c0_3, %c0_4] : memref<1x8x256xbf16, #tpu.memory_space<vmem>>, vector<1x8x256xbf16>
    %3 = vector.shape_cast %2 : vector<1x8x256xbf16> to vector<8x256xbf16>
    %cst = arith.constant dense<0.000000e+00> : vector<32x256xf32>
    %4 = tpu.matmul %1, %3, %cst {dimension_numbers = #tpu.dot_dimension_numbers<[1], [0], [0], [1], [0, 0, 1, 1], [], []>} : vector<32x8xbf16>, vector<8x256xbf16>, vector<32x256xf32> -> vector<32x256xf32>
    %c0_5 = arith.constant 0 : index
    %c0_6 = arith.constant 0 : index
    %5 = vector.load %arg3[%c0_5, %c0_6] : memref<32x1xf32, #tpu.memory_space<vmem>>, vector<32x1xf32>
    %6 = vector.broadcast %5 : vector<32x1xf32> to vector<32x256xf32>
    %7 = arith.addf %4, %6 : vector<32x256xf32>
    %c0_7 = arith.constant 0 : index
    %c0_8 = arith.constant 0 : index
    %c0_9 = arith.constant 0 : index
    %8 = vector.load %arg4[%c0_7, %c0_8, %c0_9] : memref<1x32x256xf32, #tpu.memory_space<vmem>>, vector<1x32x256xf32>
    %9 = vector.shape_cast %8 : vector<1x32x256xf32> to vector<32x256xf32>
    %10 = arith.addf %7, %9 : vector<32x256xf32>
    %c0_10 = arith.constant 0 : index
    %c0_11 = arith.constant 0 : index
    %c0_12 = arith.constant 0 : index
    %11 = vector.load %arg5[%c0_10, %c0_11, %c0_12] : memref<1x32x256xf32, #tpu.memory_space<vmem>>, vector<1x32x256xf32>
    %12 = vector.shape_cast %11 : vector<1x32x256xf32> to vector<32x256xf32>
    %13 = vector.shape_cast %10 : vector<32x256xf32> to vector<1x32x256xf32>
    tpu.vector_store %arg5[%c0_10, %c0_11, %c0_12], %13 {strides = array<i32>} : memref<1x32x256xf32, #tpu.memory_space<vmem>>, vector<1x32x256xf32>,
    return
  }
  func.func @transform_0(%arg0: i32) -> (i32, i32, i32) {
    %c0_i32 = arith.constant 0 : i32
    %c0_i32_0 = arith.constant 0 : i32
    %c0_i32_1 = arith.constant 0 : i32
    return %arg0, %c0_i32, %c0_i32_0 : i32, i32, i32
  }
  func.func @transform_1(%arg0: i32) -> (i32, i32, i32) {
    %c0_i32 = arith.constant 0 : i32
    %c0_i32_0 = arith.constant 0 : i32
    %c0_i32_1 = arith.constant 0 : i32
    %c0_i32_2 = arith.constant 0 : i32
    return %c0_i32, %c0_i32_0, %c0_i32_1 : i32, i32, i32
  }
  func.func @transform_2(%arg0: i32) -> (i32, i32) {
    %c0_i32 = arith.constant 0 : i32
    %c0_i32_0 = arith.constant 0 : i32
    %c0_i32_1 = arith.constant 0 : i32
    return %c0_i32, %c0_i32_0 : i32, i32
  }
  func.func @transform_3(%arg0: i32) -> (i32, i32, i32) {
    %c0_i32 = arith.constant 0 : i32
    %c0_i32_0 = arith.constant 0 : i32
    %c0_i32_1 = arith.constant 0 : i32
    return %arg0, %c0_i32, %c0_i32_0 : i32, i32, i32
  }
  func.func @transform_4(%arg0: i32) -> (i32, i32, i32) {
    %c0_i32 = arith.constant 0 : i32
    %c0_i32_0 = arith.constant 0 : i32
    %c0_i32_1 = arith.constant 0 : i32
    return %arg0, %c0_i32, %c0_i32_0 : i32, i32, i32
  }
}

module attributes {stable_mosaic.version = 11 : i64} {
  func.func @_conv_bias_kernel(%arg0: i32, %arg1: memref<1x32x360xbf16, #tpu.memory_space<vmem>>, %arg2: memref<9x8x32xbf16, #tpu.memory_space<vmem>>, %arg3: memref<8x1xf32, #tpu.memory_space<vmem>>, %arg4: memref<1x8x288xf32, #tpu.memory_space<vmem>>) attributes {dimension_semantics = [#tpu.dimension_semantics<parallel>], iteration_bounds = array<i64: 2>, scalar_prefetch = 0 : i64, scratch_operands = 0 : i64, tpu.core_type = #tpu.core_type<tc>, window_params = [{transform_indices = @transform_0, window_bounds = array<i64: 1, 32, 360>}, {pipeline_mode = #tpu.pipeline_mode<synchronous>, transform_indices = @transform_1, window_bounds = array<i64: 9, 8, 32>}, {pipeline_mode = #tpu.pipeline_mode<synchronous>, transform_indices = @transform_2, window_bounds = array<i64: 8, 1>}, {transform_indices = @transform_3, window_bounds = array<i64: 1, 8, 288>}]} {
    %c0 = arith.constant 0 : index
    %c0_0 = arith.constant 0 : index
    %c0_1 = arith.constant 0 : index
    %0 = vector.load %arg2[%c0, %c0_0, %c0_1] : memref<9x8x32xbf16, #tpu.memory_space<vmem>>, vector<1x8x32xbf16>
    %1 = vector.shape_cast %0 : vector<1x8x32xbf16> to vector<8x32xbf16>
    %c0_2 = arith.constant 0 : index
    %c0_3 = arith.constant 0 : index
    %c17 = arith.constant 17 : index
    %2 = vector.load %arg1[%c0_2, %c0_3, %c17] : memref<1x32x360xbf16, #tpu.memory_space<vmem>>, vector<1x32x288xbf16>
    %3 = vector.shape_cast %2 : vector<1x32x288xbf16> to vector<32x288xbf16>
    %cst = arith.constant dense<0.000000e+00> : vector<8x288xf32>
    %4 = tpu.matmul %1, %3, %cst {dimension_numbers = #tpu.dot_dimension_numbers<[1], [0], [0], [1], [0, 0, 1, 1], [], []>} : vector<8x32xbf16>, vector<32x288xbf16>, vector<8x288xf32> -> vector<8x288xf32>
    %c1 = arith.constant 1 : index
    %c0_4 = arith.constant 0 : index
    %c0_5 = arith.constant 0 : index
    %5 = vector.load %arg2[%c1, %c0_4, %c0_5] : memref<9x8x32xbf16, #tpu.memory_space<vmem>>, vector<1x8x32xbf16>
    %6 = vector.shape_cast %5 : vector<1x8x32xbf16> to vector<8x32xbf16>
    %c0_6 = arith.constant 0 : index
    %c0_7 = arith.constant 0 : index
    %c18 = arith.constant 18 : index
    %7 = vector.load %arg1[%c0_6, %c0_7, %c18] : memref<1x32x360xbf16, #tpu.memory_space<vmem>>, vector<1x32x288xbf16>
    %8 = vector.shape_cast %7 : vector<1x32x288xbf16> to vector<32x288xbf16>
    %cst_8 = arith.constant dense<0.000000e+00> : vector<8x288xf32>
    %9 = tpu.matmul %6, %8, %cst_8 {dimension_numbers = #tpu.dot_dimension_numbers<[1], [0], [0], [1], [0, 0, 1, 1], [], []>} : vector<8x32xbf16>, vector<32x288xbf16>, vector<8x288xf32> -> vector<8x288xf32>
    %10 = arith.addf %4, %9 : vector<8x288xf32>
    %c2 = arith.constant 2 : index
    %c0_9 = arith.constant 0 : index
    %c0_10 = arith.constant 0 : index
    %11 = vector.load %arg2[%c2, %c0_9, %c0_10] : memref<9x8x32xbf16, #tpu.memory_space<vmem>>, vector<1x8x32xbf16>
    %12 = vector.shape_cast %11 : vector<1x8x32xbf16> to vector<8x32xbf16>
    %c0_11 = arith.constant 0 : index
    %c0_12 = arith.constant 0 : index
    %c19 = arith.constant 19 : index
    %13 = vector.load %arg1[%c0_11, %c0_12, %c19] : memref<1x32x360xbf16, #tpu.memory_space<vmem>>, vector<1x32x288xbf16>
    %14 = vector.shape_cast %13 : vector<1x32x288xbf16> to vector<32x288xbf16>
    %cst_13 = arith.constant dense<0.000000e+00> : vector<8x288xf32>
    %15 = tpu.matmul %12, %14, %cst_13 {dimension_numbers = #tpu.dot_dimension_numbers<[1], [0], [0], [1], [0, 0, 1, 1], [], []>} : vector<8x32xbf16>, vector<32x288xbf16>, vector<8x288xf32> -> vector<8x288xf32>
    %16 = arith.addf %10, %15 : vector<8x288xf32>
    %c3 = arith.constant 3 : index
    %c0_14 = arith.constant 0 : index
    %c0_15 = arith.constant 0 : index
    %17 = vector.load %arg2[%c3, %c0_14, %c0_15] : memref<9x8x32xbf16, #tpu.memory_space<vmem>>, vector<1x8x32xbf16>
    %18 = vector.shape_cast %17 : vector<1x8x32xbf16> to vector<8x32xbf16>
    %c0_16 = arith.constant 0 : index
    %c0_17 = arith.constant 0 : index
    %c35 = arith.constant 35 : index
    %19 = vector.load %arg1[%c0_16, %c0_17, %c35] : memref<1x32x360xbf16, #tpu.memory_space<vmem>>, vector<1x32x288xbf16>
    %20 = vector.shape_cast %19 : vector<1x32x288xbf16> to vector<32x288xbf16>
    %cst_18 = arith.constant dense<0.000000e+00> : vector<8x288xf32>
    %21 = tpu.matmul %18, %20, %cst_18 {dimension_numbers = #tpu.dot_dimension_numbers<[1], [0], [0], [1], [0, 0, 1, 1], [], []>} : vector<8x32xbf16>, vector<32x288xbf16>, vector<8x288xf32> -> vector<8x288xf32>
    %22 = arith.addf %16, %21 : vector<8x288xf32>
    %c4 = arith.constant 4 : index
    %c0_19 = arith.constant 0 : index
    %c0_20 = arith.constant 0 : index
    %23 = vector.load %arg2[%c4, %c0_19, %c0_20] : memref<9x8x32xbf16, #tpu.memory_space<vmem>>, vector<1x8x32xbf16>
    %24 = vector.shape_cast %23 : vector<1x8x32xbf16> to vector<8x32xbf16>
    %c0_21 = arith.constant 0 : index
    %c0_22 = arith.constant 0 : index
    %c36 = arith.constant 36 : index
    %25 = vector.load %arg1[%c0_21, %c0_22, %c36] : memref<1x32x360xbf16, #tpu.memory_space<vmem>>, vector<1x32x288xbf16>
    %26 = vector.shape_cast %25 : vector<1x32x288xbf16> to vector<32x288xbf16>
    %cst_23 = arith.constant dense<0.000000e+00> : vector<8x288xf32>
    %27 = tpu.matmul %24, %26, %cst_23 {dimension_numbers = #tpu.dot_dimension_numbers<[1], [0], [0], [1], [0, 0, 1, 1], [], []>} : vector<8x32xbf16>, vector<32x288xbf16>, vector<8x288xf32> -> vector<8x288xf32>
    %28 = arith.addf %22, %27 : vector<8x288xf32>
    %c5 = arith.constant 5 : index
    %c0_24 = arith.constant 0 : index
    %c0_25 = arith.constant 0 : index
    %29 = vector.load %arg2[%c5, %c0_24, %c0_25] : memref<9x8x32xbf16, #tpu.memory_space<vmem>>, vector<1x8x32xbf16>
    %30 = vector.shape_cast %29 : vector<1x8x32xbf16> to vector<8x32xbf16>
    %c0_26 = arith.constant 0 : index
    %c0_27 = arith.constant 0 : index
    %c37 = arith.constant 37 : index
    %31 = vector.load %arg1[%c0_26, %c0_27, %c37] : memref<1x32x360xbf16, #tpu.memory_space<vmem>>, vector<1x32x288xbf16>
    %32 = vector.shape_cast %31 : vector<1x32x288xbf16> to vector<32x288xbf16>
    %cst_28 = arith.constant dense<0.000000e+00> : vector<8x288xf32>
    %33 = tpu.matmul %30, %32, %cst_28 {dimension_numbers = #tpu.dot_dimension_numbers<[1], [0], [0], [1], [0, 0, 1, 1], [], []>} : vector<8x32xbf16>, vector<32x288xbf16>, vector<8x288xf32> -> vector<8x288xf32>
    %34 = arith.addf %28, %33 : vector<8x288xf32>
    %c6 = arith.constant 6 : index
    %c0_29 = arith.constant 0 : index
    %c0_30 = arith.constant 0 : index
    %35 = vector.load %arg2[%c6, %c0_29, %c0_30] : memref<9x8x32xbf16, #tpu.memory_space<vmem>>, vector<1x8x32xbf16>
    %36 = vector.shape_cast %35 : vector<1x8x32xbf16> to vector<8x32xbf16>
    %c0_31 = arith.constant 0 : index
    %c0_32 = arith.constant 0 : index
    %c53 = arith.constant 53 : index
    %37 = vector.load %arg1[%c0_31, %c0_32, %c53] : memref<1x32x360xbf16, #tpu.memory_space<vmem>>, vector<1x32x288xbf16>
    %38 = vector.shape_cast %37 : vector<1x32x288xbf16> to vector<32x288xbf16>
    %cst_33 = arith.constant dense<0.000000e+00> : vector<8x288xf32>
    %39 = tpu.matmul %36, %38, %cst_33 {dimension_numbers = #tpu.dot_dimension_numbers<[1], [0], [0], [1], [0, 0, 1, 1], [], []>} : vector<8x32xbf16>, vector<32x288xbf16>, vector<8x288xf32> -> vector<8x288xf32>
    %40 = arith.addf %34, %39 : vector<8x288xf32>
    %c7 = arith.constant 7 : index
    %c0_34 = arith.constant 0 : index
    %c0_35 = arith.constant 0 : index
    %41 = vector.load %arg2[%c7, %c0_34, %c0_35] : memref<9x8x32xbf16, #tpu.memory_space<vmem>>, vector<1x8x32xbf16>
    %42 = vector.shape_cast %41 : vector<1x8x32xbf16> to vector<8x32xbf16>
    %c0_36 = arith.constant 0 : index
    %c0_37 = arith.constant 0 : index
    %c54 = arith.constant 54 : index
    %43 = vector.load %arg1[%c0_36, %c0_37, %c54] : memref<1x32x360xbf16, #tpu.memory_space<vmem>>, vector<1x32x288xbf16>
    %44 = vector.shape_cast %43 : vector<1x32x288xbf16> to vector<32x288xbf16>
    %cst_38 = arith.constant dense<0.000000e+00> : vector<8x288xf32>
    %45 = tpu.matmul %42, %44, %cst_38 {dimension_numbers = #tpu.dot_dimension_numbers<[1], [0], [0], [1], [0, 0, 1, 1], [], []>} : vector<8x32xbf16>, vector<32x288xbf16>, vector<8x288xf32> -> vector<8x288xf32>
    %46 = arith.addf %40, %45 : vector<8x288xf32>
    %c8 = arith.constant 8 : index
    %c0_39 = arith.constant 0 : index
    %c0_40 = arith.constant 0 : index
    %47 = vector.load %arg2[%c8, %c0_39, %c0_40] : memref<9x8x32xbf16, #tpu.memory_space<vmem>>, vector<1x8x32xbf16>
    %48 = vector.shape_cast %47 : vector<1x8x32xbf16> to vector<8x32xbf16>
    %c0_41 = arith.constant 0 : index
    %c0_42 = arith.constant 0 : index
    %c55 = arith.constant 55 : index
    %49 = vector.load %arg1[%c0_41, %c0_42, %c55] : memref<1x32x360xbf16, #tpu.memory_space<vmem>>, vector<1x32x288xbf16>
    %50 = vector.shape_cast %49 : vector<1x32x288xbf16> to vector<32x288xbf16>
    %cst_43 = arith.constant dense<0.000000e+00> : vector<8x288xf32>
    %51 = tpu.matmul %48, %50, %cst_43 {dimension_numbers = #tpu.dot_dimension_numbers<[1], [0], [0], [1], [0, 0, 1, 1], [], []>} : vector<8x32xbf16>, vector<32x288xbf16>, vector<8x288xf32> -> vector<8x288xf32>
    %52 = arith.addf %46, %51 : vector<8x288xf32>
    %c0_44 = arith.constant 0 : index
    %c0_45 = arith.constant 0 : index
    %53 = vector.load %arg3[%c0_44, %c0_45] : memref<8x1xf32, #tpu.memory_space<vmem>>, vector<8x1xf32>
    %54 = vector.broadcast %53 : vector<8x1xf32> to vector<8x288xf32>
    %55 = arith.addf %52, %54 : vector<8x288xf32>
    %c0_46 = arith.constant 0 : index
    %c0_47 = arith.constant 0 : index
    %c0_48 = arith.constant 0 : index
    %56 = vector.load %arg4[%c0_46, %c0_47, %c0_48] : memref<1x8x288xf32, #tpu.memory_space<vmem>>, vector<1x8x288xf32>
    %57 = vector.shape_cast %56 : vector<1x8x288xf32> to vector<8x288xf32>
    %58 = vector.shape_cast %55 : vector<8x288xf32> to vector<1x8x288xf32>
    tpu.vector_store %arg4[%c0_46, %c0_47, %c0_48], %58 {strides = array<i32>} : memref<1x8x288xf32, #tpu.memory_space<vmem>>, vector<1x8x288xf32>,
    return
  }
  func.func @transform_0(%arg0: i32) -> (i32, i32, i32) {
    %c0_i32 = arith.constant 0 : i32
    %c0_i32_0 = arith.constant 0 : i32
    %c0_i32_1 = arith.constant 0 : i32
    return %arg0, %c0_i32, %c0_i32_0 : i32, i32, i32
  }
  func.func @transform_1(%arg0: i32) -> (i32, i32, i32) {
    %c0_i32 = arith.constant 0 : i32
    %c0_i32_0 = arith.constant 0 : i32
    %c0_i32_1 = arith.constant 0 : i32
    %c0_i32_2 = arith.constant 0 : i32
    return %c0_i32, %c0_i32_0, %c0_i32_1 : i32, i32, i32
  }
  func.func @transform_2(%arg0: i32) -> (i32, i32) {
    %c0_i32 = arith.constant 0 : i32
    %c0_i32_0 = arith.constant 0 : i32
    %c0_i32_1 = arith.constant 0 : i32
    return %c0_i32, %c0_i32_0 : i32, i32
  }
  func.func @transform_3(%arg0: i32) -> (i32, i32, i32) {
    %c0_i32 = arith.constant 0 : i32
    %c0_i32_0 = arith.constant 0 : i32
    %c0_i32_1 = arith.constant 0 : i32
    return %arg0, %c0_i32, %c0_i32_0 : i32, i32, i32
  }
}

module attributes {stable_mosaic.version = 11 : i64} {
  func.func @_conv_bias_kernel(%arg0: i32, %arg1: memref<1x32x120xbf16, #tpu.memory_space<vmem>>, %arg2: memref<9x16x32xbf16, #tpu.memory_space<vmem>>, %arg3: memref<16x1xf32, #tpu.memory_space<vmem>>, %arg4: memref<1x16x80xf32, #tpu.memory_space<vmem>>) attributes {dimension_semantics = [#tpu.dimension_semantics<parallel>], iteration_bounds = array<i64: 2>, scalar_prefetch = 0 : i64, scratch_operands = 0 : i64, tpu.core_type = #tpu.core_type<tc>, window_params = [{transform_indices = @transform_0, window_bounds = array<i64: 1, 32, 120>}, {pipeline_mode = #tpu.pipeline_mode<synchronous>, transform_indices = @transform_1, window_bounds = array<i64: 9, 16, 32>}, {pipeline_mode = #tpu.pipeline_mode<synchronous>, transform_indices = @transform_2, window_bounds = array<i64: 16, 1>}, {transform_indices = @transform_3, window_bounds = array<i64: 1, 16, 80>}]} {
    %c0 = arith.constant 0 : index
    %c0_0 = arith.constant 0 : index
    %c0_1 = arith.constant 0 : index
    %0 = vector.load %arg2[%c0, %c0_0, %c0_1] : memref<9x16x32xbf16, #tpu.memory_space<vmem>>, vector<1x16x32xbf16>
    %1 = vector.shape_cast %0 : vector<1x16x32xbf16> to vector<16x32xbf16>
    %c0_2 = arith.constant 0 : index
    %c0_3 = arith.constant 0 : index
    %c9 = arith.constant 9 : index
    %2 = vector.load %arg1[%c0_2, %c0_3, %c9] : memref<1x32x120xbf16, #tpu.memory_space<vmem>>, vector<1x32x80xbf16>
    %3 = vector.shape_cast %2 : vector<1x32x80xbf16> to vector<32x80xbf16>
    %cst = arith.constant dense<0.000000e+00> : vector<16x80xf32>
    %4 = tpu.matmul %1, %3, %cst {dimension_numbers = #tpu.dot_dimension_numbers<[1], [0], [0], [1], [0, 0, 1, 1], [], []>} : vector<16x32xbf16>, vector<32x80xbf16>, vector<16x80xf32> -> vector<16x80xf32>
    %c1 = arith.constant 1 : index
    %c0_4 = arith.constant 0 : index
    %c0_5 = arith.constant 0 : index
    %5 = vector.load %arg2[%c1, %c0_4, %c0_5] : memref<9x16x32xbf16, #tpu.memory_space<vmem>>, vector<1x16x32xbf16>
    %6 = vector.shape_cast %5 : vector<1x16x32xbf16> to vector<16x32xbf16>
    %c0_6 = arith.constant 0 : index
    %c0_7 = arith.constant 0 : index
    %c10 = arith.constant 10 : index
    %7 = vector.load %arg1[%c0_6, %c0_7, %c10] : memref<1x32x120xbf16, #tpu.memory_space<vmem>>, vector<1x32x80xbf16>
    %8 = vector.shape_cast %7 : vector<1x32x80xbf16> to vector<32x80xbf16>
    %cst_8 = arith.constant dense<0.000000e+00> : vector<16x80xf32>
    %9 = tpu.matmul %6, %8, %cst_8 {dimension_numbers = #tpu.dot_dimension_numbers<[1], [0], [0], [1], [0, 0, 1, 1], [], []>} : vector<16x32xbf16>, vector<32x80xbf16>, vector<16x80xf32> -> vector<16x80xf32>
    %10 = arith.addf %4, %9 : vector<16x80xf32>
    %c2 = arith.constant 2 : index
    %c0_9 = arith.constant 0 : index
    %c0_10 = arith.constant 0 : index
    %11 = vector.load %arg2[%c2, %c0_9, %c0_10] : memref<9x16x32xbf16, #tpu.memory_space<vmem>>, vector<1x16x32xbf16>
    %12 = vector.shape_cast %11 : vector<1x16x32xbf16> to vector<16x32xbf16>
    %c0_11 = arith.constant 0 : index
    %c0_12 = arith.constant 0 : index
    %c11 = arith.constant 11 : index
    %13 = vector.load %arg1[%c0_11, %c0_12, %c11] : memref<1x32x120xbf16, #tpu.memory_space<vmem>>, vector<1x32x80xbf16>
    %14 = vector.shape_cast %13 : vector<1x32x80xbf16> to vector<32x80xbf16>
    %cst_13 = arith.constant dense<0.000000e+00> : vector<16x80xf32>
    %15 = tpu.matmul %12, %14, %cst_13 {dimension_numbers = #tpu.dot_dimension_numbers<[1], [0], [0], [1], [0, 0, 1, 1], [], []>} : vector<16x32xbf16>, vector<32x80xbf16>, vector<16x80xf32> -> vector<16x80xf32>
    %16 = arith.addf %10, %15 : vector<16x80xf32>
    %c3 = arith.constant 3 : index
    %c0_14 = arith.constant 0 : index
    %c0_15 = arith.constant 0 : index
    %17 = vector.load %arg2[%c3, %c0_14, %c0_15] : memref<9x16x32xbf16, #tpu.memory_space<vmem>>, vector<1x16x32xbf16>
    %18 = vector.shape_cast %17 : vector<1x16x32xbf16> to vector<16x32xbf16>
    %c0_16 = arith.constant 0 : index
    %c0_17 = arith.constant 0 : index
    %c19 = arith.constant 19 : index
    %19 = vector.load %arg1[%c0_16, %c0_17, %c19] : memref<1x32x120xbf16, #tpu.memory_space<vmem>>, vector<1x32x80xbf16>
    %20 = vector.shape_cast %19 : vector<1x32x80xbf16> to vector<32x80xbf16>
    %cst_18 = arith.constant dense<0.000000e+00> : vector<16x80xf32>
    %21 = tpu.matmul %18, %20, %cst_18 {dimension_numbers = #tpu.dot_dimension_numbers<[1], [0], [0], [1], [0, 0, 1, 1], [], []>} : vector<16x32xbf16>, vector<32x80xbf16>, vector<16x80xf32> -> vector<16x80xf32>
    %22 = arith.addf %16, %21 : vector<16x80xf32>
    %c4 = arith.constant 4 : index
    %c0_19 = arith.constant 0 : index
    %c0_20 = arith.constant 0 : index
    %23 = vector.load %arg2[%c4, %c0_19, %c0_20] : memref<9x16x32xbf16, #tpu.memory_space<vmem>>, vector<1x16x32xbf16>
    %24 = vector.shape_cast %23 : vector<1x16x32xbf16> to vector<16x32xbf16>
    %c0_21 = arith.constant 0 : index
    %c0_22 = arith.constant 0 : index
    %c20 = arith.constant 20 : index
    %25 = vector.load %arg1[%c0_21, %c0_22, %c20] : memref<1x32x120xbf16, #tpu.memory_space<vmem>>, vector<1x32x80xbf16>
    %26 = vector.shape_cast %25 : vector<1x32x80xbf16> to vector<32x80xbf16>
    %cst_23 = arith.constant dense<0.000000e+00> : vector<16x80xf32>
    %27 = tpu.matmul %24, %26, %cst_23 {dimension_numbers = #tpu.dot_dimension_numbers<[1], [0], [0], [1], [0, 0, 1, 1], [], []>} : vector<16x32xbf16>, vector<32x80xbf16>, vector<16x80xf32> -> vector<16x80xf32>
    %28 = arith.addf %22, %27 : vector<16x80xf32>
    %c5 = arith.constant 5 : index
    %c0_24 = arith.constant 0 : index
    %c0_25 = arith.constant 0 : index
    %29 = vector.load %arg2[%c5, %c0_24, %c0_25] : memref<9x16x32xbf16, #tpu.memory_space<vmem>>, vector<1x16x32xbf16>
    %30 = vector.shape_cast %29 : vector<1x16x32xbf16> to vector<16x32xbf16>
    %c0_26 = arith.constant 0 : index
    %c0_27 = arith.constant 0 : index
    %c21 = arith.constant 21 : index
    %31 = vector.load %arg1[%c0_26, %c0_27, %c21] : memref<1x32x120xbf16, #tpu.memory_space<vmem>>, vector<1x32x80xbf16>
    %32 = vector.shape_cast %31 : vector<1x32x80xbf16> to vector<32x80xbf16>
    %cst_28 = arith.constant dense<0.000000e+00> : vector<16x80xf32>
    %33 = tpu.matmul %30, %32, %cst_28 {dimension_numbers = #tpu.dot_dimension_numbers<[1], [0], [0], [1], [0, 0, 1, 1], [], []>} : vector<16x32xbf16>, vector<32x80xbf16>, vector<16x80xf32> -> vector<16x80xf32>
    %34 = arith.addf %28, %33 : vector<16x80xf32>
    %c6 = arith.constant 6 : index
    %c0_29 = arith.constant 0 : index
    %c0_30 = arith.constant 0 : index
    %35 = vector.load %arg2[%c6, %c0_29, %c0_30] : memref<9x16x32xbf16, #tpu.memory_space<vmem>>, vector<1x16x32xbf16>
    %36 = vector.shape_cast %35 : vector<1x16x32xbf16> to vector<16x32xbf16>
    %c0_31 = arith.constant 0 : index
    %c0_32 = arith.constant 0 : index
    %c29 = arith.constant 29 : index
    %37 = vector.load %arg1[%c0_31, %c0_32, %c29] : memref<1x32x120xbf16, #tpu.memory_space<vmem>>, vector<1x32x80xbf16>
    %38 = vector.shape_cast %37 : vector<1x32x80xbf16> to vector<32x80xbf16>
    %cst_33 = arith.constant dense<0.000000e+00> : vector<16x80xf32>
    %39 = tpu.matmul %36, %38, %cst_33 {dimension_numbers = #tpu.dot_dimension_numbers<[1], [0], [0], [1], [0, 0, 1, 1], [], []>} : vector<16x32xbf16>, vector<32x80xbf16>, vector<16x80xf32> -> vector<16x80xf32>
    %40 = arith.addf %34, %39 : vector<16x80xf32>
    %c7 = arith.constant 7 : index
    %c0_34 = arith.constant 0 : index
    %c0_35 = arith.constant 0 : index
    %41 = vector.load %arg2[%c7, %c0_34, %c0_35] : memref<9x16x32xbf16, #tpu.memory_space<vmem>>, vector<1x16x32xbf16>
    %42 = vector.shape_cast %41 : vector<1x16x32xbf16> to vector<16x32xbf16>
    %c0_36 = arith.constant 0 : index
    %c0_37 = arith.constant 0 : index
    %c30 = arith.constant 30 : index
    %43 = vector.load %arg1[%c0_36, %c0_37, %c30] : memref<1x32x120xbf16, #tpu.memory_space<vmem>>, vector<1x32x80xbf16>
    %44 = vector.shape_cast %43 : vector<1x32x80xbf16> to vector<32x80xbf16>
    %cst_38 = arith.constant dense<0.000000e+00> : vector<16x80xf32>
    %45 = tpu.matmul %42, %44, %cst_38 {dimension_numbers = #tpu.dot_dimension_numbers<[1], [0], [0], [1], [0, 0, 1, 1], [], []>} : vector<16x32xbf16>, vector<32x80xbf16>, vector<16x80xf32> -> vector<16x80xf32>
    %46 = arith.addf %40, %45 : vector<16x80xf32>
    %c8 = arith.constant 8 : index
    %c0_39 = arith.constant 0 : index
    %c0_40 = arith.constant 0 : index
    %47 = vector.load %arg2[%c8, %c0_39, %c0_40] : memref<9x16x32xbf16, #tpu.memory_space<vmem>>, vector<1x16x32xbf16>
    %48 = vector.shape_cast %47 : vector<1x16x32xbf16> to vector<16x32xbf16>
    %c0_41 = arith.constant 0 : index
    %c0_42 = arith.constant 0 : index
    %c31 = arith.constant 31 : index
    %49 = vector.load %arg1[%c0_41, %c0_42, %c31] : memref<1x32x120xbf16, #tpu.memory_space<vmem>>, vector<1x32x80xbf16>
    %50 = vector.shape_cast %49 : vector<1x32x80xbf16> to vector<32x80xbf16>
    %cst_43 = arith.constant dense<0.000000e+00> : vector<16x80xf32>
    %51 = tpu.matmul %48, %50, %cst_43 {dimension_numbers = #tpu.dot_dimension_numbers<[1], [0], [0], [1], [0, 0, 1, 1], [], []>} : vector<16x32xbf16>, vector<32x80xbf16>, vector<16x80xf32> -> vector<16x80xf32>
    %52 = arith.addf %46, %51 : vector<16x80xf32>
    %c0_44 = arith.constant 0 : index
    %c0_45 = arith.constant 0 : index
    %53 = vector.load %arg3[%c0_44, %c0_45] : memref<16x1xf32, #tpu.memory_space<vmem>>, vector<16x1xf32>
    %54 = vector.broadcast %53 : vector<16x1xf32> to vector<16x80xf32>
    %55 = arith.addf %52, %54 : vector<16x80xf32>
    %c0_46 = arith.constant 0 : index
    %c0_47 = arith.constant 0 : index
    %c0_48 = arith.constant 0 : index
    %56 = vector.load %arg4[%c0_46, %c0_47, %c0_48] : memref<1x16x80xf32, #tpu.memory_space<vmem>>, vector<1x16x80xf32>
    %57 = vector.shape_cast %56 : vector<1x16x80xf32> to vector<16x80xf32>
    %58 = vector.shape_cast %55 : vector<16x80xf32> to vector<1x16x80xf32>
    tpu.vector_store %arg4[%c0_46, %c0_47, %c0_48], %58 {strides = array<i32>} : memref<1x16x80xf32, #tpu.memory_space<vmem>>, vector<1x16x80xf32>,
    return
  }
  func.func @transform_0(%arg0: i32) -> (i32, i32, i32) {
    %c0_i32 = arith.constant 0 : i32
    %c0_i32_0 = arith.constant 0 : i32
    %c0_i32_1 = arith.constant 0 : i32
    return %arg0, %c0_i32, %c0_i32_0 : i32, i32, i32
  }
  func.func @transform_1(%arg0: i32) -> (i32, i32, i32) {
    %c0_i32 = arith.constant 0 : i32
    %c0_i32_0 = arith.constant 0 : i32
    %c0_i32_1 = arith.constant 0 : i32
    %c0_i32_2 = arith.constant 0 : i32
    return %c0_i32, %c0_i32_0, %c0_i32_1 : i32, i32, i32
  }
  func.func @transform_2(%arg0: i32) -> (i32, i32) {
    %c0_i32 = arith.constant 0 : i32
    %c0_i32_0 = arith.constant 0 : i32
    %c0_i32_1 = arith.constant 0 : i32
    return %c0_i32, %c0_i32_0 : i32, i32
  }
  func.func @transform_3(%arg0: i32) -> (i32, i32, i32) {
    %c0_i32 = arith.constant 0 : i32
    %c0_i32_0 = arith.constant 0 : i32
    %c0_i32_1 = arith.constant 0 : i32
    return %arg0, %c0_i32, %c0_i32_0 : i32, i32, i32
  }
}

</mosaic_0001>

<bundles_post_ra>
// kernel: tile.33
= control target key start
LH: loop header
LB: loop body
LE: loop exit
PB: predicated region body
PF: predicated region fallthrough
CT: control target
= control target key end

     0   :  { %s28_s0 = inlined_call_operand.vmem [shape: f32[18], index: 0, kind: input, shape index: {}]   ;;  %s29_s1 = inlined_call_operand.vmem [shape: f32[16,18], index: 1, kind: output, shape index: {}]  }
   0x1   :  { %v4_v0 = vld [vmem:[%s28_s0] ss:$0 sm:$0xff] }
   0x2   :  { %5 = vst [vmem:[%s29_s1] sm:$0xff] %v4_v0  ;;  %8 = vst [vmem:[%s29_s1 + $0x8] sm:$0xff] %v4_v0 }

// kernel: tile.34
= control target key start
LH: loop header
LB: loop body
LE: loop exit
PB: predicated region body
PF: predicated region fallthrough
CT: control target
= control target key end

     0   :  { %vm9_vm0 = vcmask 15360   ;;  %vm22_vm1 = vcmask 31744   ;;  %s169_s14 = smov 126   ;;  %s170_s15 = smov 108   ;;  %vm3_vm2 = vcmask 146432   ;;  %vm13_vm3 = vcmask 130048   ;;  %s257_s0 = inlined_call_operand.vmem [shape: f32[16,18], index: 0, kind: input, shape index: {}]   ;;  %s258_s1 = inlined_call_operand.vmem [shape: f32[1,288], index: 1, kind: output, shape index: {}]  }
   0x1   :  { %v135_v0 = vld [vmem:[%s257_s0 + $0x7] sm:$0x1]   ;;  %v139_v3 = vld [vmem:[%s257_s0 + $0x6] sm:$0x1]   ;;  %v137_v4 = vld [vmem:[%s257_s0 + $0xe] sm:$0x1]  }
   0x2   :  { %v136_v1 = vld [vmem:[%s257_s0 + $0x7] sm:$0x1]   ;;  %34 = vrot.lane.b32.xlu1 %v139_v3, %s170_s15  ;;  %v138_v5 = vld [vmem:[%s257_s0 + $0xe] sm:$0x1]   ;;  %v140_v7 = vld [vmem:[%s257_s0 + $0xd] sm:$0x1]  }
   0x3   :  { %v10_v2 = vsel %vm9_vm0, %v136_v1, %v135_v0  ;;  %v23_v6 = vsel %vm22_vm1, %v138_v5, %v137_v4  ;;  %s171_s20 = smov 124   ;;  %s172_s21 = smov 106   ;;  %v141_v8 = vld [vmem:[%s257_s0 + $0x5] sm:$0x1]   ;;  %v142_v9 = vld [vmem:[%s257_s0 + $0xc] sm:$0x1]  }
   0x4   :  { %11 = vrot.lane.b32.xlu0 %v10_v2, %s169_s14  ;;  %v2_v10 = vld [vmem:[%s257_s0] sm:$0x1]   ;;  %s173_s28 = smov 90   ;;  %s174_s29 = smov 88   ;;  %v143_v11 = vld [vmem:[%s257_s0 + $0x4] sm:$0x1]  }
   0x5   :  { %4 = vst.msk [vmem:[#allocation0] sm:$0x1] %vm3_vm2, %v2_v10   ;;  %v144_v12 = vld [vmem:[%s257_s0 + $0xb] sm:$0x1]   ;;  %s175_s5 = smov 72   ;;  %s176_s6 = smov 70  }
   0x6   :  { %40 = vrot.lane.b32.xlu1 %v140_v7, %s172_s21  ;;  %v145_v13 = vld [vmem:[%s257_s0 + $0x3] sm:$0x1]   ;;  %v146_v14 = vld [vmem:[%s257_s0 + $0xa] sm:$0x1]   ;;  %s177_s11 = smov 54   ;;  %s178_s12 = smov 52  }
   0x7   :  { %v147_v15 = vld [vmem:[%s257_s0 + $0x2] sm:$0x1]   ;;  %v148_v16 = vld [vmem:[%s257_s0 + $0x9] sm:$0x1]   ;;  %s179_s17 = smov 36   ;;  %s180_s18 = smov 34  }
   0x8   :  { %24 = vrot.lane.b32.xlu0 %v23_v6, %s171_s20  ;;  %v149_v17 = vld [vmem:[%s257_s0 + $0x1] sm:$0x1]   ;;  %v150_v18 = vld [vmem:[%s257_s0 + $0x8] sm:$0x1]   ;;  %s181_s23 = smov 18   ;;  %s182_s24 = smov 16  }
   0x9   :  { %v151_v19 = vld [vmem:[%s257_s0 + $0xf] sm:$0x1]   ;;  %s183_s0 = smov 14   ;;  %vm16_vm4 = vcmask 1048560   ;;  %vm36_vm5 = vcmask 1032032   ;;  %vm26_vm6 = vcmask 113664  }
   0xa   :  { %53 = vrot.lane.b32.xlu1 %v142_v9, %s174_s29  ;;  %vm29_vm7 = vcmask 1048544   ;;  %vm42_vm8 = vcmask 1015632   ;;  %vm49_vm9 = vcmask 884432   ;;  %vm55_vm10 = vcmask 868032  }
   0xb   :  { %vm62_vm11 = vcmask 736832   ;;  %vm68_vm12 = vcmask 720432   ;;  %vm75_vm13 = vcmask 589232   ;;  %vm81_vm14 = vcmask 572832  }
   0xc   :  { %47 = vrot.lane.b32.xlu0 %v141_v8, %s173_s28  ;;  %vm88_vm15 = vcmask 441632   ;;  %vm94_vm0 = vcmask 425232   ;;  %vm101_vm1 = vcmask 294032   ;;  %vm107_vm2 = vcmask 277632  }
   0xe   :  { %66 = vrot.lane.b32.xlu1 %v144_v12, %s176_s6 }
  0x10   :  { %60 = vrot.lane.b32.xlu0 %v143_v11, %s175_s5 }
  0x12   :  { %79 = vrot.lane.b32.xlu1 %v146_v14, %s178_s12 }
  0x14   :  { %73 = vrot.lane.b32.xlu0 %v145_v13, %s177_s11 }
  0x16   :  { %92 = vrot.lane.b32.xlu1 %v148_v16, %s180_s18 }
  0x18   :  { %86 = vrot.lane.b32.xlu0 %v147_v15, %s179_s17 }
  0x1a   :  { %105 = vrot.lane.b32.xlu1 %v150_v18, %s182_s24 }
  0x1c   :  { %99 = vrot.lane.b32.xlu0 %v149_v17, %s181_s23 }
  0x20   :  { %112 = vrot.lane.b32.xlu0 %v151_v19, %s183_s0 }
  0x74   :  { %v35_v21 = vpop.permute.xlu1 %34  }
  0x76   :  { %v12_v20 = vpop.permute.xlu0 %11  }
  0x77   :  { %15 = vst.msk [vmem:[#allocation0 + $0x8] sm:$0x1] %vm13_vm3, %v12_v20   ;;  %vm114_vm3 = vcmask 261232  }
  0x78   :  { %17 = vst.msk [vmem:[#allocation0] sm:$0x1] %vm16_vm4, %v12_v20   ;;  %v41_v23 = vpop.permute.xlu1 %40  }
  0x79   :  { %37 = vst.msk [vmem:[#allocation0] sm:$0x1] %vm36_vm5, %v35_v21  }
  0x7a   :  { %v25_v22 = vpop.permute.xlu0 %24  }
  0x7b   :  { %28 = vst.msk [vmem:[#allocation0 + $0x10] sm:$0x1] %vm26_vm6, %v25_v22  }
  0x7c   :  { %31 = vst.msk [vmem:[#allocation0 + $0x8] sm:$0x1] %vm29_vm7, %v25_v22   ;;  %v54_v25 = vpop.permute.xlu1 %53  }
  0x7d   :  { %44 = vst.msk [vmem:[#allocation0 + $0x8] sm:$0x1] %vm42_vm8, %v41_v23  }
  0x7e   :  { %v48_v24 = vpop.permute.xlu0 %47   ;;  %57 = vst.msk [vmem:[#allocation0 + $0x8] sm:$0x1] %vm55_vm10, %v54_v25  }
  0x7f   :  { %50 = vst.msk [vmem:[#allocation0] sm:$0x1] %vm49_vm9, %v48_v24  }
  0x80   :  { %v67_v27 = vpop.permute.xlu1 %66  }
  0x81   :  { %70 = vst.msk [vmem:[#allocation0 + $0x8] sm:$0x1] %vm68_vm12, %v67_v27  }
  0x82   :  { %v61_v26 = vpop.permute.xlu0 %60  }
  0x83   :  { %63 = vst.msk [vmem:[#allocation0] sm:$0x1] %vm62_vm11, %v61_v26  }
  0x84   :  { %v80_v29 = vpop.permute.xlu1 %79  }
  0x85   :  { %83 = vst.msk [vmem:[#allocation0 + $0x8] sm:$0x1] %vm81_vm14, %v80_v29  }
  0x86   :  { %v74_v28 = vpop.permute.xlu0 %73  }
  0x87   :  { %76 = vst.msk [vmem:[#allocation0] sm:$0x1] %vm75_vm13, %v74_v28  }
  0x88   :  { %v93_v31 = vpop.permute.xlu1 %92  }
  0x89   :  { %96 = vst.msk [vmem:[#allocation0 + $0x8] sm:$0x1] %vm94_vm0, %v93_v31  }
  0x8a   :  { %v87_v30 = vpop.permute.xlu0 %86  }
  0x8b   :  { %89 = vst.msk [vmem:[#allocation0] sm:$0x1] %vm88_vm15, %v87_v30  }
  0x8c   :  { %v106_v33 = vpop.permute.xlu1 %105  }
  0x8d   :  { %109 = vst.msk [vmem:[#allocation0 + $0x8] sm:$0x1] %vm107_vm2, %v106_v33  }
  0x8e   :  { %v100_v32 = vpop.permute.xlu0 %99  }
  0x8f   :  { %102 = vst.msk [vmem:[#allocation0] sm:$0x1] %vm101_vm1, %v100_v32  }
  0x92   :  { %v113_v34 = vpop.permute.xlu0 %112  }
  0x93   :  { %116 = vst.msk [vmem:[#allocation0 + $0x10] sm:$0x1] %vm114_vm3, %v113_v34  }
  0x94   :  { %v124_v36 = vld [vmem:[#allocation0 + $0x8] sm:$0x1] }
  0x95   :  { %152 = vst [vmem:[%s258_s1 + $0x1] sm:$0x1] %v124_v36 }
  0x96   :  { %v120_v35 = vld [vmem:[#allocation0] sm:$0x1] }
  0x97   :  { %122 = vst [vmem:[%s258_s1] sm:$0x1] %v120_v35 }
  0x9a   :  { %v129_v37 = vld [vmem:[#allocation0 + $0x10] sm:$0x1] }
  0x9b   :  { %153 = vst [vmem:[%s258_s1 + $0x2] sm:$0x1] %v129_v37 }

// kernel: featurenet_forward.13
= control target key start
LH: loop header
LB: loop body
LE: loop exit
PB: predicated region body
PF: predicated region fallthrough
CT: control target
= control target key end

     0   :  { %s1772_s21 = smov 0   ;;  %s1926_s0 = inlined_call_operand.vmem [shape: bf16[2,8,360], index: 0, kind: input, shape index: {}]   ;;  %s1927_s1 = inlined_call_operand.vmem [shape: bf16[9,8,8], index: 1, kind: input, shape index: {}]   ;;  %s1928_s2 = inlined_call_operand.vmem [shape: f32[1,288], index: 2, kind: input, shape index: {}]   ;;  %s1929_s3 = inlined_call_operand.vmem [shape: f32[8,1], index: 3, kind: input, shape index: {}]   ;;  %s1930_s4 = inlined_call_operand.vmem [shape: f32[8,1], index: 4, kind: input, shape index: {}]   ;;  %s1931_s5 = inlined_call_operand.vmem [shape: f32[8,8], index: 5, kind: input, shape index: {}]   ;;  %s1932_s6 = inlined_call_operand.vmem [shape: f32[2,8,288], index: 6, kind: output, shape index: {}]  }
   0x1 LB: > { %s1489_s22 = sadd.s32 4294967295, %s1723_s21   ;;  %p1493_p0 = scmp.ge.s32.totalorder %s1723_s21, 1  ;;  %s1723_s21 = sphi %s1772_s21, %s16_s21  }
   0x2   : > { %p212_p1 = scmp.lt.s32.totalorder %s1723_s21, 3 }
   0x4   : > { %p213_p2 = pnand %p1493_p0, %p212_p1 }
   0x5   : > { %p242_p3 = scmp.lt.s32.totalorder (!%p213_p2), %s1489_s22, 1  ;;  %v1725_v0 = vmov (!%p213_p2), 0.0   ;;  %vm1726_vm0 = vmmov (!%p213_p2), 0   ;;  %v1727_v1 = vmov (!%p213_p2), 0   ;;  %s1728_s27 = smov (!%p213_p2), 110   ;;  %vm279_vm1 = vcmask (!%p213_p2), 1043456  }
   0x6   : > { %216 = sbr.rel (%p213_p2) target bundleno = 975 (0x3cf), region = 44  ;;  %1560 = vmatprep.subr.bf16.mxu1 (!%p213_p2), %v1725_v0  ;;  %1562 = vmatprep.mubr.msk.bf16.mxu1 (!%p213_p2), %vm1726_vm0, %v1725_v0  ;;  %s1729_s28 = smov (!%p213_p2), 111   ;;  %v1496_v9 = vld [vmem:[%s1927_s1 + $0x4] sm:$0xf] (!%p213_p2)  ;;  %vm275_vm2 = vcmask (!%p213_p2), 64512   ;;  %vm272_vm3 = vcmask (!%p213_p2), 900096  }
   0x7   : > { %321 = vmatprep.mubr.bf16.mxu0 (!%p213_p2), %v1727_v1  ;;  %1710 = vset.pattern.permute.xlu0 (!%p213_p2), %v1727_v1  ;;  %s1730_s29 = smov (!%p213_p2), 109   ;;  %s1731_s30 = smov (!%p213_p2), 93   ;;  %vm376_vm4 = vcmask (!%p213_p2), 908288   ;;  %v253_v23 = vld [vmem:[%s1927_s1] sm:$0xf] (!%p213_p2)  ;;  %vm480_vm5 = vcmask (!%p213_p2), 891904  }
   0x8   : > { %1711 = vset.pattern.permute.xlu1 (!%p213_p2), %v1727_v1  ;;  %s1732_s7 = smov (!%p213_p2), 92   ;;  %s1733_s8 = smov (!%p213_p2), 91   ;;  %vm587_vm6 = vcmask (!%p213_p2), 760832   ;;  %v1506_v34 = vld [vmem:[%s1927_s1 + $0x8] sm:$0xf] (!%p213_p2)  ;;  %vm694_vm7 = vcmask (!%p213_p2), 752640  }
   0x9   : > { %s1734_s9 = smov (!%p213_p2), 75   ;;  %s1735_s10 = smov (!%p213_p2), 74   ;;  %v1510_v42 = vld [vmem:[%s1927_s1 + $0xc] sm:$0xf] (!%p213_p2)  ;;  %vm801_vm8 = vcmask (!%p213_p2), 744448   ;;  %vm908_vm9 = vcmask (!%p213_p2), 613376  }
   0xa   : > { %s1736_s11 = smov (!%p213_p2), 73   ;;  %v1514_v50 = vld [vmem:[%s1927_s1 + $0x10] sm:$0xf] (!%p213_p2)  ;;  %v1518_v58 = vld [vmem:[%s1927_s1 + $0x14] sm:$0xf] (!%p213_p2)  ;;  %vm1015_vm10 = vcmask (!%p213_p2), 605184  }
   0xb   : > { %vm1122_vm11 = vcmask (!%p213_p2), 596992   ;;  %vm1242_vm12 = vcmask (!%p213_p2), 261120  }
   0xd   : > { %s1934_s22 = smov (!%p242_p3, %s1489_s22), 1 }
   0xe   : > { %s1688_s23 = smul.u32 12, %s1934_s22 }
   0xf   : > { %s1689_s16 = smul.u32 24, %s1934_s22 }
  0x10   : > { %s246_s26 = scalar_lea.vmem %s1926_s0, %s1688_s23 }
  0x11   : > { %v1712_v2 = vld [vmem:[%s246_s26 + $0x8] ss:$0 sps:$4 sm:$0xff]   ;;  %v254_v3 = vld [vmem:[%s246_s26] sm:$0xff]  ;;  %s251_s19 = scalar_lea.vmem %s1932_s6, %s1689_s16 }
  0x12   : > { %v1497_v4 = vcombine.low %v254_v3, %v254_v3  ;;  %270 = vrot.lane.b32.xlu1 %v1712_v2, %s1728_s27  ;;  %v1498_v5 = vcombine.high %v254_v3, %v254_v3 }
  0x14   : > { %266 = vrot.lane.b32.xlu0 %v1497_v4, %s1728_s27 }
  0x16   : > { %370 = vrot.lane.b32.xlu1 %v1497_v4, %s1729_s28 }
  0x18   : > { %268 = vrot.lane.b32.xlu0 %v1498_v5, %s1728_s27 }
  0x1a   : > { %374 = vrot.lane.b32.xlu1 %v1712_v2, %s1729_s28 }
  0x1c   : > { %372 = vrot.lane.b32.xlu0 %v1498_v5, %s1729_s28 }
  0x1e   : > { %476 = vrot.lane.b32.xlu1 %v1498_v5, %s1730_s29 }
  0x20   : > { %474 = vrot.lane.b32.xlu0 %v1497_v4, %s1730_s29 }
  0x22   : > { %581 = vrot.lane.b32.xlu1 %v1497_v4, %s1731_s30 }
  0x24   : > { %478 = vrot.lane.b32.xlu0 %v1712_v2, %s1730_s29 }
  0x26   : > { %585 = vrot.lane.b32.xlu1 %v1712_v2, %s1731_s30 }
  0x28   : > { %583 = vrot.lane.b32.xlu0 %v1498_v5, %s1731_s30 }
  0x2a   : > { %690 = vrot.lane.b32.xlu1 %v1498_v5, %s1732_s7 }
  0x2c   : > { %688 = vrot.lane.b32.xlu0 %v1497_v4, %s1732_s7 }
  0x2e   : > { %795 = vrot.lane.b32.xlu1 %v1497_v4, %s1733_s8 }
  0x30   : > { %692 = vrot.lane.b32.xlu0 %v1712_v2, %s1732_s7 }
  0x32   : > { %799 = vrot.lane.b32.xlu1 %v1712_v2, %s1733_s8 }
  0x34   : > { %797 = vrot.lane.b32.xlu0 %v1498_v5, %s1733_s8 }
  0x36   : > { %904 = vrot.lane.b32.xlu1 %v1498_v5, %s1734_s9 }
  0x38   : > { %902 = vrot.lane.b32.xlu0 %v1497_v4, %s1734_s9 }
  0x3a   : > { %1009 = vrot.lane.b32.xlu1 %v1497_v4, %s1735_s10 }
  0x3c   : > { %906 = vrot.lane.b32.xlu0 %v1712_v2, %s1734_s9 }
  0x3e   : > { %1013 = vrot.lane.b32.xlu1 %v1712_v2, %s1735_s10 }
  0x40   : > { %1011 = vrot.lane.b32.xlu0 %v1498_v5, %s1735_s10 }
  0x42   : > { %1118 = vrot.lane.b32.xlu1 %v1498_v5, %s1736_s11 }
  0x44   : > { %1116 = vrot.lane.b32.xlu0 %v1497_v4, %s1736_s11  ;;  %v1522_v4 = vld [vmem:[%s1927_s1 + $0x18] sm:$0xf] }
  0x48   : > { %1120 = vrot.lane.b32.xlu0 %v1712_v2, %s1736_s11 }
  0x84   : > { %v271_v6 = vpop.permute.xlu1 %270 }
  0x85   : > { %v287_v8 = vsel %vm279_vm1, %v271_v6, 0 }
  0x86   : > { %v267_v7 = vpop.permute.xlu0 %266  ;;  %1561 = vmatpush3.bf16.msra.mxu1 %v287_v8 }
  0x87   : > { %1566 = vmatprep.subr.bf16.mxu1 %v1725_v0 }
  0x88   : > { %v371_v10 = vpop.permute.xlu1 %370 }
  0x89   : > { %1563 = vmatmul.mubr.msk.bf16.vlgmr.msra.gmra.mrb[0].mxu1 %vm275_vm2, %v1496_v9 }
  0x8a   : > { %v269_v11 = vpop.permute.xlu0 %268  ;;  %1568 = vmatprep.mubr.msk.bf16.mxu1 %vm1726_vm0, %v1725_v0 }
  0x8b   : > { %v274_v12 = vsel %vm272_vm3, %v269_v11, %v271_v6  ;;  %v273_v13 = vsel %vm272_vm3, %v267_v7, %v269_v11  ;;  %v1526_v11 = vld [vmem:[%s1927_s1 + $0x1c] sm:$0xf] }
  0x8c   : > { %1500 = vmatprep.subr.msk.bf16.mxu0 %vm279_vm1, %v274_v12  ;;  %v281_v14 = vsel %vm279_vm1, %v273_v13, 0  ;;  %v375_v15 = vpop.permute.xlu1 %374 }
  0x8d   : > { %290 = vmatpush1.bf16.msra.mxu0 %v281_v14  ;;  %v389_v16 = vsel %vm279_vm1, %v375_v15, 0 }
  0x8e   : > { %v373_v17 = vpop.permute.xlu0 %372  ;;  %1567 = vmatpush3.bf16.msra.mxu1 %v389_v16  ;;  %v1223_v16 = vlaneseq }
  0x8f   : > { %v377_v18 = vsel %vm376_vm4, %v371_v10, %v373_v17  ;;  %v378_v19 = vsel %vm376_vm4, %v373_v17, %v375_v15  ;;  %1572 = vmatprep.subr.bf16.mxu1 %v1725_v0  ;;  %v1530_v15 = vld [vmem:[%s1927_s1 + $0x20] sm:$0xf] }
  0x90   : > { %1501 = vmatmul.mubr.msk.bf16.vlgmr.msra.gmra.mrb[0].mxu0 %vm275_vm2, %v1496_v9  ;;  %v383_v20 = vsel %vm279_vm1, %v377_v18, 0  ;;  %1503 = vmatprep.subr.msk.bf16.mxu0 %vm279_vm1, %v378_v19  ;;  %v477_v21 = vpop.permute.xlu1 %476  ;;  %v1224_v17 = vshrl.u32 %v1223_v16, 7 }
  0x91   : > { %392 = vmatpush1.bf16.msra.mxu0 %v383_v20  ;;  %423 = vmatprep.mubr.bf16.mxu0 %v1727_v1 }
  0x92   : > { %v475_v22 = vpop.permute.xlu0 %474  ;;  %v1233_v18 = vsub.s32 2, %v1224_v17  ;;  %v1225_v19 = vsub.s32 0, %v1224_v17 }
  0x93   : > { %v481_v26 = vsel %vm480_vm5, %v475_v22, %v477_v21 }
  0x94   : > { %v582_v24 = vpop.permute.xlu1 %581  ;;  %v487_v30 = vsel %vm279_vm1, %v481_v26, 0 }
  0x95   : > { %1569 = vmatmul.mubr.msk.bf16.vlgmr.msra.gmra.mrb[0].mxu1 %vm275_vm2, %v253_v23 }
  0x96   : > { %v479_v25 = vpop.permute.xlu0 %478  ;;  %1574 = vmatprep.mubr.msk.bf16.mxu1 %vm1726_vm0, %v1725_v0 }
  0x97   : > { %v482_v27 = vsel %vm480_vm5, %v477_v21, %v479_v25  ;;  %v493_v28 = vsel %vm279_vm1, %v479_v25, 0  ;;  %v1229_v21 = vsub.s32 1, %v1224_v17 }
  0x98   : > { %1507 = vmatprep.subr.msk.bf16.mxu0 %vm279_vm1, %v482_v27  ;;  %1573 = vmatpush3.bf16.msra.mxu1 %v493_v28  ;;  %v586_v29 = vpop.permute.xlu1 %585 }
  0x99   : > { %1578 = vmatprep.subr.bf16.mxu1 %v1725_v0  ;;  %v600_v35 = vsel %vm279_vm1, %v586_v29, 0 }
  0x9a   : > { %v584_v31 = vpop.permute.xlu0 %583 }
  0x9b   : > { %v589_v32 = vsel %vm587_vm6, %v584_v31, %v586_v29  ;;  %v588_v36 = vsel %vm587_vm6, %v582_v24, %v584_v31 }
  0x9c   : > { %1504 = vmatmul.mubr.msk.bf16.vlgmr.msra.gmra.mrb[0].mxu0 %vm275_vm2, %v253_v23  ;;  %v691_v37 = vpop.permute.xlu1 %690  ;;  %v594_v39 = vsel %vm279_vm1, %v588_v36, 0 }
  0x9d   : > { %496 = vmatpush1.bf16.msra.mxu0 %v487_v30  ;;  %527 = vmatprep.mubr.bf16.mxu0 %v1727_v1 }
  0x9e   : > { %1511 = vmatprep.subr.msk.bf16.mxu0 %vm279_vm1, %v589_v32  ;;  %v689_v33 = vpop.permute.xlu0 %688 }
  0x9f   : > { %v695_v44 = vsel %vm694_vm7, %v689_v33, %v691_v37 }
  0xa0   : > { %v796_v41 = vpop.permute.xlu1 %795  ;;  %v701_v47 = vsel %vm279_vm1, %v695_v44, 0 }
  0xa1   : > { %1575 = vmatmul.mubr.msk.bf16.vlgmr.msra.gmra.mrb[0].mxu1 %vm275_vm2, %v1506_v34 }
  0xa2   : > { %1579 = vmatpush3.bf16.msra.mxu1 %v600_v35  ;;  %1580 = vmatprep.mubr.msk.bf16.mxu1 %vm1726_vm0, %v1725_v0  ;;  %v693_v38 = vpop.permute.xlu0 %692 }
  0xa3   : > { %1584 = vmatprep.subr.bf16.mxu1 %v1725_v0  ;;  %v696_v40 = vsel %vm694_vm7, %v691_v37, %v693_v38  ;;  %v707_v43 = vsel %vm279_vm1, %v693_v38, 0 }
  0xa4   : > { %v800_v45 = vpop.permute.xlu1 %799 }
  0xa5   : > { %v814_v51 = vsel %vm279_vm1, %v800_v45, 0 }
  0xa6   : > { %v798_v46 = vpop.permute.xlu0 %797 }
  0xa7   : > { %v803_v48 = vsel %vm801_vm8, %v798_v46, %v800_v45  ;;  %v802_v52 = vsel %vm801_vm8, %v796_v41, %v798_v46 }
  0xa8   : > { %1508 = vmatmul.mubr.msk.bf16.vlgmr.msra.gmra.mrb[0].mxu0 %vm275_vm2, %v1506_v34  ;;  %v905_v53 = vpop.permute.xlu1 %904  ;;  %v808_v55 = vsel %vm279_vm1, %v802_v52, 0 }
  0xa9   : > { %603 = vmatpush1.bf16.msra.mxu0 %v594_v39  ;;  %634 = vmatprep.mubr.bf16.mxu0 %v1727_v1 }
  0xaa   : > { %1515 = vmatprep.subr.msk.bf16.mxu0 %vm279_vm1, %v696_v40  ;;  %v903_v49 = vpop.permute.xlu0 %902 }
  0xab   : > { %v909_v60 = vsel %vm908_vm9, %v903_v49, %v905_v53 }
  0xac   : > { %v1010_v57 = vpop.permute.xlu1 %1009  ;;  %v915_v63 = vsel %vm279_vm1, %v909_v60, 0 }
  0xad   : > { %1581 = vmatmul.mubr.msk.bf16.vlgmr.msra.gmra.mrb[0].mxu1 %vm275_vm2, %v1510_v42 }
  0xae   : > { %1585 = vmatpush3.bf16.msra.mxu1 %v707_v43  ;;  %1586 = vmatprep.mubr.msk.bf16.mxu1 %vm1726_vm0, %v1725_v0  ;;  %v907_v54 = vpop.permute.xlu0 %906  ;;  %v1255_v43 = vld [vmem:[%s1931_s5] sm:$0xff] }
  0xaf   : > { %1590 = vmatprep.subr.bf16.mxu1 %v1725_v0  ;;  %v910_v56 = vsel %vm908_vm9, %v905_v53, %v907_v54  ;;  %v921_v59 = vsel %vm279_vm1, %v907_v54, 0  ;;  %v1404_v54 = vld [vmem:[%s1929_s3] sm:$0xff] }
  0xb0   : > { %v1014_v61 = vpop.permute.xlu1 %1013 }
  0xb1   : > { %v1028_v5 = vsel %vm279_vm1, %v1014_v61, 0 }
  0xb2   : > { %v1012_v62 = vpop.permute.xlu0 %1011 }
  0xb3   : > { %v1017_v2 = vsel %vm1015_vm10, %v1012_v62, %v1014_v61  ;;  %v1016_v6 = vsel %vm1015_vm10, %v1010_v57, %v1012_v62  ;;  %v1406_v57 = vld [vmem:[%s1930_s4] sm:$0xff] }
  0xb4   : > { %1512 = vmatmul.mubr.msk.bf16.vlgmr.msra.gmra.mrb[0].mxu0 %vm275_vm2, %v1510_v42  ;;  %v1119_v7 = vpop.permute.xlu1 %1118  ;;  %v1022_v9 = vsel %vm279_vm1, %v1016_v6, 0 }
  0xb5   : > { %710 = vmatpush1.bf16.msra.mxu0 %v701_v47  ;;  %741 = vmatprep.mubr.bf16.mxu0 %v1727_v1 }
  0xb6   : > { %1519 = vmatprep.subr.msk.bf16.mxu0 %vm279_vm1, %v803_v48  ;;  %v1117_v3 = vpop.permute.xlu0 %1116 }
  0xb7   : > { %v1123_v13 = vsel %vm1122_vm11, %v1117_v3, %v1119_v7 }
  0xb8   : > { %v1129_v14 = vsel %vm279_vm1, %v1123_v13, 0 }
  0xb9   : > { %1587 = vmatmul.mubr.msk.bf16.vlgmr.msra.gmra.mrb[0].mxu1 %vm275_vm2, %v1514_v50 }
  0xba   : > { %1591 = vmatpush3.bf16.msra.mxu1 %v814_v51  ;;  %1592 = vmatprep.mubr.msk.bf16.mxu1 %vm1726_vm0, %v1725_v0  ;;  %v1121_v8 = vpop.permute.xlu0 %1120 }
  0xbb   : > { %1596 = vmatprep.subr.bf16.mxu1 %v1725_v0  ;;  %v1124_v10 = vsel %vm1122_vm11, %v1119_v7, %v1121_v8  ;;  %v1135_v12 = vsel %vm279_vm1, %v1121_v8, 0 }
  0xc0   : > { %1516 = vmatmul.mubr.msk.bf16.vlgmr.msra.gmra.mrb[0].mxu0 %vm275_vm2, %v1514_v50 }
  0xc1   : > { %817 = vmatpush1.bf16.msra.mxu0 %v808_v55  ;;  %848 = vmatprep.mubr.bf16.mxu0 %v1727_v1 }
  0xc2   : > { %1523 = vmatprep.subr.msk.bf16.mxu0 %vm279_vm1, %v910_v56 }
  0xc5   : > { %1593 = vmatmul.mubr.msk.bf16.vlgmr.msra.gmra.mrb[0].mxu1 %vm275_vm2, %v1518_v58 }
  0xc6   : > { %1597 = vmatpush3.bf16.msra.mxu1 %v921_v59  ;;  %1598 = vmatprep.mubr.msk.bf16.mxu1 %vm1726_vm0, %v1725_v0 }
  0xc7   : > { %1602 = vmatprep.subr.bf16.mxu1 %v1725_v0 }
  0xcc   : > { %1520 = vmatmul.mubr.msk.bf16.vlgmr.msra.gmra.mrb[0].mxu0 %vm275_vm2, %v1518_v58 }
  0xcd   : > { %924 = vmatpush1.bf16.msra.mxu0 %v915_v63  ;;  %955 = vmatprep.mubr.bf16.mxu0 %v1727_v1 }
  0xce   : > { %1527 = vmatprep.subr.msk.bf16.mxu0 %vm279_vm1, %v1017_v2 }
  0xd1   : > { %1599 = vmatmul.mubr.msk.bf16.vlgmr.msra.gmra.mrb[0].mxu1 %vm275_vm2, %v1522_v4 }
  0xd2   : > { %1603 = vmatpush3.bf16.msra.mxu1 %v1028_v5  ;;  %1604 = vmatprep.mubr.msk.bf16.mxu1 %vm1726_vm0, %v1725_v0 }
  0xd3   : > { %1608 = vmatprep.subr.bf16.mxu1 %v1725_v0 }
  0xd8   : > { %1524 = vmatmul.mubr.msk.bf16.vlgmr.msra.gmra.mrb[0].mxu0 %vm275_vm2, %v1522_v4 }
  0xd9   : > { %1031 = vmatpush1.bf16.msra.mxu0 %v1022_v9  ;;  %1062 = vmatprep.mubr.bf16.mxu0 %v1727_v1 }
  0xda   : > { %1531 = vmatprep.subr.msk.bf16.mxu0 %vm279_vm1, %v1124_v10 }
  0xdd   : > { %1605 = vmatmul.mubr.msk.bf16.vlgmr.msra.gmra.mrb[0].mxu1 %vm275_vm2, %v1526_v11 }
  0xde   : > { %1609 = vmatpush3.bf16.msra.mxu1 %v1135_v12  ;;  %1610 = vmatprep.mubr.msk.bf16.mxu1 %vm1726_vm0, %v1725_v0 }
  0xdf   : > { %1619 = vmatprep.subr.mxu1 %v1725_v0 }
  0xe4   : > { %1528 = vmatmul.mubr.msk.bf16.vlgmr.msra.gmra.mrb[0].mxu0 %vm275_vm2, %v1526_v11 }
  0xe5   : > { %1138 = vmatpush1.bf16.msra.mxu0 %v1129_v14  ;;  %1169 = vmatprep.mubr.bf16.mxu0 %v1727_v1  ;;  %v1221_v1 = vld [vmem:[%s1928_s2] sm:$0x7] }
  0xe6   : > { %1614 = vmatprep.subr.mxu0 %v1725_v0  ;;  %v1234_v22 = vrot.slane %v1221_v1, %v1233_v18  ;;  %v1226_v26 = vrot.slane %v1221_v1, %v1225_v19  ;;  %v1230_v27 = vrot.slane %v1221_v1, %v1229_v21 }
  0xe9   : > { %1611 = vmatmul.mubr.msk.bf16.vlgmr.msra.gmra.mrb[0].mxu1 %vm275_vm2, %v1530_v15 }
  0xea   : > { %1621 = vmatprep.mubr.msk.f32.mxu1 %vm1726_vm0, %v1725_v0 }
  0xf0   : > { %1532 = vmatmul.mubr.msk.bf16.vlgmr.msra.gmra.mrb[0].mxu0 %vm275_vm2, %v1530_v15 }
  0xf1   : > { %1616 = vmatprep.mubr.msk.f32.mxu0 %vm1726_vm0, %v1725_v0 }
 0x1bc   : > { %v1212_v20 = vpop.f32.mrb[0].mxu1 }
 0x1bd   : > { %v1612_v23 = vpop.f32.mrb[1].mxu1  ;;  %v1240_v28 = vmul.f32 %v1234_v22, %v1212_v20 }
 0x1be   : > { %v1215_v24 = vpop.f32.mrb[2].mxu1 }
 0x1bf   : > { %v1613_v25 = vpop.f32.mrb[3].mxu1  ;;  %v1249_v35 = vmul.f32 %v1240_v28, %v1240_v28  ;;  %v1243_v38 = vsel %vm1242_vm12, %v1240_v28, 0.0 }
 0x1c1   : > { %v1251_v41 = vsel %vm1242_vm12, %v1249_v35, 0.0 }
 0x1c3   : > { %v1171_v29 = vpop.f32.mrb[0].mxu0 }
 0x1c4   : > { %v1238_v30 = vmul.f32 %v1226_v26, %v1171_v29  ;;  %v1173_v0 = vpop.f32.mrb[1].mxu0 }
 0x1c5   : > { %v1239_v31 = vmul.f32 %v1230_v27, %v1173_v0  ;;  %v1175_v32 = vpop.f32.mrb[2].mxu0 }
 0x1c6   : > { %v1247_v33 = vmul.f32 %v1238_v30, %v1238_v30  ;;  %v1176_v34 = vpop.f32.mrb[3].mxu0 }
 0x1c7   : > { %v1248_v36 = vmul.f32 %v1239_v31, %v1239_v31  ;;  %v1241_v37 = vadd.f32 %v1239_v31, %v1238_v30 }
 0x1c9   : > { %v1244_v39 = vadd.f32 %v1243_v38, %v1241_v37  ;;  %v1250_v40 = vadd.f32 %v1248_v36, %v1247_v33 }
 0x1cb   : > { %1245 = vadd.xlane.f32.xlu1 %v1244_v39  ;;  %v1252_v42 = vadd.f32 %v1251_v41, %v1250_v40 }
 0x1cd   : > { %1253 = vadd.xlane.f32.xlu0 %v1252_v42 }
 0x258   : > { %v1246_v44 = vpop.xlane.xlu1 %1245 }
 0x259   : > { %1615 = vmatpush3.msra.mxu0 %v1246_v44 }
 0x25a   : > { %v1254_v45 = vpop.xlane.xlu0 %1253  ;;  %1617 = vmatmul.mubr.msk.f32.vlgmr.msra.gmra.mrb[4].mxu0 %vm275_vm2, %v1255_v43 }
 0x25b   : > { %1620 = vmatpush3.msra.mxu1 %v1254_v45 }
 0x25c   : > { %1622 = vmatmul.mubr.msk.f32.vlgmr.msra.gmra.mrb[4].mxu1 %vm275_vm2, %v1255_v43 }
 0x32d   : > { %v1325_v46 = vpop.f32.mrb[4].mxu0 }
 0x32e   : > { %v1399_v47 = vmul.f32 %v1325_v46, %v1325_v46  ;;  %v1618_v48 = vpop.f32.mrb[5].mxu0 }
 0x32f   : > { %v1395_v49 = vpop.f32.mrb[4].mxu1 }
 0x330   : > { %v1400_v50 = vsub.f32 %v1395_v49, %v1399_v47  ;;  %v1623_v51 = vpop.f32.mrb[5].mxu1 }
 0x332   : > { %v1401_v52 = vmax.f32 %v1400_v50, 0.0 }
 0x334   : > { %v1402_v53 = vadd.f32 1e-06, %v1401_v52 }
 0x336   : > { %1715 = vrsqrt.f32 %v1402_v53 }
 0x340   : > { %v1716_v55 = vpop.eup %1715 }
 0x341   : > { %v1405_v56 = vmul.f32 %v1716_v55, %v1404_v54 }
 0x343   : > { %1411 = vperm.xlu0 %1710, %v1405_v56   ;;  %v1407_v58 = vmul.f32 %v1405_v56, %v1325_v46 }
 0x345   : > { %v1408_v59 = vsub.f32 %v1406_v57, %v1407_v58 }
 0x347   : > { %1419 = vperm.xlu1 %1711, %v1408_v59  }
 0x3c2   : > { %v1412_v60 = vpop.permute.xlu0 %1411 }
 0x3c3   : > { %v1414_v61 = vmul.f32 %v1412_v60, %v1238_v30  ;;  %v1415_v62 = vmul.f32 %v1412_v60, %v1239_v31  ;;  %v1416_v63 = vmul.f32 %v1412_v60, %v1240_v28 }
 0x3c6   : > { %v1420_v2 = vpop.permute.xlu1 %1419 }
 0x3c7   : > { %v1422_v3 = vadd.f32 %v1420_v2, %v1414_v61  ;;  %v1423_v4 = vadd.f32 %v1420_v2, %v1415_v62  ;;  %v1424_v5 = vadd.f32 %v1420_v2, %v1416_v63 }
 0x3c9   : > { %v1425_v6 = vmul.f32 0.01, %v1422_v3  ;;  %v1426_v7 = vmul.f32 0.01, %v1423_v4  ;;  %v1427_v8 = vmul.f32 0.01, %v1424_v5 }
 0x3cb   : > { %v1428_v9 = vmax.f32 %v1422_v3, %v1425_v6  ;;  %v1429_v10 = vmax.f32 %v1423_v4, %v1426_v7  ;;  %v1430_v11 = vmax.f32 %v1424_v5, %v1427_v8 }
 0x3cd   : > { %1431 = vst [vmem:[%s251_s19] sm:$0xff] %v1428_v9  ;;  %1432 = vst [vmem:[%s251_s19 + $0x8] sm:$0xff] %v1429_v10 }
 0x3ce   : > { %1433 = vst.msk [vmem:[%s251_s19 + $0x10] sm:$0xff] %vm1242_vm12, %v1430_v11 }
 0x3cf PF: > { %s16_s21 = sadd.s32 1, %s1723_s21  }
 0x3d0   : > { %p13_p4 = scmp.ge.s32.totalorder %s16_s21, 4  }
 0x3d2   :  { %15 = sbr.rel (!%p13_p4) target bundleno = 1 (0x1), region = 82 }

// kernel: tile.43
= control target key start
LH: loop header
LB: loop body
LE: loop exit
PB: predicated region body
PF: predicated region fallthrough
CT: control target
= control target key end

     0   :  { %s22_s0 = inlined_call_operand.vmem [shape: f32[10], index: 0, kind: input, shape index: {}]   ;;  %s23_s1 = inlined_call_operand.vmem [shape: f32[8,10], index: 1, kind: output, shape index: {}]  }
   0x1   :  { %v4_v0 = vld [vmem:[%s22_s0] ss:$0 sm:$0xff] }
   0x2   :  { %5 = vst [vmem:[%s23_s1] sm:$0xff] %v4_v0 }

// kernel: tile.44
= control target key start
LH: loop header
LB: loop body
LE: loop exit
PB: predicated region body
PF: predicated region fallthrough
CT: control target
= control target key end

     0   :  { %s67_s10 = smov 70   ;;  %s68_s11 = smov 50   ;;  %vm3_vm0 = vcmask 80896   ;;  %vm9_vm1 = vcmask 654896   ;;  %vm15_vm2 = vcmask 572896   ;;  %vm21_vm3 = vcmask 490896   ;;  %s111_s0 = inlined_call_operand.vmem [shape: f32[8,10], index: 0, kind: input, shape index: {}]   ;;  %s112_s1 = inlined_call_operand.vmem [shape: f32[1,80], index: 1, kind: output, shape index: {}]  }
   0x1   :  { %v53_v0 = vld [vmem:[%s111_s0 + $0x7] sm:$0x1]   ;;  %v55_v1 = vld [vmem:[%s111_s0 + $0x5] sm:$0x1]   ;;  %v54_v2 = vld [vmem:[%s111_s0 + $0x6] sm:$0x1]  }
   0x2   :  { %7 = vrot.lane.b32.xlu0 %v53_v0, %s67_s10  ;;  %19 = vrot.lane.b32.xlu1 %v55_v1, %s68_s11  ;;  %v56_v3 = vld [vmem:[%s111_s0 + $0x4] sm:$0x1]   ;;  %v2_v4 = vld [vmem:[%s111_s0] sm:$0x1]   ;;  %s69_s18 = smov 60   ;;  %s70_s19 = smov 40  }
   0x3   :  { %4 = vst.msk [vmem:[#allocation0] sm:$0x1] %vm3_vm0, %v2_v4   ;;  %v57_v5 = vld [vmem:[%s111_s0 + $0x3] sm:$0x1]   ;;  %v58_v6 = vld [vmem:[%s111_s0 + $0x2] sm:$0x1]  }
   0x4   :  { %s71_s24 = smov 30   ;;  %s72_s25 = smov 20   ;;  %v59_v7 = vld [vmem:[%s111_s0 + $0x1] sm:$0x1]   ;;  %vm27_vm4 = vcmask 408896   ;;  %vm33_vm5 = vcmask 326896  }
   0x5   :  { %s73_s0 = smov 10   ;;  %vm39_vm6 = vcmask 244896   ;;  %vm45_vm7 = vcmask 162896  }
   0x6   :  { %13 = vrot.lane.b32.xlu0 %v54_v2, %s69_s18  ;;  %25 = vrot.lane.b32.xlu1 %v56_v3, %s70_s19 }
   0xa   :  { %31 = vrot.lane.b32.xlu0 %v57_v5, %s71_s24  ;;  %37 = vrot.lane.b32.xlu1 %v58_v6, %s72_s25 }
   0xe   :  { %43 = vrot.lane.b32.xlu0 %v59_v7, %s73_s0 }
  0x74   :  { %v8_v8 = vpop.permute.xlu0 %7   ;;  %v20_v9 = vpop.permute.xlu1 %19  }
  0x75   :  { %10 = vst.msk [vmem:[#allocation0] sm:$0x1] %vm9_vm1, %v8_v8  }
  0x78   :  { %v14_v10 = vpop.permute.xlu0 %13   ;;  %v26_v11 = vpop.permute.xlu1 %25  }
  0x79   :  { %16 = vst.msk [vmem:[#allocation0] sm:$0x1] %vm15_vm2, %v14_v10  }
  0x7a   :  { %22 = vst.msk [vmem:[#allocation0] sm:$0x1] %vm21_vm3, %v20_v9  }
  0x7b   :  { %28 = vst.msk [vmem:[#allocation0] sm:$0x1] %vm27_vm4, %v26_v11  }
  0x7c   :  { %v32_v12 = vpop.permute.xlu0 %31   ;;  %v38_v13 = vpop.permute.xlu1 %37  }
  0x7d   :  { %34 = vst.msk [vmem:[#allocation0] sm:$0x1] %vm33_vm5, %v32_v12  }
  0x7e   :  { %40 = vst.msk [vmem:[#allocation0] sm:$0x1] %vm39_vm6, %v38_v13  }
  0x80   :  { %v44_v14 = vpop.permute.xlu0 %43  }
  0x81   :  { %46 = vst.msk [vmem:[#allocation0] sm:$0x1] %vm45_vm7, %v44_v14  }
  0x88   :  { %v50_v15 = vld [vmem:[#allocation0] sm:$0x1] }
  0x89   :  { %52 = vst [vmem:[%s112_s1] sm:$0x1] %v50_v15 }

// kernel: featurenet_forward.15
= control target key start
LH: loop header
LB: loop body
LE: loop exit
PB: predicated region body
PF: predicated region fallthrough
CT: control target
= control target key end

     0   :  { %s839_s21 = smov 0   ;;  %s920_s0 = inlined_call_operand.vmem [shape: bf16[2,200,64], index: 0, kind: input, shape index: {}]   ;;  %s921_s1 = inlined_call_operand.vmem [shape: bf16[1,16,200], index: 1, kind: input, shape index: {}]   ;;  %s922_s2 = inlined_call_operand.vmem [shape: f32[1,64], index: 2, kind: input, shape index: {}]   ;;  %s923_s3 = inlined_call_operand.vmem [shape: f32[16,1], index: 3, kind: input, shape index: {}]   ;;  %s924_s4 = inlined_call_operand.vmem [shape: f32[16,1], index: 4, kind: input, shape index: {}]   ;;  %s925_s5 = inlined_call_operand.vmem [shape: f32[16,16], index: 5, kind: input, shape index: {}]   ;;  %s926_s6 = inlined_call_operand.vmem [shape: f32[2,16,64], index: 6, kind: output, shape index: {}]  }
   0x1 LB: > { %s701_s22 = sadd.s32 4294967295, %s801_s21   ;;  %p705_p0 = scmp.ge.s32.totalorder %s801_s21, 1  ;;  %s801_s21 = sphi %s839_s21, %s16_s21  }
   0x2   : > { %p212_p1 = scmp.lt.s32.totalorder %s801_s21, 3 }
   0x4   : > { %p213_p2 = pnand %p705_p0, %p212_p1 }
   0x5   : > { %p242_p3 = scmp.lt.s32.totalorder (!%p213_p2), %s701_s22, 1  ;;  %vm364_vm0 = vcmask (!%p213_p2), 588800   ;;  %v803_v0 = vmov (!%p213_p2), 0   ;;  %v790_v1 = vld [vmem:[%s921_s1 + $0x4] ss:$8 sps:$4 sm:$0xff] (!%p213_p2)   ;;  %vm368_vm1 = vcmask (!%p213_p2), 1043456  }
   0x6   : > { %216 = sbr.rel (%p213_p2) target bundleno = 815 (0x32f), region = 44  ;;  %372 = vmatprep.subr.bf16.mxu0 (!%p213_p2), %v803_v0  ;;  %774 = vset.pattern.permute.xlu1 (!%p213_p2), %v803_v0  ;;  %v788_v16 = vld [vmem:[%s921_s1] ss:$8 sps:$4 sm:$0xff] (!%p213_p2)   ;;  %vm422_vm2 = vcmask (!%p213_p2), 523264   ;;  %vm439_vm3 = vcmask (!%p213_p2), 130048  }
   0x7   : > { %773 = vset.pattern.permute.xlu0 (!%p213_p2), %v803_v0  ;;  %724 = vmatprep.mubr.msk.bf16.mxu0 (!%p213_p2), %vm364_vm0, %v790_v1  ;;  %v725_v17 = vld [vmem:[%s922_s2] ss:$0 sm:$0xff] (!%p213_p2)  ;;  %v438_v37 = vld [vmem:[%s925_s5 + $0x8] sm:$0xff] (!%p213_p2) }
   0x8   : > { %v437_v30 = vld [vmem:[%s925_s5] sm:$0xff] (!%p213_p2)  ;;  %v607_v50 = vld [vmem:[%s923_s3 + $0x8] sm:$0xff] (!%p213_p2) }
   0x9   : > { %745 = vmatprep.mubr.msk.f32.mxu1 (!%p213_p2), %vm439_vm3, %v437_v30  ;;  %v606_v51 = vld [vmem:[%s923_s3] sm:$0xff] (!%p213_p2)  ;;  %v611_v60 = vld [vmem:[%s924_s4 + $0x8] sm:$0xff] (!%p213_p2) }
   0xa   : > { %v610_v56 = vld [vmem:[%s924_s4] sm:$0xff] (!%p213_p2) }
   0xd   : > { %s928_s22 = smov (!%p242_p3, %s701_s22), 1 }
   0xe   : > { %s763_s25 = smul.u32 100, %s928_s22  ;;  %s732_s23 = sshll.u32 %s928_s22, 4 }
   0xf   : > { %s251_s26 = scalar_lea.vmem %s926_s6, %s732_s23 }
  0x10   : > { %s856_s28 = scalar_lea.vmem %s920_s0, %s763_s25 }
  0x11   : > { %v775_v2 = vld [vmem:[%s856_s28] sm:$0xff]   ;;  %v776_v3 = vld [vmem:[%s856_s28 + $0x8] sm:$0xff]   ;;  %v777_v4 = vld [vmem:[%s856_s28 + $0x10] sm:$0xff]  }
  0x12   : > { %373 = vmatpush1.bf16.msra.mxu0 %v775_v2  ;;  %v778_v5 = vld [vmem:[%s856_s28 + $0x18] sm:$0xff]   ;;  %v779_v6 = vld [vmem:[%s856_s28 + $0x20] sm:$0xff]   ;;  %v780_v7 = vld [vmem:[%s856_s28 + $0x28] sm:$0xff]  }
  0x13   : > { %374 = vmatprep.subr.bf16.mxu0 %v803_v0  ;;  %v781_v8 = vld [vmem:[%s856_s28 + $0x30] sm:$0xff]   ;;  %v782_v9 = vld [vmem:[%s856_s28 + $0x38] sm:$0xff]   ;;  %v783_v10 = vld [vmem:[%s856_s28 + $0x40] sm:$0xff]  }
  0x14   : > { %v784_v11 = vld [vmem:[%s856_s28 + $0x48] sm:$0xff]   ;;  %v785_v12 = vld [vmem:[%s856_s28 + $0x50] sm:$0xff]   ;;  %v786_v13 = vld [vmem:[%s856_s28 + $0x58] sm:$0xff]  }
  0x15   : > { %v787_v14 = vld [vmem:[%s856_s28 + $0x60] ss:$0 sps:$4 sm:$0xff]  }
  0x16   : > { %375 = vmatpush1.bf16.msra.mxu0 %v776_v3  ;;  %v370_v15 = vsel %vm368_vm1, %v787_v14, 0 }
  0x17   : > { %376 = vmatprep.subr.bf16.mxu0 %v803_v0 }
  0x1a   : > { %377 = vmatpush1.bf16.msra.mxu0 %v777_v4 }
  0x1b   : > { %378 = vmatprep.subr.bf16.mxu0 %v803_v0 }
  0x1e   : > { %379 = vmatpush1.bf16.msra.mxu0 %v778_v5 }
  0x1f   : > { %380 = vmatprep.subr.bf16.mxu0 %v803_v0 }
  0x22   : > { %381 = vmatpush1.bf16.msra.mxu0 %v779_v6 }
  0x23   : > { %382 = vmatprep.subr.bf16.mxu0 %v803_v0 }
  0x26   : > { %383 = vmatpush1.bf16.msra.mxu0 %v780_v7 }
  0x27   : > { %384 = vmatprep.subr.bf16.mxu0 %v803_v0 }
  0x2a   : > { %385 = vmatpush1.bf16.msra.mxu0 %v781_v8 }
  0x2b   : > { %386 = vmatprep.subr.bf16.mxu0 %v803_v0 }
  0x2e   : > { %387 = vmatpush1.bf16.msra.mxu0 %v782_v9 }
  0x2f   : > { %388 = vmatprep.subr.bf16.mxu0 %v803_v0 }
  0x32   : > { %389 = vmatpush1.bf16.msra.mxu0 %v783_v10 }
  0x33   : > { %390 = vmatprep.subr.bf16.mxu0 %v803_v0 }
  0x36   : > { %391 = vmatpush1.bf16.msra.mxu0 %v784_v11 }
  0x37   : > { %392 = vmatprep.subr.bf16.mxu0 %v803_v0 }
  0x3a   : > { %393 = vmatpush1.bf16.msra.mxu0 %v785_v12 }
  0x3b   : > { %394 = vmatprep.subr.bf16.mxu0 %v803_v0 }
  0x3e   : > { %395 = vmatpush1.bf16.msra.mxu0 %v786_v13 }
  0x3f   : > { %396 = vmatprep.subr.bf16.mxu0 %v803_v0 }
  0x42   : > { %397 = vmatpush1.bf16.msra.mxu0 %v370_v15 }
  0x45   : > { %405 = vmatmul.mubr.bf16.vlgmr.msra.gmra.mrb[0].mxu0 %v788_v16 }
 0x118   : > { %v406_v18 = vpop.f32.mrb[0].mxu0 }
 0x119   : > { %v877_v19 = vmul.f32 %v725_v17, %v406_v18  ;;  %v408_v20 = vpop.f32.mrb[1].mxu0 }
 0x11a   : > { %v409_v21 = vpop.f32.mrb[2].mxu0 }
 0x11b   : > { %v879_v22 = vmul.f32 %v725_v17, %v409_v21  ;;  %v411_v23 = vpop.f32.mrb[3].mxu0  ;;  %v423_v24 = vsel %vm422_vm2, %v877_v19, 0.0  ;;  %v429_v25 = vmul.f32 %v877_v19, %v877_v19 }
 0x11c   : > { %424 = vadd.xlane.f32.xlu0 %v423_v24 }
 0x11d   : > { %v431_v26 = vsel %vm422_vm2, %v429_v25, 0.0  ;;  %v430_v27 = vmul.f32 %v879_v22, %v879_v22  ;;  %v426_v28 = vsel %vm422_vm2, %v879_v22, 0.0 }
 0x11e   : > { %432 = vadd.xlane.f32.xlu1 %v431_v26 }
 0x11f   : > { %v434_v29 = vsel %vm422_vm2, %v430_v27, 0.0 }
 0x120   : > { %427 = vadd.xlane.f32.xlu0 %v426_v28 }
 0x122   : > { %435 = vadd.xlane.f32.xlu1 %v434_v29 }
 0x1a9   : > { %v425_v31 = vpop.xlane.xlu0 %424 }
 0x1ab   : > { %v433_v32 = vpop.xlane.xlu1 %432 }
 0x1ad   : > { %v428_v33 = vpop.xlane.xlu0 %427 }
 0x1ae   : > { %v755_v34 = vpack.c.bf16 %v428_v33, %v425_v31 }
 0x1af   : > { %v436_v35 = vpop.xlane.xlu1 %435 }
 0x1b0   : > { %v759_v36 = vpack.c.bf16 %v436_v35, %v433_v32  ;;  %756 = vmatprep.subr.bf16.mxu1 %v755_v34 }
 0x1b1   : > { %758 = vmatpush3.bf16.msra.mxu1 %v755_v34 }
 0x1b2   : > { %760 = vmatprep.subr.bf16.mxu1 %v759_v36 }
 0x1b4   : > { %746 = vmatmul.mubr.msk.f32.vlgmr.msra.gmra.mrb[0].mxu1 %vm439_vm3, %v438_v37 }
 0x1b5   : > { %762 = vmatpush3.bf16.msra.mxu1 %v759_v36  ;;  %752 = vmatprep.mubr.msk.f32.mxu1 %vm439_vm3, %v437_v30 }
 0x1b8   : > { %753 = vmatmul.mubr.msk.f32.vlgmr.msra.gmra.mrb[2].mxu1 %vm439_vm3, %v438_v37 }
 0x287   : > { %v747_v38 = vpop.f32.mrb[0].mxu1 }
 0x288   : > { %v512_v39 = vpop.f32.mrb[1].mxu1  ;;  %v597_v40 = vmul.f32 %v747_v38, %v747_v38 }
 0x289   : > { %v596_v41 = vmul.f32 %v512_v39, %v512_v39 }
 0x28b   : > { %v754_v42 = vpop.f32.mrb[2].mxu1 }
 0x28c   : > { %v599_v43 = vsub.f32 %v754_v42, %v597_v40  ;;  %v587_v44 = vpop.f32.mrb[3].mxu1 }
 0x28d   : > { %v598_v45 = vsub.f32 %v587_v44, %v596_v41 }
 0x28e   : > { %v601_v46 = vmax.f32 %v599_v43, 0.0 }
 0x28f   : > { %v600_v47 = vmax.f32 %v598_v45, 0.0 }
 0x290   : > { %v603_v48 = vadd.f32 1e-06, %v601_v46 }
 0x291   : > { %v602_v49 = vadd.f32 1e-06, %v600_v47 }
 0x292   : > { %791 = vrsqrt.f32 %v603_v48 }
 0x293   : > { %793 = vrsqrt.f32 %v602_v49 }
 0x29c   : > { %v792_v52 = vpop.eup %791 }
 0x29d   : > { %v794_v53 = vpop.eup %793  ;;  %v609_v54 = vmul.f32 %v792_v52, %v607_v50 }
 0x29e   : > { %v608_v55 = vmul.f32 %v794_v53, %v606_v51 }
 0x29f   : > { %623 = vperm.xlu1 %774, %v609_v54   ;;  %v613_v57 = vmul.f32 %v747_v38, %v609_v54 }
 0x2a0   : > { %618 = vperm.xlu0 %773, %v608_v55   ;;  %v612_v58 = vmul.f32 %v608_v55, %v512_v39 }
 0x2a1   : > { %v615_v61 = vsub.f32 %v611_v60, %v613_v57 }
 0x2a2   : > { %v614_v59 = vsub.f32 %v610_v56, %v612_v58 }
 0x2a4   : > { %630 = vperm.xlu1 %774, %v614_v59  }
 0x2a8   : > { %635 = vperm.xlu1 %774, %v615_v61  }
 0x31e   : > { %v624_v62 = vpop.permute.xlu1 %623 }
 0x31f   : > { %v619_v63 = vpop.permute.xlu0 %618  ;;  %v627_v3 = vmul.f32 %v624_v62, %v879_v22 }
 0x320   : > { %v626_v0 = vmul.f32 %v619_v63, %v877_v19 }
 0x323   : > { %v631_v1 = vpop.permute.xlu1 %630 }
 0x324   : > { %v638_v2 = vadd.f32 %v631_v1, %v626_v0 }
 0x326   : > { %v640_v4 = vmul.f32 0.01, %v638_v2 }
 0x327   : > { %v636_v5 = vpop.permute.xlu1 %635 }
 0x328   : > { %v642_v6 = vmax.f32 %v638_v2, %v640_v4  ;;  %v639_v7 = vadd.f32 %v636_v5, %v627_v3 }
 0x32a   : > { %644 = vst.msk [vmem:[%s251_s26] sm:$0xff] %vm422_vm2, %v642_v6  ;;  %v641_v8 = vmul.f32 0.01, %v639_v7 }
 0x32c   : > { %v643_v9 = vmax.f32 %v639_v7, %v641_v8 }
 0x32e   : > { %645 = vst.msk [vmem:[%s251_s26 + $0x8] sm:$0xff] %vm422_vm2, %v643_v9 }
 0x32f PF: > { %s16_s21 = sadd.s32 1, %s801_s21  }
 0x330   : > { %p13_p4 = scmp.ge.s32.totalorder %s16_s21, 4  }
 0x332   :  { %15 = sbr.rel (!%p13_p4) target bundleno = 1 (0x1), region = 74 }

// kernel: featurenet_forward.16
= control target key start
LH: loop header
LB: loop body
LE: loop exit
PB: predicated region body
PF: predicated region fallthrough
CT: control target
= control target key end

     0   :  { %s1332_s21 = smov 0   ;;  %s1459_s0 = inlined_call_operand.vmem [shape: bf16[2,16,120], index: 0, kind: input, shape index: {}]   ;;  %s1460_s1 = inlined_call_operand.vmem [shape: bf16[9,16,16], index: 1, kind: input, shape index: {}]   ;;  %s1461_s2 = inlined_call_operand.vmem [shape: f32[1,80], index: 2, kind: input, shape index: {}]   ;;  %s1462_s3 = inlined_call_operand.vmem [shape: f32[16,1], index: 3, kind: input, shape index: {}]   ;;  %s1463_s4 = inlined_call_operand.vmem [shape: f32[16,1], index: 4, kind: input, shape index: {}]   ;;  %s1464_s5 = inlined_call_operand.vmem [shape: f32[16,16], index: 5, kind: input, shape index: {}]   ;;  %s1465_s6 = inlined_call_operand.vmem [shape: f32[2,16,80], index: 6, kind: output, shape index: {}]  }
   0x1 LB: > { %s1056_s22 = sadd.s32 4294967295, %s1283_s21   ;;  %p1060_p0 = scmp.ge.s32.totalorder %s1283_s21, 1  ;;  %s1283_s21 = sphi %s1332_s21, %s16_s21  }
   0x2   : > { %p212_p1 = scmp.lt.s32.totalorder %s1283_s21, 3 }
   0x4   : > { %p213_p2 = pnand %p1060_p0, %p212_p1 }
   0x5   : > { %p242_p3 = scmp.lt.s32.totalorder (!%p213_p2), %s1056_s22, 1  ;;  %v1285_v0 = vmov (!%p213_p2), 0.0   ;;  %vm1286_vm0 = vmmov (!%p213_p2), 0   ;;  %s1287_s27 = smov (!%p213_p2), 108   ;;  %v1264_v3 = vld [vmem:[%s1460_s1 + $0x20] sm:$0xff] (!%p213_p2)   ;;  %vm273_vm1 = vcmask (!%p213_p2), 130048  }
   0x6   : > { %216 = sbr.rel (%p213_p2) target bundleno = 929 (0x3a1), region = 44  ;;  %1159 = vmatprep.subr.bf16.mxu0 (!%p213_p2), %v1285_v0  ;;  %1161 = vmatprep.mubr.msk.bf16.mxu0 (!%p213_p2), %vm1286_vm0, %v1285_v0  ;;  %s1288_s28 = smov (!%p213_p2), 107   ;;  %v1265_v6 = vld [vmem:[%s1460_s1 + $0x8] sm:$0xff] (!%p213_p2)   ;;  %v1267_v10 = vld [vmem:[%s1460_s1] sm:$0xff] (!%p213_p2)   ;;  %v1268_v12 = vld [vmem:[%s1460_s1 + $0x30] sm:$0xff] (!%p213_p2)   ;;  %vm778_vm2 = vcmask (!%p213_p2), 654336  }
   0x7   : > { %1135 = vmatprep.subr.bf16.mxu1 (!%p213_p2), %v1285_v0  ;;  %1137 = vmatprep.mubr.msk.bf16.mxu1 (!%p213_p2), %vm1286_vm0, %v1285_v0  ;;  %s1289_s29 = smov (!%p213_p2), 118   ;;  %s1290_s30 = smov (!%p213_p2), 119   ;;  %v1266_v8 = vld [vmem:[%s1460_s1 + $0x28] sm:$0xff] (!%p213_p2)   ;;  %v1269_v14 = vld [vmem:[%s1460_s1 + $0x10] sm:$0xff] (!%p213_p2)   ;;  %v1270_v16 = vld [vmem:[%s1460_s1 + $0x38] sm:$0xff] (!%p213_p2)   ;;  %v1296_v47 = vmov (!%p213_p2), 0  }
   0x8   : > { %s1291_s7 = smov (!%p213_p2), 99   ;;  %s1292_s8 = smov (!%p213_p2), 117   ;;  %v1271_v18 = vld [vmem:[%s1460_s1 + $0x18] sm:$0xff] (!%p213_p2)   ;;  %v1272_v19 = vld [vmem:[%s1460_s1 + $0x40] sm:$0xff] (!%p213_p2)   ;;  %v794_v45 = vld [vmem:[%s1464_s5 + $0x8] sm:$0xff] (!%p213_p2)  ;;  %1262 = vset.pattern.permute.xlu1 (!%p213_p2), %v1296_v47  ;;  %1261 = vset.pattern.permute.xlu0 (!%p213_p2), %v1296_v47 }
   0x9   : > { %s1293_s9 = smov (!%p213_p2), 98   ;;  %s1294_s10 = smov (!%p213_p2), 109   ;;  %v1100_v25 = vld [vmem:[%s1461_s2] ss:$0 sm:$0xff] (!%p213_p2)  ;;  %v962_v60 = vld [vmem:[%s1462_s3 + $0x8] sm:$0xff] (!%p213_p2) }
   0xa   : > { %s1295_s11 = smov (!%p213_p2), 97   ;;  %v793_v39 = vld [vmem:[%s1464_s5] sm:$0xff] (!%p213_p2) }
   0xb   : > { %v961_v61 = vld [vmem:[%s1462_s3] sm:$0xff] (!%p213_p2) }
   0xd   : > { %s1467_s22 = smov (!%p242_p3, %s1056_s22), 1 }
   0xe   : > { %s1107_s23 = sshll.u32 %s1467_s22, 3  ;;  %s1108_s24 = sshll.u32 %s1467_s22, 4 }
   0xf   : > { %s246_s26 = scalar_lea.vmem %s1459_s0, %s1107_s23 }
  0x10   : > { %v1263_v1 = vld [vmem:[%s246_s26] sm:$0xff]  }
  0x11   : > { %492 = vrot.lane.b32.xlu0 %v1263_v1, %s1287_s27  ;;  %549 = vrot.lane.b32.xlu1 %v1263_v1, %s1288_s28  ;;  %s251_s27 = scalar_lea.vmem %s1465_s6, %s1108_s24 }
  0x15   : > { %270 = vrot.lane.b32.xlu0 %v1263_v1, %s1289_s29  ;;  %323 = vrot.lane.b32.xlu1 %v1263_v1, %s1290_s30 }
  0x19   : > { %606 = vrot.lane.b32.xlu0 %v1263_v1, %s1291_s7  ;;  %378 = vrot.lane.b32.xlu1 %v1263_v1, %s1292_s8 }
  0x1d   : > { %663 = vrot.lane.b32.xlu0 %v1263_v1, %s1293_s9  ;;  %435 = vrot.lane.b32.xlu1 %v1263_v1, %s1294_s10 }
  0x21   : > { %720 = vrot.lane.b32.xlu0 %v1263_v1, %s1295_s11 }
  0x83   : > { %v493_v2 = vpop.permute.xlu0 %492  ;;  %v550_v4 = vpop.permute.xlu1 %549 }
  0x84   : > { %1160 = vmatpush3.bf16.msra.mxu0 %v493_v2  ;;  %v965_v2 = vld [vmem:[%s1463_s4] sm:$0xff] }
  0x85   : > { %1165 = vmatprep.subr.bf16.mxu0 %v1285_v0 }
  0x87   : > { %1162 = vmatmul.mubr.msk.bf16.vlgmr.msra.gmra.mrb[0].mxu0 %vm273_vm1, %v1264_v3  ;;  %v271_v5 = vpop.permute.xlu0 %270  ;;  %v324_v7 = vpop.permute.xlu1 %323 }
  0x88   : > { %1136 = vmatpush3.bf16.msra.mxu1 %v271_v5  ;;  %1166 = vmatpush3.bf16.msra.mxu0 %v550_v4 }
  0x89   : > { %1167 = vmatprep.mubr.msk.bf16.mxu0 %vm1286_vm0, %v1285_v0  ;;  %1141 = vmatprep.subr.bf16.mxu1 %v1285_v0 }
  0x8a   : > { %1171 = vmatprep.subr.bf16.mxu0 %v1285_v0 }
  0x8b   : > { %1138 = vmatmul.mubr.msk.bf16.vlgmr.msra.gmra.mrb[0].mxu1 %vm273_vm1, %v1265_v6  ;;  %v607_v9 = vpop.permute.xlu0 %606  ;;  %v379_v11 = vpop.permute.xlu1 %378  ;;  %v966_v6 = vld [vmem:[%s1463_s4 + $0x8] sm:$0xff] }
  0x8c   : > { %1142 = vmatpush3.bf16.msra.mxu1 %v324_v7  ;;  %1143 = vmatprep.mubr.msk.bf16.mxu1 %vm1286_vm0, %v1285_v0 }
  0x8d   : > { %1147 = vmatprep.subr.bf16.mxu1 %v1285_v0 }
  0x8f   : > { %v664_v13 = vpop.permute.xlu0 %663  ;;  %v436_v15 = vpop.permute.xlu1 %435 }
  0x93   : > { %1168 = vmatmul.mubr.msk.bf16.vlgmr.msra.gmra.mrb[0].mxu0 %vm273_vm1, %v1266_v8  ;;  %v721_v17 = vpop.permute.xlu0 %720 }
  0x94   : > { %1172 = vmatpush3.bf16.msra.mxu0 %v607_v9  ;;  %1173 = vmatprep.mubr.msk.bf16.mxu0 %vm1286_vm0, %v1285_v0 }
  0x95   : > { %1177 = vmatprep.subr.bf16.mxu0 %v1285_v0 }
  0x97   : > { %1144 = vmatmul.mubr.msk.bf16.vlgmr.msra.gmra.mrb[0].mxu1 %vm273_vm1, %v1267_v10 }
  0x98   : > { %1148 = vmatpush3.bf16.msra.mxu1 %v379_v11  ;;  %1149 = vmatprep.mubr.msk.bf16.mxu1 %vm1286_vm0, %v1285_v0 }
  0x99   : > { %1153 = vmatprep.subr.bf16.mxu1 %v1285_v0 }
  0x9f   : > { %1174 = vmatmul.mubr.msk.bf16.vlgmr.msra.gmra.mrb[0].mxu0 %vm273_vm1, %v1268_v12 }
  0xa0   : > { %1178 = vmatpush3.bf16.msra.mxu0 %v664_v13  ;;  %1179 = vmatprep.mubr.msk.bf16.mxu0 %vm1286_vm0, %v1285_v0 }
  0xa1   : > { %1183 = vmatprep.subr.bf16.mxu0 %v1285_v0 }
  0xa3   : > { %1150 = vmatmul.mubr.msk.bf16.vlgmr.msra.gmra.mrb[0].mxu1 %vm273_vm1, %v1269_v14 }
  0xa4   : > { %1154 = vmatpush3.bf16.msra.mxu1 %v436_v15  ;;  %1155 = vmatprep.mubr.msk.bf16.mxu1 %vm1286_vm0, %v1285_v0 }
  0xab   : > { %1180 = vmatmul.mubr.msk.bf16.vlgmr.msra.gmra.mrb[0].mxu0 %vm273_vm1, %v1270_v16 }
  0xac   : > { %1184 = vmatpush3.bf16.msra.mxu0 %v721_v17  ;;  %1185 = vmatprep.mubr.msk.bf16.mxu0 %vm1286_vm0, %v1285_v0 }
  0xaf   : > { %1156 = vmatmul.mubr.msk.bf16.vlgmr.msra.gmra.mrb[0].mxu1 %vm273_vm1, %v1271_v18 }
  0xb0   : > { %1193 = vmatprep.mubr.msk.f32.mxu1 %vm273_vm1, %v793_v39 }
  0xb7   : > { %1186 = vmatmul.mubr.msk.bf16.vlgmr.msra.gmra.mrb[0].mxu0 %vm273_vm1, %v1272_v19 }
 0x182   : > { %v475_v20 = vpop.f32.mrb[0].mxu1 }
 0x183   : > { %v1157_v21 = vpop.f32.mrb[1].mxu1 }
 0x184   : > { %v478_v22 = vpop.f32.mrb[2].mxu1 }
 0x185   : > { %v1158_v23 = vpop.f32.mrb[3].mxu1 }
 0x18a   : > { %v760_v24 = vpop.f32.mrb[0].mxu0 }
 0x18b   : > { %v1211_v26 = vadd.f32 %v760_v24, %v475_v20  ;;  %v1187_v27 = vpop.f32.mrb[1].mxu0 }
 0x18c   : > { %v763_v28 = vpop.f32.mrb[2].mxu0 }
 0x18d   : > { %v1412_v29 = vmul.f32 %v1211_v26, %v1100_v25  ;;  %v1212_v30 = vadd.f32 %v763_v28, %v478_v22  ;;  %v1188_v31 = vpop.f32.mrb[3].mxu0 }
 0x18f   : > { %v1414_v32 = vmul.f32 %v1212_v30, %v1100_v25  ;;  %v779_v33 = vsel %vm778_vm2, %v1412_v29, 0.0  ;;  %v785_v36 = vmul.f32 %v1412_v29, %v1412_v29 }
 0x190   : > { %780 = vadd.xlane.f32.xlu1 %v779_v33 }
 0x191   : > { %v782_v34 = vsel %vm778_vm2, %v1414_v32, 0.0  ;;  %v786_v35 = vmul.f32 %v1414_v32, %v1414_v32  ;;  %v787_v38 = vsel %vm778_vm2, %v785_v36, 0.0 }
 0x192   : > { %783 = vadd.xlane.f32.xlu0 %v782_v34 }
 0x193   : > { %v790_v37 = vsel %vm778_vm2, %v786_v35, 0.0 }
 0x194   : > { %791 = vadd.xlane.f32.xlu1 %v790_v37 }
 0x196   : > { %788 = vadd.xlane.f32.xlu0 %v787_v38 }
 0x21d   : > { %v781_v40 = vpop.xlane.xlu1 %780 }
 0x21f   : > { %v784_v41 = vpop.xlane.xlu0 %783 }
 0x220   : > { %v1203_v42 = vpack.c.bf16 %v784_v41, %v781_v40 }
 0x221   : > { %v792_v43 = vpop.xlane.xlu1 %791 }
 0x222   : > { %1204 = vmatprep.subr.bf16.mxu1 %v1203_v42 }
 0x223   : > { %1206 = vmatpush3.bf16.msra.mxu1 %v1203_v42  ;;  %v789_v44 = vpop.xlane.xlu0 %788 }
 0x224   : > { %v1207_v46 = vpack.c.bf16 %v792_v43, %v789_v44 }
 0x226   : > { %1194 = vmatmul.mubr.msk.f32.vlgmr.msra.gmra.mrb[4].mxu1 %vm273_vm1, %v794_v45  ;;  %1208 = vmatprep.subr.bf16.mxu1 %v1207_v46 }
 0x227   : > { %1210 = vmatpush3.bf16.msra.mxu1 %v1207_v46  ;;  %1200 = vmatprep.mubr.msk.f32.mxu1 %vm273_vm1, %v793_v39 }
 0x22a   : > { %1201 = vmatmul.mubr.msk.f32.vlgmr.msra.gmra.mrb[6].mxu1 %vm273_vm1, %v794_v45 }
 0x2f9   : > { %v1195_v48 = vpop.f32.mrb[4].mxu1 }
 0x2fa   : > { %v867_v49 = vpop.f32.mrb[5].mxu1  ;;  %v952_v50 = vmul.f32 %v1195_v48, %v1195_v48 }
 0x2fb   : > { %v951_v51 = vmul.f32 %v867_v49, %v867_v49 }
 0x2fd   : > { %v1202_v52 = vpop.f32.mrb[6].mxu1 }
 0x2fe   : > { %v954_v53 = vsub.f32 %v1202_v52, %v952_v50  ;;  %v942_v54 = vpop.f32.mrb[7].mxu1 }
 0x2ff   : > { %v953_v55 = vsub.f32 %v942_v54, %v951_v51 }
 0x300   : > { %v956_v56 = vmax.f32 %v954_v53, 0.0 }
 0x301   : > { %v955_v57 = vmax.f32 %v953_v55, 0.0 }
 0x302   : > { %v958_v58 = vadd.f32 1e-06, %v956_v56 }
 0x303   : > { %v957_v59 = vadd.f32 1e-06, %v955_v57 }
 0x304   : > { %1273 = vrsqrt.f32 %v958_v58 }
 0x305   : > { %1275 = vrsqrt.f32 %v957_v59 }
 0x30e   : > { %v1274_v62 = vpop.eup %1273 }
 0x30f   : > { %v1276_v63 = vpop.eup %1275  ;;  %v964_v0 = vmul.f32 %v1274_v62, %v962_v60 }
 0x310   : > { %v963_v1 = vmul.f32 %v1276_v63, %v961_v61 }
 0x311   : > { %978 = vperm.xlu1 %1262, %v964_v0   ;;  %v968_v3 = vmul.f32 %v1195_v48, %v964_v0 }
 0x312   : > { %973 = vperm.xlu0 %1261, %v963_v1   ;;  %v967_v4 = vmul.f32 %v963_v1, %v867_v49 }
 0x313   : > { %v970_v7 = vsub.f32 %v966_v6, %v968_v3 }
 0x314   : > { %v969_v5 = vsub.f32 %v965_v2, %v967_v4 }
 0x316   : > { %985 = vperm.xlu1 %1262, %v969_v5  }
 0x31a   : > { %990 = vperm.xlu1 %1262, %v970_v7  }
 0x390   : > { %v979_v8 = vpop.permute.xlu1 %978 }
 0x391   : > { %v974_v9 = vpop.permute.xlu0 %973  ;;  %v982_v13 = vmul.f32 %v979_v8, %v1414_v32 }
 0x392   : > { %v981_v10 = vmul.f32 %v974_v9, %v1412_v29 }
 0x395   : > { %v986_v11 = vpop.permute.xlu1 %985 }
 0x396   : > { %v993_v12 = vadd.f32 %v986_v11, %v981_v10 }
 0x398   : > { %v995_v14 = vmul.f32 0.01, %v993_v12 }
 0x399   : > { %v991_v15 = vpop.permute.xlu1 %990 }
 0x39a   : > { %v997_v16 = vmax.f32 %v993_v12, %v995_v14  ;;  %v994_v17 = vadd.f32 %v991_v15, %v982_v13 }
 0x39c   : > { %999 = vst.msk [vmem:[%s251_s27] sm:$0xff] %vm778_vm2, %v997_v16  ;;  %v996_v18 = vmul.f32 0.01, %v994_v17 }
 0x39e   : > { %v998_v19 = vmax.f32 %v994_v17, %v996_v18 }
 0x3a0   : > { %1000 = vst.msk [vmem:[%s251_s27 + $0x8] sm:$0xff] %vm778_vm2, %v998_v19 }
 0x3a1 PF: > { %s16_s21 = sadd.s32 1, %s1283_s21  }
 0x3a2   : > { %p13_p4 = scmp.ge.s32.totalorder %s16_s21, 4  }
 0x3a4   :  { %15 = sbr.rel (!%p13_p4) target bundleno = 1 (0x1), region = 82 }

// kernel: tile.53
= control target key start
LH: loop header
LB: loop body
LE: loop exit
PB: predicated region body
PF: predicated region fallthrough
CT: control target
= control target key end

     0   :  { %s22_s0 = inlined_call_operand.vmem [shape: f32[6], index: 0, kind: input, shape index: {}]   ;;  %s23_s1 = inlined_call_operand.vmem [shape: f32[4,6], index: 1, kind: output, shape index: {}]  }
   0x1   :  { %v4_v0 = vld [vmem:[%s22_s0] ss:$0 sm:$0xff] }
   0x2   :  { %5 = vst [vmem:[%s23_s1] sm:$0xf] %v4_v0 }

// kernel: tile.54
= control target key start
LH: loop header
LB: loop body
LE: loop exit
PB: predicated region body
PF: predicated region fallthrough
CT: control target
= control target key end

     0   :  { %vm7_vm0 = vcmask 48128   ;;  %s37_s8 = smov 6   ;;  %s38_s9 = smov 12   ;;  %vm13_vm1 = vcmask 195728   ;;  %vm19_vm2 = vcmask 146528   ;;  %vm25_vm3 = vcmask 97328   ;;  %s55_s0 = inlined_call_operand.vmem [shape: f32[4,6], index: 0, kind: input, shape index: {}]   ;;  %s56_s1 = inlined_call_operand.vmem [shape: f32[1,24], index: 1, kind: output, shape index: {}]  }
   0x1   :  { %v4_v0 = vld [vmem:[%s55_s0] sm:$0xf]  ;;  %s36_s0 = smov 18  }
   0x2   :  { %5 = vst [vmem:[#allocation1] sm:$0xf] %v4_v0 }
   0x9   :  { %v10_v1 = vld [vmem:[#allocation1 + $0x3] sm:$0x1]   ;;  %v22_v2 = vld [vmem:[#allocation1 + $0x1] sm:$0x1]   ;;  %v6_v3 = vld [vmem:[#allocation1] sm:$0x1]  }
   0xa   :  { %11 = vrot.lane.b32.xlu0 %v10_v1, %s36_s0  ;;  %23 = vrot.lane.b32.xlu1 %v22_v2, %s37_s8  ;;  %v16_v4 = vld [vmem:[#allocation1 + $0x2] sm:$0x1]   ;;  %8 = vst.msk [vmem:[#allocation0] sm:$0x1] %vm7_vm0, %v6_v3  }
   0xe   :  { %17 = vrot.lane.b32.xlu0 %v16_v4, %s38_s9 }
  0x7c   :  { %v12_v5 = vpop.permute.xlu0 %11   ;;  %v24_v6 = vpop.permute.xlu1 %23  }
  0x7d   :  { %14 = vst.msk [vmem:[#allocation0] sm:$0x1] %vm13_vm1, %v12_v5  }
  0x80   :  { %v18_v7 = vpop.permute.xlu0 %17  }
  0x81   :  { %20 = vst.msk [vmem:[#allocation0] sm:$0x1] %vm19_vm2, %v18_v7  }
  0x82   :  { %26 = vst.msk [vmem:[#allocation0] sm:$0x1] %vm25_vm3, %v24_v6  }
  0x89   :  { %v30_v8 = vld [vmem:[#allocation0] sm:$0x1] }
  0x8a   :  { %32 = vst [vmem:[%s56_s1] sm:$0x1] %v30_v8 }

// kernel: featurenet_forward.18
= control target key start
LH: loop header
LB: loop body
LE: loop exit
PB: predicated region body
PF: predicated region fallthrough
CT: control target
= control target key end

     0   :  { %s1229_s21 = smov 0   ;;  %s1397_s0 = inlined_call_operand.vmem [shape: bf16[2,400,16], index: 0, kind: input, shape index: {}]   ;;  %s1398_s1 = inlined_call_operand.vmem [shape: bf16[1,32,400], index: 1, kind: input, shape index: {}]   ;;  %s1399_s2 = inlined_call_operand.vmem [shape: f32[1,16], index: 2, kind: input, shape index: {}]   ;;  %s1400_s3 = inlined_call_operand.vmem [shape: f32[32,1], index: 3, kind: input, shape index: {}]   ;;  %s1401_s4 = inlined_call_operand.vmem [shape: f32[32,1], index: 4, kind: input, shape index: {}]   ;;  %s1402_s5 = inlined_call_operand.vmem [shape: f32[32,32], index: 5, kind: input, shape index: {}]   ;;  %s1403_s6 = inlined_call_operand.vmem [shape: f32[2,32,16], index: 6, kind: output, shape index: {}]  }
   0x1 LB: > { %s985_s22 = sadd.s32 4294967295, %s1191_s21   ;;  %p989_p0 = scmp.ge.s32.totalorder %s1191_s21, 1  ;;  %s1191_s21 = sphi %s1229_s21, %s16_s21  }
   0x2   : > { %p212_p1 = scmp.lt.s32.totalorder %s1191_s21, 3 }
   0x4   : > { %p213_p2 = pnand %p989_p0, %p212_p1 }
   0x5   : > { %p242_p3 = scmp.lt.s32.totalorder (!%p213_p2), %s985_s22, 1  ;;  %v1193_v0 = vmov (!%p213_p2), 0   ;;  %v1166_v1 = vld [vmem:[%s1398_s1 + $0x4] ss:$16 sps:$4 sm:$0xff] (!%p213_p2)   ;;  %vm499_vm0 = vcmask (!%p213_p2), 130048   ;;  %vm647_vm1 = vcmask (!%p213_p2), 261120  }
   0x6   : > { %216 = sbr.rel (%p213_p2) target bundleno = 823 (0x337), region = 44  ;;  %555 = vmatprep.subr.bf16.mxu1 (!%p213_p2), %v1193_v0  ;;  %1139 = vset.pattern.permute.xlu1 (!%p213_p2), %v1193_v0  ;;  %v1170_v2 = vld [vmem:[%s1398_s1 + $0xc] ss:$16 sps:$4 sm:$0xff] (!%p213_p2)   ;;  %v1164_v27 = vld [vmem:[%s1398_s1] ss:$16 sps:$4 sm:$0xff] (!%p213_p2)  }
   0x7   : > { %1138 = vset.pattern.permute.xlu0 (!%p213_p2), %v1193_v0  ;;  %538 = vmatprep.mubr.bf16.mxu0 (!%p213_p2), %v1166_v1  ;;  %v1171_v29 = vld [vmem:[%s1398_s1 + $0x24] ss:$16 sps:$4 sm:$0xff] (!%p213_p2)   ;;  %v1168_v30 = vld [vmem:[%s1398_s1 + $0x8] ss:$16 sps:$4 sm:$0xff] (!%p213_p2)   ;;  %v1174_v31 = vld [vmem:[%s1398_s1 + $0x2c] ss:$16 sps:$4 sm:$0xff] (!%p213_p2)  }
   0x8   : > { %1026 = vmatprep.mubr.msk.bf16.mxu1 (!%p213_p2), %vm499_vm0, %v1170_v2  ;;  %v1173_v32 = vld [vmem:[%s1398_s1 + $0x20] ss:$16 sps:$4 sm:$0xff] (!%p213_p2)   ;;  %v1176_v33 = vld [vmem:[%s1398_s1 + $0x28] ss:$16 sps:$4 sm:$0xff] (!%p213_p2)  }
   0x9   : > { %v1028_v40 = vld [vmem:[%s1399_s2] ss:$0 sm:$0xff] (!%p213_p2) }
   0xd   : > { %s1405_s22 = smov (!%p242_p3, %s985_s22), 1 }
   0xe   : > { %s1128_s27 = smul.u32 200, %s1405_s22  ;;  %s1039_s25 = sshll.u32 %s1405_s22, 5 }
   0xf   : > { %s251_s28 = scalar_lea.vmem %s1403_s6, %s1039_s25 }
  0x10   : > { %s1253_s30 = scalar_lea.vmem %s1397_s0, %s1128_s27 }
  0x11   : > { %v1140_v3 = vld [vmem:[%s1253_s30 + $0x40] sm:$0xff]   ;;  %v1143_v6 = vld [vmem:[%s1253_s30 + $0x48] sm:$0xff]   ;;  %v1146_v9 = vld [vmem:[%s1253_s30 + $0x50] sm:$0xff]  }
  0x12   : > { %v1141_v4 = vld [vmem:[%s1253_s30 + $0x80] sm:$0xff]   ;;  %1040 = vmatprep.subr.bf16.mxu0 %v1140_v3  ;;  %v1144_v7 = vld [vmem:[%s1253_s30 + $0x88] sm:$0xff]   ;;  %v1147_v10 = vld [vmem:[%s1253_s30 + $0x90] sm:$0xff]  }
  0x13   : > { %v1142_v5 = vld [vmem:[%s1253_s30] sm:$0xff]   ;;  %556 = vmatpush1.bf16.msra.mxu1 %v1141_v4  ;;  %v1145_v8 = vld [vmem:[%s1253_s30 + $0x8] sm:$0xff]   ;;  %v1148_v11 = vld [vmem:[%s1253_s30 + $0x10] sm:$0xff]  }
  0x14   : > { %1041 = vmatpush3.bf16.msra.mxu0 %v1142_v5  ;;  %557 = vmatprep.subr.bf16.mxu1 %v1193_v0  ;;  %v1149_v12 = vld [vmem:[%s1253_s30 + $0x58] sm:$0xff]   ;;  %v1152_v15 = vld [vmem:[%s1253_s30 + $0x60] sm:$0xff]   ;;  %v1155_v18 = vld [vmem:[%s1253_s30 + $0x68] sm:$0xff]  }
  0x15   : > { %1042 = vmatprep.subr.bf16.mxu0 %v1143_v6  ;;  %v1150_v13 = vld [vmem:[%s1253_s30 + $0x98] sm:$0xff]   ;;  %v1153_v16 = vld [vmem:[%s1253_s30 + $0xa0] sm:$0xff]   ;;  %v1156_v19 = vld [vmem:[%s1253_s30 + $0xa8] sm:$0xff]  }
  0x16   : > { %v1151_v14 = vld [vmem:[%s1253_s30 + $0x18] sm:$0xff]   ;;  %v1154_v17 = vld [vmem:[%s1253_s30 + $0x20] sm:$0xff]   ;;  %v1157_v20 = vld [vmem:[%s1253_s30 + $0x28] sm:$0xff]  }
  0x17   : > { %558 = vmatpush1.bf16.msra.mxu1 %v1144_v7  ;;  %v1158_v21 = vld [vmem:[%s1253_s30 + $0x70] sm:$0xff]   ;;  %v1161_v24 = vld [vmem:[%s1253_s30 + $0x78] sm:$0xff]   ;;  %v1167_v28 = vld [vmem:[%s1253_s30 + $0xc0] sm:$0xff]  }
  0x18   : > { %1043 = vmatpush3.bf16.msra.mxu0 %v1145_v8  ;;  %559 = vmatprep.subr.bf16.mxu1 %v1193_v0  ;;  %v1159_v22 = vld [vmem:[%s1253_s30 + $0xb0] sm:$0xff]   ;;  %v1162_v25 = vld [vmem:[%s1253_s30 + $0xb8] sm:$0xff]  }
  0x19   : > { %1044 = vmatprep.subr.bf16.mxu0 %v1146_v9  ;;  %v1160_v23 = vld [vmem:[%s1253_s30 + $0x30] sm:$0xff]   ;;  %v1163_v26 = vld [vmem:[%s1253_s30 + $0x38] sm:$0xff]  }
  0x1b   : > { %560 = vmatpush1.bf16.msra.mxu1 %v1147_v10 }
  0x1c   : > { %1045 = vmatpush3.bf16.msra.mxu0 %v1148_v11  ;;  %561 = vmatprep.subr.bf16.mxu1 %v1193_v0  ;;  %v643_v11 = vld [vmem:[%s1402_s5] sm:$0xff] }
  0x1d   : > { %1046 = vmatprep.subr.bf16.mxu0 %v1149_v12 }
  0x1f   : > { %562 = vmatpush1.bf16.msra.mxu1 %v1150_v13 }
  0x20   : > { %1047 = vmatpush3.bf16.msra.mxu0 %v1151_v14  ;;  %563 = vmatprep.subr.bf16.mxu1 %v1193_v0 }
  0x21   : > { %1048 = vmatprep.subr.bf16.mxu0 %v1152_v15 }
  0x23   : > { %564 = vmatpush1.bf16.msra.mxu1 %v1153_v16 }
  0x24   : > { %1049 = vmatpush3.bf16.msra.mxu0 %v1154_v17  ;;  %565 = vmatprep.subr.bf16.mxu1 %v1193_v0 }
  0x25   : > { %1050 = vmatprep.subr.bf16.mxu0 %v1155_v18 }
  0x27   : > { %566 = vmatpush1.bf16.msra.mxu1 %v1156_v19 }
  0x28   : > { %1051 = vmatpush3.bf16.msra.mxu0 %v1157_v20  ;;  %567 = vmatprep.subr.bf16.mxu1 %v1193_v0 }
  0x29   : > { %1052 = vmatprep.subr.bf16.mxu0 %v1158_v21 }
  0x2b   : > { %568 = vmatpush1.bf16.msra.mxu1 %v1159_v22 }
  0x2c   : > { %1053 = vmatpush3.bf16.msra.mxu0 %v1160_v23  ;;  %569 = vmatprep.subr.bf16.mxu1 %v1193_v0  ;;  %v644_v23 = vld [vmem:[%s1402_s5 + $0x8] sm:$0xff] }
  0x2d   : > { %1054 = vmatprep.subr.bf16.mxu0 %v1161_v24 }
  0x2f   : > { %570 = vmatpush1.bf16.msra.mxu1 %v1162_v25  ;;  %v645_v25 = vld [vmem:[%s1402_s5 + $0x10] sm:$0xff] }
  0x30   : > { %1055 = vmatpush3.bf16.msra.mxu0 %v1163_v26  ;;  %571 = vmatprep.subr.bf16.mxu1 %v1193_v0  ;;  %v646_v26 = vld [vmem:[%s1402_s5 + $0x18] sm:$0xff] }
  0x33   : > { %539 = vmatmul.mubr.bf16.vlgmr.msra.gmra.mrb[0].mxu0 %v1164_v27  ;;  %572 = vmatpush1.bf16.msra.mxu1 %v1167_v28 }
  0x34   : > { %546 = vmatprep.mubr.bf16.mxu0 %v1171_v29 }
  0x36   : > { %588 = vmatmul.mubr.bf16.vlgmr.msra.gmra.mrb[0].mxu1 %v1168_v30 }
  0x37   : > { %1027 = vmatprep.mubr.msk.bf16.mxu1 %vm499_vm0, %v1174_v31 }
  0x3b   : > { %547 = vmatmul.mubr.bf16.gmra.mrb[4].mxu0 %v1173_v32 }
  0x3c   : > { %1092 = vmatprep.mubr.msk.f32.mxu0 %vm647_vm1, %v643_v11 }
  0x3e   : > { %596 = vmatmul.mubr.bf16.gmra.mrb[4].mxu1 %v1176_v33 }
  0x3f   : > { %1106 = vmatprep.mubr.msk.f32.mxu1 %vm647_vm1, %v643_v11  ;;  %v860_v11 = vld [vmem:[%s1401_s4 + $0x10] sm:$0xff] }
 0x106   : > { %v1056_v34 = vpop.f32.mrb[0].mxu0 }
 0x107   : > { %v1057_v35 = vpop.f32.mrb[1].mxu0 }
 0x108   : > { %v1058_v36 = vadd.f32 %v1057_v35, %v1056_v34  ;;  %v1059_v37 = vpop.f32.mrb[2].mxu0 }
 0x109   : > { %v1060_v38 = vpop.f32.mrb[3].mxu0  ;;  %v589_v39 = vpop.f32.mrb[0].mxu1 }
 0x10a   : > { %v1061_v41 = vadd.f32 %v1060_v38, %v1059_v37  ;;  %v590_v42 = vadd.f32 %v1058_v36, %v589_v39  ;;  %v591_v43 = vpop.f32.mrb[1].mxu1 }
 0x10b   : > { %v592_v44 = vpop.f32.mrb[2].mxu1 }
 0x10c   : > { %v1310_v45 = vmul.f32 %v1028_v40, %v590_v42  ;;  %v593_v46 = vadd.f32 %v1061_v41, %v592_v44  ;;  %v594_v47 = vpop.f32.mrb[3].mxu1 }
 0x10e   : > { %v1312_v48 = vmul.f32 %v1028_v40, %v593_v46  ;;  %v1062_v49 = vpop.f32.mrb[4].mxu0  ;;  %v615_v50 = vsel %vm499_vm0, %v1310_v45, 0.0  ;;  %v627_v51 = vmul.f32 %v1310_v45, %v1310_v45 }
 0x10f   : > { %v1063_v52 = vpop.f32.mrb[5].mxu0  ;;  %616 = vadd.xlane.f32.xlu0 %v615_v50 }
 0x110   : > { %v1064_v53 = vadd.f32 %v1063_v52, %v1062_v49  ;;  %v1065_v54 = vpop.f32.mrb[6].mxu0  ;;  %v631_v55 = vsel %vm499_vm0, %v627_v51, 0.0  ;;  %v628_v56 = vmul.f32 %v1312_v48, %v1312_v48  ;;  %v618_v62 = vsel %vm499_vm0, %v1312_v48, 0.0 }
 0x111   : > { %v1066_v57 = vpop.f32.mrb[7].mxu0  ;;  %v597_v58 = vpop.f32.mrb[4].mxu1  ;;  %632 = vadd.xlane.f32.xlu1 %v631_v55 }
 0x112   : > { %v1067_v59 = vadd.f32 %v1066_v57, %v1065_v54  ;;  %v598_v60 = vadd.f32 %v1064_v53, %v597_v58  ;;  %v599_v61 = vpop.f32.mrb[5].mxu1  ;;  %v634_v3 = vsel %vm499_vm0, %v628_v56, 0.0  ;;  %v851_v53 = vld [vmem:[%s1400_s3 + $0x8] sm:$0xff]  ;;  %v850_v54 = vld [vmem:[%s1400_s3] sm:$0xff] }
 0x113   : > { %v600_v63 = vpop.f32.mrb[6].mxu1  ;;  %619 = vadd.xlane.f32.xlu0 %v618_v62  ;;  %v852_v61 = vld [vmem:[%s1400_s3 + $0x10] sm:$0xff] }
 0x114   : > { %v1323_v0 = vmul.f32 %v1028_v40, %v598_v60  ;;  %v601_v1 = vadd.f32 %v1067_v59, %v600_v63  ;;  %v602_v2 = vpop.f32.mrb[7].mxu1  ;;  %v853_v59 = vld [vmem:[%s1400_s3 + $0x18] sm:$0xff] }
 0x115   : > { %635 = vadd.xlane.f32.xlu1 %v634_v3  ;;  %v859_v3 = vld [vmem:[%s1401_s4 + $0x8] sm:$0xff] }
 0x116   : > { %v1326_v4 = vmul.f32 %v1028_v40, %v601_v1  ;;  %v621_v5 = vsel %vm499_vm0, %v1323_v0, 0.0  ;;  %v629_v6 = vmul.f32 %v1323_v0, %v1323_v0 }
 0x117   : > { %622 = vadd.xlane.f32.xlu0 %v621_v5 }
 0x118   : > { %v624_v7 = vsel %vm499_vm0, %v1326_v4, 0.0  ;;  %v630_v8 = vmul.f32 %v1326_v4, %v1326_v4  ;;  %v637_v9 = vsel %vm499_vm0, %v629_v6, 0.0 }
 0x119   : > { %625 = vadd.xlane.f32.xlu1 %v624_v7 }
 0x11a   : > { %v640_v10 = vsel %vm499_vm0, %v630_v8, 0.0 }
 0x11b   : > { %638 = vadd.xlane.f32.xlu0 %v637_v9  ;;  %v858_v9 = vld [vmem:[%s1401_s4] sm:$0xff] }
 0x11d   : > { %641 = vadd.xlane.f32.xlu1 %v640_v10 }
 0x19c   : > { %v617_v12 = vpop.xlane.xlu0 %616 }
 0x19e   : > { %v633_v13 = vpop.xlane.xlu1 %632 }
 0x1a0   : > { %v620_v14 = vpop.xlane.xlu0 %619 }
 0x1a1   : > { %v1112_v15 = vpack.c.bf16 %v620_v14, %v617_v12 }
 0x1a2   : > { %v636_v16 = vpop.xlane.xlu1 %635 }
 0x1a3   : > { %v1120_v17 = vpack.c.bf16 %v636_v16, %v633_v13  ;;  %1113 = vmatprep.subr.bf16.mxu0 %v1112_v15  ;;  %v861_v13 = vld [vmem:[%s1401_s4 + $0x18] sm:$0xff] }
 0x1a4   : > { %1115 = vmatpush3.bf16.msra.mxu0 %v1112_v15  ;;  %v623_v18 = vpop.xlane.xlu0 %622 }
 0x1a5   : > { %1121 = vmatprep.subr.bf16.mxu1 %v1120_v17 }
 0x1a6   : > { %1123 = vmatpush3.bf16.msra.mxu1 %v1120_v17  ;;  %v626_v19 = vpop.xlane.xlu1 %625 }
 0x1a7   : > { %v1116_v20 = vpack.c.bf16 %v626_v19, %v623_v18 }
 0x1a8   : > { %v639_v21 = vpop.xlane.xlu0 %638 }
 0x1a9   : > { %1117 = vmatprep.subr.bf16.mxu0 %v1116_v20 }
 0x1aa   : > { %v642_v22 = vpop.xlane.xlu1 %641  ;;  %1119 = vmatpush3.bf16.msra.mxu0 %v1116_v20 }
 0x1ab   : > { %v1124_v24 = vpack.c.bf16 %v642_v22, %v639_v21 }
 0x1ad   : > { %1125 = vmatprep.subr.bf16.mxu1 %v1124_v24  ;;  %1093 = vmatmul.mubr.msk.f32.vlgmr.msra.gmra.mrb[8].mxu0 %vm647_vm1, %v644_v23 }
 0x1ae   : > { %1127 = vmatpush3.bf16.msra.mxu1 %v1124_v24  ;;  %1095 = vmatprep.mubr.msk.f32.mxu0 %vm647_vm1, %v645_v25 }
 0x1b1   : > { %1107 = vmatmul.mubr.msk.f32.vlgmr.msra.gmra.mrb[8].mxu1 %vm647_vm1, %v644_v23  ;;  %1096 = vmatmul.mubr.msk.f32.gmra.mrb[10].mxu0 %vm647_vm1, %v646_v26 }
 0x1b2   : > { %1109 = vmatprep.mubr.msk.f32.mxu1 %vm647_vm1, %v645_v25 }
 0x1b5   : > { %1110 = vmatmul.mubr.msk.f32.gmra.mrb[10].mxu1 %vm647_vm1, %v646_v26 }
 0x280   : > { %v1094_v27 = vpop.f32.mrb[8].mxu0 }
 0x281   : > { %v831_v28 = vmul.f32 %v1094_v27, %v1094_v27  ;;  %v726_v29 = vpop.f32.mrb[9].mxu0 }
 0x282   : > { %v830_v30 = vmul.f32 %v726_v29, %v726_v29 }
 0x284   : > { %v1108_v31 = vpop.f32.mrb[8].mxu1  ;;  %v1097_v32 = vpop.f32.mrb[10].mxu0 }
 0x285   : > { %v835_v33 = vsub.f32 %v1108_v31, %v831_v28  ;;  %v811_v34 = vpop.f32.mrb[9].mxu1  ;;  %v833_v35 = vmul.f32 %v1097_v32, %v1097_v32  ;;  %v736_v36 = vpop.f32.mrb[11].mxu0 }
 0x286   : > { %v834_v37 = vsub.f32 %v811_v34, %v830_v30  ;;  %v832_v38 = vmul.f32 %v736_v36, %v736_v36 }
 0x287   : > { %v839_v39 = vmax.f32 %v835_v33, 0.0 }
 0x288   : > { %v838_v40 = vmax.f32 %v834_v37, 0.0  ;;  %v1111_v41 = vpop.f32.mrb[10].mxu1 }
 0x289   : > { %v843_v42 = vadd.f32 1e-06, %v839_v39  ;;  %v837_v43 = vsub.f32 %v1111_v41, %v833_v35  ;;  %v821_v44 = vpop.f32.mrb[11].mxu1 }
 0x28a   : > { %v842_v46 = vadd.f32 1e-06, %v838_v40  ;;  %v836_v47 = vsub.f32 %v821_v44, %v832_v38 }
 0x28b   : > { %1177 = vrsqrt.f32 %v843_v42  ;;  %v841_v49 = vmax.f32 %v837_v43, 0.0 }
 0x28c   : > { %1179 = vrsqrt.f32 %v842_v46  ;;  %v840_v50 = vmax.f32 %v836_v47, 0.0 }
 0x28d   : > { %v845_v51 = vadd.f32 1e-06, %v841_v49 }
 0x28e   : > { %v844_v52 = vadd.f32 1e-06, %v840_v50 }
 0x28f   : > { %1181 = vrsqrt.f32 %v845_v51 }
 0x290   : > { %1183 = vrsqrt.f32 %v844_v52 }
 0x295   : > { %v1178_v55 = vpop.eup %1177 }
 0x296   : > { %v1180_v56 = vpop.eup %1179  ;;  %v855_v57 = vmul.f32 %v1178_v55, %v851_v53 }
 0x297   : > { %v854_v58 = vmul.f32 %v1180_v56, %v850_v54 }
 0x298   : > { %877 = vperm.xlu1 %1139, %v855_v57   ;;  %v863_v60 = vmul.f32 %v1094_v27, %v855_v57 }
 0x299   : > { %v1182_v62 = vpop.eup %1181  ;;  %872 = vperm.xlu0 %1138, %v854_v58   ;;  %v862_v63 = vmul.f32 %v854_v58, %v726_v29 }
 0x29a   : > { %v1184_v1 = vpop.eup %1183  ;;  %v857_v2 = vmul.f32 %v1182_v62, %v853_v59  ;;  %v867_v8 = vsub.f32 %v859_v3, %v863_v60 }
 0x29b   : > { %v856_v5 = vmul.f32 %v1184_v1, %v852_v61  ;;  %v866_v10 = vsub.f32 %v858_v9, %v862_v63 }
 0x29c   : > { %887 = vperm.xlu1 %1139, %v857_v2   ;;  %v865_v6 = vmul.f32 %v1097_v32, %v857_v2 }
 0x29d   : > { %v864_v7 = vmul.f32 %v856_v5, %v736_v36 }
 0x29e   : > { %v869_v14 = vsub.f32 %v861_v13, %v865_v6 }
 0x29f   : > { %v868_v12 = vsub.f32 %v860_v11, %v864_v7 }
 0x2a0   : > { %901 = vperm.xlu1 %1139, %v867_v8  }
 0x2a4   : > { %882 = vperm.xlu1 %1139, %v856_v5  }
 0x2a8   : > { %896 = vperm.xlu1 %1139, %v866_v10  }
 0x2ac   : > { %906 = vperm.xlu1 %1139, %v868_v12  }
 0x2b0   : > { %911 = vperm.xlu1 %1139, %v869_v14  }
 0x317   : > { %v878_v15 = vpop.permute.xlu1 %877 }
 0x318   : > { %v891_v17 = vmul.f32 %v878_v15, %v1312_v48  ;;  %v873_v21 = vpop.permute.xlu0 %872 }
 0x319   : > { %v890_v24 = vmul.f32 %v873_v21, %v1310_v45 }
 0x31b   : > { %v888_v16 = vpop.permute.xlu1 %887 }
 0x31c   : > { %v893_v31 = vmul.f32 %v888_v16, %v1326_v4 }
 0x31f   : > { %v902_v18 = vpop.permute.xlu1 %901 }
 0x320   : > { %v915_v19 = vadd.f32 %v902_v18, %v891_v17 }
 0x322   : > { %v919_v20 = vmul.f32 0.01, %v915_v19 }
 0x323   : > { %v883_v22 = vpop.permute.xlu1 %882 }
 0x324   : > { %v923_v23 = vmax.f32 %v915_v19, %v919_v20  ;;  %v892_v27 = vmul.f32 %v883_v22, %v1323_v0 }
 0x326   : > { %927 = vst.msk [vmem:[%s251_s28 + $0x8] sm:$0xff] %vm499_vm0, %v923_v23 }
 0x327   : > { %v897_v25 = vpop.permute.xlu1 %896 }
 0x328   : > { %v914_v26 = vadd.f32 %v897_v25, %v890_v24 }
 0x32a   : > { %v918_v48 = vmul.f32 0.01, %v914_v26 }
 0x32b   : > { %v907_v28 = vpop.permute.xlu1 %906 }
 0x32c   : > { %v922_v29 = vmax.f32 %v914_v26, %v918_v48  ;;  %v916_v30 = vadd.f32 %v907_v28, %v892_v27 }
 0x32e   : > { %926 = vst.msk [vmem:[%s251_s28] sm:$0xff] %vm499_vm0, %v922_v29  ;;  %v920_v32 = vmul.f32 0.01, %v916_v30 }
 0x32f   : > { %v912_v33 = vpop.permute.xlu1 %911 }
 0x330   : > { %v924_v34 = vmax.f32 %v916_v30, %v920_v32  ;;  %v917_v35 = vadd.f32 %v912_v33, %v893_v31 }
 0x332   : > { %928 = vst.msk [vmem:[%s251_s28 + $0x10] sm:$0xff] %vm499_vm0, %v924_v34  ;;  %v921_v45 = vmul.f32 0.01, %v917_v35 }
 0x334   : > { %v925_v36 = vmax.f32 %v917_v35, %v921_v45 }
 0x336   : > { %929 = vst.msk [vmem:[%s251_s28 + $0x18] sm:$0xff] %vm499_vm0, %v925_v36 }
 0x337 PF: > { %s16_s21 = sadd.s32 1, %s1191_s21  }
 0x338   : > { %p13_p4 = scmp.ge.s32.totalorder %s16_s21, 4  }
 0x33a   :  { %15 = sbr.rel (!%p13_p4) target bundleno = 1 (0x1), region = 74 }

// kernel: featurenet_forward.21
= control target key start
LH: loop header
LB: loop body
LE: loop exit
PB: predicated region body
PF: predicated region fallthrough
CT: control target
= control target key end

     0   :  { %s417_s12 = smov 0   ;;  %s454_s0 = inlined_call_operand.vmem [shape: bf16[2,32,16], index: 0, kind: input, shape index: {}]   ;;  %s455_s1 = inlined_call_operand.vmem [shape: bf16[1,32,32], index: 1, kind: input, shape index: {}]   ;;  %s456_s2 = inlined_call_operand.vmem [shape: f32[32,1], index: 2, kind: input, shape index: {}]   ;;  %s457_s3 = inlined_call_operand.vmem [shape: f32[2,32,16], index: 3, kind: output, shape index: {}]  }
   0x1 LB: > { %s342_s13 = sadd.s32 4294967295, %s394_s12   ;;  %p346_p0 = scmp.ge.s32.totalorder %s394_s12, 1  ;;  %s394_s12 = sphi %s417_s12, %s13_s12  }
   0x2   : > { %p137_p1 = scmp.lt.s32.totalorder %s394_s12, 3 }
   0x4   : > { %p138_p2 = pnand %p346_p0, %p137_p1 }
   0x5   : > { %p161_p3 = scmp.lt.s32.totalorder (!%p138_p2), %s342_s13, 1  ;;  %v386_v0 = vld [vmem:[%s455_s1] sm:$0xff] (!%p138_p2)   ;;  %vm226_vm0 = vcmask (!%p138_p2), 261120   ;;  %v182_v1 = vld [vmem:[%s456_s2 + $0x10] sm:$0xff] (!%p138_p2)  ;;  %v396_v3 = vmov (!%p138_p2), 0   ;;  %v183_v4 = vld [vmem:[%s456_s2 + $0x18] sm:$0xff] (!%p138_p2) }
   0x6   : > { %141 = sbr.rel (%p138_p2) target bundleno = 243 (0xf3), region = 32  ;;  %369 = vmatprep.mubr.msk.bf16.mxu0 (!%p138_p2), %vm226_vm0, %v386_v0  ;;  %v180_v2 = vld [vmem:[%s456_s2] sm:$0xff] (!%p138_p2)  ;;  %383 = vset.pattern.permute.xlu1 (!%p138_p2), %v396_v3  ;;  %v181_v5 = vld [vmem:[%s456_s2 + $0x8] sm:$0xff] (!%p138_p2)  ;;  %vm282_vm1 = vcmask (!%p138_p2), 130048  }
   0x7   : > { %382 = vset.pattern.permute.xlu0 (!%p138_p2), %v396_v3  ;;  %196 = vperm.xlu1 (!%p138_p2), %383, %v182_v1   ;;  %v387_v8 = vld [vmem:[%s455_s1 + $0x8] sm:$0xff] (!%p138_p2)  }
   0x8   : > { %186 = vperm.xlu0 (!%p138_p2), %382, %v180_v2  }
   0xb   : > { %201 = vperm.xlu1 (!%p138_p2), %383, %v183_v4  }
   0xc   : > { %191 = vperm.xlu0 (!%p138_p2), %382, %v181_v5  }
   0xd   : > { %s459_s13 = smov (!%p161_p3, %s342_s13), 1 }
   0xe   : > { %s359_s20 = sshll.u32 %s459_s13, 4  ;;  %s360_s30 = sshll.u32 %s459_s13, 5 }
   0xf   : > { %s165_s23 = scalar_lea.vmem %s454_s0, %s359_s20  ;;  %s170_s6 = scalar_lea.vmem %s457_s3, %s360_s30 }
  0x10   : > { %v384_v6 = vld [vmem:[%s165_s23] sm:$0xff]   ;;  %v385_v7 = vld [vmem:[%s165_s23 + $0x8] sm:$0xff]  }
  0x11   : > { %365 = vmatprep.subr.bf16.mxu0 %v384_v6 }
  0x12   : > { %366 = vmatpush3.bf16.msra.mxu0 %v384_v6 }
  0x13   : > { %367 = vmatprep.subr.bf16.mxu0 %v385_v7 }
  0x16   : > { %368 = vmatpush3.bf16.msra.mxu0 %v385_v7 }
  0x19   : > { %370 = vmatmul.mubr.msk.bf16.vlgmr.msra.gmra.mrb[0].mxu0 %vm226_vm0, %v387_v8 }
  0x86   : > { %v197_v9 = vpop.permute.xlu1 %196 }
  0x87   : > { %v187_v10 = vpop.permute.xlu0 %186 }
  0x8a   : > { %v202_v14 = vpop.permute.xlu1 %201 }
  0x8b   : > { %v192_v17 = vpop.permute.xlu0 %191 }
  0xec   : > { %v371_v11 = vpop.f32.mrb[0].mxu0 }
  0xed   : > { %v276_v12 = vadd.f32 %v371_v11, %v197_v9  ;;  %v267_v13 = vpop.f32.mrb[1].mxu0 }
  0xee   : > { %v268_v15 = vadd.f32 %v267_v13, %v187_v10  ;;  %v372_v16 = vpop.f32.mrb[2].mxu0 }
  0xef   : > { %285 = vst.msk [vmem:[%s170_s6 + $0x10] sm:$0xff] %vm282_vm1, %v276_v12  ;;  %v279_v18 = vadd.f32 %v372_v16, %v202_v14  ;;  %v270_v19 = vpop.f32.mrb[3].mxu0 }
  0xf0   : > { %283 = vst.msk [vmem:[%s170_s6] sm:$0xff] %vm282_vm1, %v268_v15  ;;  %v271_v20 = vadd.f32 %v270_v19, %v192_v17 }
  0xf1   : > { %286 = vst.msk [vmem:[%s170_s6 + $0x18] sm:$0xff] %vm282_vm1, %v279_v18 }
  0xf2   : > { %284 = vst.msk [vmem:[%s170_s6 + $0x8] sm:$0xff] %vm282_vm1, %v271_v20 }
  0xf3 PF: > { %s13_s12 = sadd.s32 1, %s394_s12  }
  0xf4   : > { %p10_p4 = scmp.ge.s32.totalorder %s13_s12, 4  }
  0xf6   :  { %12 = sbr.rel (!%p10_p4) target bundleno = 1 (0x1), region = 62 }

// kernel: featurenet_forward.19
= control target key start
LH: loop header
LB: loop body
LE: loop exit
PB: predicated region body
PF: predicated region fallthrough
CT: control target
= control target key end

     0   :  { %s1753_s21 = smov 0   ;;  %s1929_s0 = inlined_call_operand.vmem [shape: bf16[2,32,48], index: 0, kind: input, shape index: {}]   ;;  %s1930_s1 = inlined_call_operand.vmem [shape: bf16[9,32,32], index: 1, kind: input, shape index: {}]   ;;  %s1931_s2 = inlined_call_operand.vmem [shape: f32[1,24], index: 2, kind: input, shape index: {}]   ;;  %s1932_s3 = inlined_call_operand.vmem [shape: f32[32,1], index: 3, kind: input, shape index: {}]   ;;  %s1933_s4 = inlined_call_operand.vmem [shape: f32[32,1], index: 4, kind: input, shape index: {}]   ;;  %s1934_s5 = inlined_call_operand.vmem [shape: f32[32,32], index: 5, kind: input, shape index: {}]   ;;  %s1935_s6 = inlined_call_operand.vmem [shape: f32[2,32,24], index: 6, kind: output, shape index: {}]  }
   0x1 LB: > { %s1360_s22 = sadd.s32 4294967295, %s1706_s21   ;;  %p1364_p0 = scmp.ge.s32.totalorder %s1706_s21, 1  ;;  %s1706_s21 = sphi %s1753_s21, %s16_s21  }
   0x2   : > { %p212_p1 = scmp.lt.s32.totalorder %s1706_s21, 3 }
   0x4   : > { %p213_p2 = pnand %p1364_p0, %p212_p1 }
   0x5   : > { %p242_p3 = scmp.lt.s32.totalorder (!%p213_p2), %s1360_s22, 1  ;;  %vm292_vm0 = vcmask (!%p213_p2), 261120   ;;  %v1674_v0 = vld [vmem:[%s1930_s1 + $0x30] sm:$0xff] (!%p213_p2)   ;;  %s1708_s29 = smov (!%p213_p2), 117   ;;  %v1675_v7 = vld [vmem:[%s1930_s1 + $0x38] sm:$0xff] (!%p213_p2)   ;;  %v1677_v8 = vld [vmem:[%s1930_s1 + $0x40] sm:$0xff] (!%p213_p2)  }
   0x6   : > { %216 = sbr.rel (%p213_p2) target bundleno = 973 (0x3cd), region = 44  ;;  %1532 = vmatprep.mubr.msk.bf16.mxu0 (!%p213_p2), %vm292_vm0, %v1674_v0  ;;  %s1709_s30 = smov (!%p213_p2), 116   ;;  %v1676_v3 = vld [vmem:[%s1930_s1 + $0x10] sm:$0xff] (!%p213_p2)   ;;  %v1678_v13 = vld [vmem:[%s1930_s1 + $0x18] sm:$0xff] (!%p213_p2)   ;;  %v1679_v14 = vld [vmem:[%s1930_s1 + $0x48] sm:$0xff] (!%p213_p2)   ;;  %vm990_vm1 = vcmask (!%p213_p2), 195584  }
   0x7   : > { %1508 = vmatprep.mubr.msk.bf16.mxu1 (!%p213_p2), %vm292_vm0, %v1676_v3  ;;  %s1710_s9 = smov (!%p213_p2), 115   ;;  %s1711_s10 = smov (!%p213_p2), 122   ;;  %v1680_v17 = vld [vmem:[%s1930_s1] sm:$0xff] (!%p213_p2)   ;;  %v1681_v18 = vld [vmem:[%s1930_s1 + $0x50] sm:$0xff] (!%p213_p2)   ;;  %v1682_v22 = vld [vmem:[%s1930_s1 + $0x8] sm:$0xff] (!%p213_p2)  }
   0x8   : > { %s1712_s11 = smov (!%p213_p2), 111   ;;  %s1713_s12 = smov (!%p213_p2), 123   ;;  %v1683_v23 = vld [vmem:[%s1930_s1 + $0x58] sm:$0xff] (!%p213_p2)   ;;  %v1684_v26 = vld [vmem:[%s1930_s1 + $0x20] sm:$0xff] (!%p213_p2)   ;;  %v1686_v29 = vld [vmem:[%s1930_s1 + $0x28] sm:$0xff] (!%p213_p2)  }
   0x9   : > { %s1714_s13 = smov (!%p213_p2), 110   ;;  %s1715_s14 = smov (!%p213_p2), 121   ;;  %v1685_v27 = vld [vmem:[%s1930_s1 + $0x60] sm:$0xff] (!%p213_p2)   ;;  %v1687_v30 = vld [vmem:[%s1930_s1 + $0x68] sm:$0xff] (!%p213_p2)   ;;  %v1688_v31 = vld [vmem:[%s1930_s1 + $0x70] sm:$0xff] (!%p213_p2)  }
   0xa   : > { %s1716_s15 = smov (!%p213_p2), 109   ;;  %v1689_v34 = vld [vmem:[%s1930_s1 + $0x78] sm:$0xff] (!%p213_p2)   ;;  %v1690_v35 = vld [vmem:[%s1930_s1 + $0x80] sm:$0xff] (!%p213_p2)   ;;  %v1691_v37 = vld [vmem:[%s1930_s1 + $0x88] sm:$0xff] (!%p213_p2)  }
   0xb   : > { %v1439_v44 = vld [vmem:[%s1931_s2] ss:$0 sm:$0xff] (!%p213_p2) }
   0xc   : > { %v1019_v3 = vld [vmem:[%s1934_s5] sm:$0xff] (!%p213_p2) }
   0xd   : > { %s1937_s22 = smov (!%p242_p3, %s1360_s22), 1 }
   0xe   : > { %s1450_s25 = sshll.u32 %s1937_s22, 4  ;;  %s1451_s8 = sshll.u32 %s1937_s22, 5 }
   0xf   : > { %s246_s28 = scalar_lea.vmem %s1929_s0, %s1450_s25 }
  0x10   : > { %v1672_v1 = vld [vmem:[%s246_s28] sm:$0xff]   ;;  %v1673_v2 = vld [vmem:[%s246_s28 + $0x8] sm:$0xff]  }
  0x11   : > { %514 = vrot.lane.b32.xlu0 %v1672_v1, %s1708_s29  ;;  %594 = vrot.lane.b32.xlu1 %v1672_v1, %s1709_s30 }
  0x15   : > { %516 = vrot.lane.b32.xlu0 %v1673_v2, %s1708_s29  ;;  %596 = vrot.lane.b32.xlu1 %v1673_v2, %s1709_s30 }
  0x19   : > { %674 = vrot.lane.b32.xlu0 %v1672_v1, %s1710_s9  ;;  %676 = vrot.lane.b32.xlu1 %v1673_v2, %s1710_s9 }
  0x1d   : > { %286 = vrot.lane.b32.xlu0 %v1672_v1, %s1711_s10  ;;  %754 = vrot.lane.b32.xlu1 %v1672_v1, %s1712_s11 }
  0x21   : > { %288 = vrot.lane.b32.xlu0 %v1673_v2, %s1711_s10  ;;  %756 = vrot.lane.b32.xlu1 %v1673_v2, %s1712_s11  ;;  %s251_s11 = scalar_lea.vmem %s1935_s6, %s1451_s8 }
  0x25   : > { %358 = vrot.lane.b32.xlu0 %v1672_v1, %s1713_s12  ;;  %834 = vrot.lane.b32.xlu1 %v1672_v1, %s1714_s13 }
  0x29   : > { %360 = vrot.lane.b32.xlu0 %v1673_v2, %s1713_s12  ;;  %836 = vrot.lane.b32.xlu1 %v1673_v2, %s1714_s13 }
  0x2d   : > { %434 = vrot.lane.b32.xlu0 %v1672_v1, %s1715_s14  ;;  %914 = vrot.lane.b32.xlu1 %v1672_v1, %s1716_s15 }
  0x31   : > { %436 = vrot.lane.b32.xlu0 %v1673_v2, %s1715_s14  ;;  %916 = vrot.lane.b32.xlu1 %v1673_v2, %s1716_s15 }
  0x83   : > { %v515_v4 = vpop.permute.xlu0 %514  ;;  %v595_v5 = vpop.permute.xlu1 %594 }
  0x84   : > { %1528 = vmatprep.subr.bf16.mxu0 %v515_v4 }
  0x85   : > { %1529 = vmatpush3.bf16.msra.mxu0 %v515_v4 }
  0x87   : > { %v517_v6 = vpop.permute.xlu0 %516  ;;  %v597_v10 = vpop.permute.xlu1 %596 }
  0x88   : > { %1530 = vmatprep.subr.bf16.mxu0 %v517_v6 }
  0x89   : > { %1531 = vmatpush3.bf16.msra.mxu0 %v517_v6 }
  0x8a   : > { %1536 = vmatprep.subr.bf16.mxu0 %v595_v5 }
  0x8b   : > { %v675_v9 = vpop.permute.xlu0 %674  ;;  %v677_v16 = vpop.permute.xlu1 %676 }
  0x8c   : > { %1533 = vmatmul.mubr.msk.bf16.vlgmr.msra.gmra.mrb[0].mxu0 %vm292_vm0, %v1675_v7 }
  0x8d   : > { %1537 = vmatpush3.bf16.msra.mxu0 %v595_v5  ;;  %1540 = vmatprep.mubr.msk.bf16.mxu0 %vm292_vm0, %v1677_v8 }
  0x8e   : > { %1538 = vmatprep.subr.bf16.mxu0 %v597_v10 }
  0x8f   : > { %v287_v11 = vpop.permute.xlu0 %286  ;;  %v755_v20 = vpop.permute.xlu1 %754 }
  0x90   : > { %1504 = vmatprep.subr.bf16.mxu1 %v287_v11 }
  0x91   : > { %1505 = vmatpush3.bf16.msra.mxu1 %v287_v11  ;;  %1539 = vmatpush3.bf16.msra.mxu0 %v597_v10 }
  0x92   : > { %1544 = vmatprep.subr.bf16.mxu0 %v675_v9 }
  0x93   : > { %v289_v12 = vpop.permute.xlu0 %288  ;;  %v757_v24 = vpop.permute.xlu1 %756 }
  0x94   : > { %1506 = vmatprep.subr.bf16.mxu1 %v289_v12 }
  0x95   : > { %1507 = vmatpush3.bf16.msra.mxu1 %v289_v12  ;;  %v1020_v12 = vld [vmem:[%s1934_s5 + $0x8] sm:$0xff] }
  0x97   : > { %v359_v15 = vpop.permute.xlu0 %358  ;;  %v835_v28 = vpop.permute.xlu1 %834 }
  0x98   : > { %1509 = vmatmul.mubr.msk.bf16.vlgmr.msra.gmra.mrb[0].mxu1 %vm292_vm0, %v1678_v13  ;;  %1541 = vmatmul.mubr.msk.bf16.vlgmr.msra.gmra.mrb[0].mxu0 %vm292_vm0, %v1679_v14  ;;  %v1021_v14 = vld [vmem:[%s1934_s5 + $0x10] sm:$0xff] }
  0x99   : > { %1545 = vmatpush3.bf16.msra.mxu0 %v675_v9  ;;  %1512 = vmatprep.subr.bf16.mxu1 %v359_v15 }
  0x9a   : > { %1513 = vmatpush3.bf16.msra.mxu1 %v359_v15  ;;  %1546 = vmatprep.subr.bf16.mxu0 %v677_v16 }
  0x9b   : > { %v361_v19 = vpop.permute.xlu0 %360  ;;  %1516 = vmatprep.mubr.msk.bf16.mxu1 %vm292_vm0, %v1680_v17  ;;  %1548 = vmatprep.mubr.msk.bf16.mxu0 %vm292_vm0, %v1681_v18  ;;  %v837_v32 = vpop.permute.xlu1 %836  ;;  %v1022_v17 = vld [vmem:[%s1934_s5 + $0x18] sm:$0xff] }
  0x9c   : > { %1514 = vmatprep.subr.bf16.mxu1 %v361_v19 }
  0x9d   : > { %1547 = vmatpush3.bf16.msra.mxu0 %v677_v16 }
  0x9e   : > { %1515 = vmatpush3.bf16.msra.mxu1 %v361_v19  ;;  %1552 = vmatprep.subr.bf16.mxu0 %v755_v20  ;;  %v1717_v19 = vmov 0  }
  0x9f   : > { %v435_v21 = vpop.permute.xlu0 %434  ;;  %v915_v33 = vpop.permute.xlu1 %914  ;;  %1671 = vset.pattern.permute.xlu0 %v1717_v19  ;;  %1670 = vset.pattern.permute.xlu1 %v1717_v19 }
  0xa0   : > { %1520 = vmatprep.subr.bf16.mxu1 %v435_v21 }
  0xa3   : > { %v437_v25 = vpop.permute.xlu0 %436  ;;  %v917_v36 = vpop.permute.xlu1 %916 }
  0xa4   : > { %1517 = vmatmul.mubr.msk.bf16.vlgmr.msra.gmra.mrb[0].mxu1 %vm292_vm0, %v1682_v22  ;;  %1549 = vmatmul.mubr.msk.bf16.vlgmr.msra.gmra.mrb[0].mxu0 %vm292_vm0, %v1683_v23 }
  0xa5   : > { %1553 = vmatpush3.bf16.msra.mxu0 %v755_v20  ;;  %1521 = vmatpush3.bf16.msra.mxu1 %v435_v21 }
  0xa6   : > { %1554 = vmatprep.subr.bf16.mxu0 %v757_v24  ;;  %1522 = vmatprep.subr.bf16.mxu1 %v437_v25 }
  0xa7   : > { %1524 = vmatprep.mubr.msk.bf16.mxu1 %vm292_vm0, %v1684_v26  ;;  %1556 = vmatprep.mubr.msk.bf16.mxu0 %vm292_vm0, %v1685_v27 }
  0xa9   : > { %1555 = vmatpush3.bf16.msra.mxu0 %v757_v24  ;;  %1523 = vmatpush3.bf16.msra.mxu1 %v437_v25 }
  0xaa   : > { %1560 = vmatprep.subr.bf16.mxu0 %v835_v28 }
  0xb0   : > { %1525 = vmatmul.mubr.msk.bf16.vlgmr.msra.gmra.mrb[0].mxu1 %vm292_vm0, %v1686_v29  ;;  %1557 = vmatmul.mubr.msk.bf16.vlgmr.msra.gmra.mrb[0].mxu0 %vm292_vm0, %v1687_v30 }
  0xb1   : > { %1561 = vmatpush3.bf16.msra.mxu0 %v835_v28  ;;  %1564 = vmatprep.mubr.msk.bf16.mxu0 %vm292_vm0, %v1688_v31 }
  0xb2   : > { %1562 = vmatprep.subr.bf16.mxu0 %v837_v32  ;;  %1584 = vmatprep.mubr.msk.f32.mxu1 %vm292_vm0, %v1019_v3 }
  0xb5   : > { %1563 = vmatpush3.bf16.msra.mxu0 %v837_v32 }
  0xb6   : > { %1568 = vmatprep.subr.bf16.mxu0 %v915_v33 }
  0xbc   : > { %1565 = vmatmul.mubr.msk.bf16.vlgmr.msra.gmra.mrb[0].mxu0 %vm292_vm0, %v1689_v34 }
  0xbd   : > { %1569 = vmatpush3.bf16.msra.mxu0 %v915_v33  ;;  %1572 = vmatprep.mubr.msk.bf16.mxu0 %vm292_vm0, %v1690_v35 }
  0xbe   : > { %1570 = vmatprep.subr.bf16.mxu0 %v917_v36 }
  0xc1   : > { %1571 = vmatpush3.bf16.msra.mxu0 %v917_v36 }
  0xc8   : > { %1573 = vmatmul.mubr.msk.bf16.vlgmr.msra.gmra.mrb[0].mxu0 %vm292_vm0, %v1691_v37 }
 0x183   : > { %v1526_v38 = vpop.f32.mrb[0].mxu1 }
 0x184   : > { %v480_v39 = vpop.f32.mrb[1].mxu1 }
 0x185   : > { %v1527_v40 = vpop.f32.mrb[2].mxu1 }
 0x186   : > { %v483_v41 = vpop.f32.mrb[3].mxu1 }
 0x19b   : > { %v1574_v42 = vpop.f32.mrb[0].mxu0 }
 0x19c   : > { %v1620_v43 = vadd.f32 %v1574_v42, %v1526_v38  ;;  %v960_v45 = vpop.f32.mrb[1].mxu0 }
 0x19d   : > { %v1621_v46 = vadd.f32 %v960_v45, %v480_v39  ;;  %v1575_v47 = vpop.f32.mrb[2].mxu0  ;;  %v1225_v45 = vld [vmem:[%s1932_s3] sm:$0xff] }
 0x19e   : > { %v1622_v48 = vadd.f32 %v1575_v47, %v1527_v40  ;;  %v963_v49 = vpop.f32.mrb[3].mxu0  ;;  %v1844_v52 = vmul.f32 %v1620_v43, %v1439_v44 }
 0x19f   : > { %v1842_v50 = vmul.f32 %v1621_v46, %v1439_v44  ;;  %v1623_v51 = vadd.f32 %v963_v49, %v483_v41 }
 0x1a0   : > { %v1854_v57 = vmul.f32 %v1622_v48, %v1439_v44  ;;  %v997_v58 = vsel %vm990_vm1, %v1844_v52, 0.0  ;;  %v1005_v60 = vmul.f32 %v1844_v52, %v1844_v52 }
 0x1a1   : > { %v1846_v53 = vmul.f32 %v1623_v51, %v1439_v44  ;;  %v991_v54 = vsel %vm990_vm1, %v1842_v50, 0.0  ;;  %v1003_v56 = vmul.f32 %v1842_v50, %v1842_v50  ;;  %v1226_v44 = vld [vmem:[%s1932_s3 + $0x8] sm:$0xff]  ;;  %v1228_v51 = vld [vmem:[%s1932_s3 + $0x18] sm:$0xff] }
 0x1a2   : > { %992 = vadd.xlane.f32.xlu0 %v991_v54  ;;  %v1000_v61 = vsel %vm990_vm1, %v1854_v57, 0.0  ;;  %v1013_v63 = vsel %vm990_vm1, %v1005_v60, 0.0  ;;  %v1006_v1 = vmul.f32 %v1854_v57, %v1854_v57 }
 0x1a3   : > { %v994_v55 = vsel %vm990_vm1, %v1846_v53, 0.0  ;;  %v1007_v59 = vsel %vm990_vm1, %v1003_v56, 0.0  ;;  %v1004_v62 = vmul.f32 %v1846_v53, %v1846_v53 }
 0x1a4   : > { %995 = vadd.xlane.f32.xlu1 %v994_v55  ;;  %v1016_v2 = vsel %vm990_vm1, %v1006_v1, 0.0  ;;  %v1227_v55 = vld [vmem:[%s1932_s3 + $0x10] sm:$0xff] }
 0x1a5   : > { %v1010_v0 = vsel %vm990_vm1, %v1004_v62, 0.0  ;;  %v1234_v62 = vld [vmem:[%s1933_s4 + $0x8] sm:$0xff] }
 0x1a6   : > { %998 = vadd.xlane.f32.xlu0 %v997_v58 }
 0x1a8   : > { %1008 = vadd.xlane.f32.xlu1 %v1007_v59 }
 0x1aa   : > { %1001 = vadd.xlane.f32.xlu0 %v1000_v61 }
 0x1ac   : > { %1014 = vadd.xlane.f32.xlu1 %v1013_v63 }
 0x1ae   : > { %1011 = vadd.xlane.f32.xlu0 %v1010_v0 }
 0x1b2   : > { %1017 = vadd.xlane.f32.xlu0 %v1016_v2  ;;  %v1233_v2 = vld [vmem:[%s1933_s4] sm:$0xff] }
 0x22f   : > { %v993_v4 = vpop.xlane.xlu0 %992 }
 0x231   : > { %v996_v5 = vpop.xlane.xlu1 %995 }
 0x232   : > { %v1604_v6 = vpack.c.bf16 %v996_v5, %v993_v4  ;;  %v1235_v4 = vld [vmem:[%s1933_s4 + $0x10] sm:$0xff] }
 0x233   : > { %v999_v7 = vpop.xlane.xlu0 %998 }
 0x234   : > { %1605 = vmatprep.subr.bf16.mxu1 %v1604_v6 }
 0x235   : > { %1607 = vmatpush3.bf16.msra.mxu1 %v1604_v6  ;;  %v1009_v10 = vpop.xlane.xlu1 %1008  ;;  %v1236_v6 = vld [vmem:[%s1933_s4 + $0x18] sm:$0xff] }
 0x237   : > { %v1002_v8 = vpop.xlane.xlu0 %1001 }
 0x238   : > { %v1608_v9 = vpack.c.bf16 %v1002_v8, %v999_v7 }
 0x239   : > { %v1015_v15 = vpop.xlane.xlu1 %1014 }
 0x23a   : > { %1609 = vmatprep.subr.bf16.mxu1 %v1608_v9 }
 0x23b   : > { %v1012_v11 = vpop.xlane.xlu0 %1011  ;;  %1611 = vmatpush3.bf16.msra.mxu1 %v1608_v9 }
 0x23c   : > { %v1612_v13 = vpack.c.bf16 %v1012_v11, %v1009_v10 }
 0x23e   : > { %1585 = vmatmul.mubr.msk.f32.vlgmr.msra.gmra.mrb[4].mxu1 %vm292_vm0, %v1020_v12  ;;  %1613 = vmatprep.subr.bf16.mxu1 %v1612_v13 }
 0x23f   : > { %v1018_v16 = vpop.xlane.xlu0 %1017  ;;  %1615 = vmatpush3.bf16.msra.mxu1 %v1612_v13  ;;  %1587 = vmatprep.mubr.msk.f32.mxu1 %vm292_vm0, %v1021_v14 }
 0x240   : > { %v1616_v18 = vpack.c.bf16 %v1018_v16, %v1015_v15 }
 0x242   : > { %1588 = vmatmul.mubr.msk.f32.gmra.mrb[6].mxu1 %vm292_vm0, %v1022_v17  ;;  %1617 = vmatprep.subr.bf16.mxu1 %v1616_v18 }
 0x243   : > { %1619 = vmatpush3.bf16.msra.mxu1 %v1616_v18  ;;  %1598 = vmatprep.mubr.msk.f32.mxu1 %vm292_vm0, %v1019_v3 }
 0x246   : > { %1599 = vmatmul.mubr.msk.f32.vlgmr.msra.gmra.mrb[8].mxu1 %vm292_vm0, %v1020_v12 }
 0x247   : > { %1601 = vmatprep.mubr.msk.f32.mxu1 %vm292_vm0, %v1021_v14 }
 0x24a   : > { %1602 = vmatmul.mubr.msk.f32.gmra.mrb[10].mxu1 %vm292_vm0, %v1022_v17 }
 0x311   : > { %v1586_v20 = vpop.f32.mrb[4].mxu1 }
 0x312   : > { %v1101_v21 = vpop.f32.mrb[5].mxu1  ;;  %v1206_v24 = vmul.f32 %v1586_v20, %v1586_v20 }
 0x313   : > { %v1205_v25 = vmul.f32 %v1101_v21, %v1101_v21 }
 0x315   : > { %v1589_v22 = vpop.f32.mrb[6].mxu1 }
 0x316   : > { %v1111_v23 = vpop.f32.mrb[7].mxu1  ;;  %v1208_v30 = vmul.f32 %v1589_v22, %v1589_v22 }
 0x317   : > { %v1207_v32 = vmul.f32 %v1111_v23, %v1111_v23 }
 0x319   : > { %v1600_v26 = vpop.f32.mrb[8].mxu1 }
 0x31a   : > { %v1210_v27 = vsub.f32 %v1600_v26, %v1206_v24  ;;  %v1186_v28 = vpop.f32.mrb[9].mxu1 }
 0x31b   : > { %v1209_v29 = vsub.f32 %v1186_v28, %v1205_v25 }
 0x31c   : > { %v1214_v31 = vmax.f32 %v1210_v27, 0.0 }
 0x31d   : > { %v1213_v33 = vmax.f32 %v1209_v29, 0.0  ;;  %v1603_v34 = vpop.f32.mrb[10].mxu1 }
 0x31e   : > { %v1218_v35 = vadd.f32 1e-06, %v1214_v31  ;;  %v1212_v36 = vsub.f32 %v1603_v34, %v1208_v30  ;;  %v1196_v37 = vpop.f32.mrb[11].mxu1 }
 0x31f   : > { %v1217_v38 = vadd.f32 1e-06, %v1213_v33  ;;  %v1211_v39 = vsub.f32 %v1196_v37, %v1207_v32 }
 0x320   : > { %1692 = vrsqrt.f32 %v1218_v35  ;;  %v1216_v40 = vmax.f32 %v1212_v36, 0.0 }
 0x321   : > { %1694 = vrsqrt.f32 %v1217_v38  ;;  %v1215_v41 = vmax.f32 %v1211_v39, 0.0 }
 0x322   : > { %v1220_v42 = vadd.f32 1e-06, %v1216_v40 }
 0x323   : > { %v1219_v43 = vadd.f32 1e-06, %v1215_v41 }
 0x324   : > { %1696 = vrsqrt.f32 %v1220_v42 }
 0x325   : > { %1698 = vrsqrt.f32 %v1219_v43 }
 0x32a   : > { %v1693_v46 = vpop.eup %1692 }
 0x32b   : > { %v1695_v47 = vpop.eup %1694  ;;  %v1230_v48 = vmul.f32 %v1693_v46, %v1226_v44 }
 0x32c   : > { %v1229_v49 = vmul.f32 %v1695_v47, %v1225_v45 }
 0x32d   : > { %1252 = vperm.xlu0 %1671, %v1230_v48   ;;  %v1238_v54 = vmul.f32 %v1586_v20, %v1230_v48 }
 0x32e   : > { %v1697_v56 = vpop.eup %1696  ;;  %1247 = vperm.xlu1 %1670, %v1229_v49   ;;  %v1237_v58 = vmul.f32 %v1229_v49, %v1101_v21 }
 0x32f   : > { %v1699_v59 = vpop.eup %1698  ;;  %v1232_v60 = vmul.f32 %v1697_v56, %v1228_v51  ;;  %v1242_v1 = vsub.f32 %v1234_v62, %v1238_v54 }
 0x330   : > { %v1231_v61 = vmul.f32 %v1699_v59, %v1227_v55  ;;  %v1241_v3 = vsub.f32 %v1233_v2, %v1237_v58 }
 0x331   : > { %v1240_v63 = vmul.f32 %v1589_v22, %v1232_v60 }
 0x332   : > { %1262 = vperm.xlu1 %1670, %v1232_v60   ;;  %v1239_v0 = vmul.f32 %v1231_v61, %v1111_v23 }
 0x333   : > { %v1244_v7 = vsub.f32 %v1236_v6, %v1240_v63 }
 0x334   : > { %v1243_v5 = vsub.f32 %v1235_v4, %v1239_v0 }
 0x336   : > { %1276 = vperm.xlu1 %1670, %v1242_v1  }
 0x33a   : > { %1257 = vperm.xlu1 %1670, %v1231_v61  }
 0x33e   : > { %1271 = vperm.xlu1 %1670, %v1241_v3  }
 0x342   : > { %1281 = vperm.xlu1 %1670, %v1243_v5  }
 0x346   : > { %1286 = vperm.xlu1 %1670, %v1244_v7  }
 0x3ac   : > { %v1253_v9 = vpop.permute.xlu0 %1252 }
 0x3ad   : > { %v1248_v8 = vpop.permute.xlu1 %1247  ;;  %v1266_v11 = vmul.f32 %v1253_v9, %v1846_v53 }
 0x3ae   : > { %v1265_v17 = vmul.f32 %v1248_v8, %v1842_v50 }
 0x3b1   : > { %v1263_v10 = vpop.permute.xlu1 %1262 }
 0x3b2   : > { %v1268_v24 = vmul.f32 %v1263_v10, %v1854_v57 }
 0x3b5   : > { %v1277_v12 = vpop.permute.xlu1 %1276 }
 0x3b6   : > { %v1290_v13 = vadd.f32 %v1277_v12, %v1266_v11 }
 0x3b8   : > { %v1294_v14 = vmul.f32 0.01, %v1290_v13 }
 0x3b9   : > { %v1258_v15 = vpop.permute.xlu1 %1257 }
 0x3ba   : > { %v1298_v16 = vmax.f32 %v1290_v13, %v1294_v14  ;;  %v1267_v20 = vmul.f32 %v1258_v15, %v1844_v52 }
 0x3bc   : > { %1302 = vst.msk [vmem:[%s251_s11 + $0x8] sm:$0xff] %vm990_vm1, %v1298_v16 }
 0x3bd   : > { %v1272_v18 = vpop.permute.xlu1 %1271 }
 0x3be   : > { %v1289_v19 = vadd.f32 %v1272_v18, %v1265_v17 }
 0x3c0   : > { %v1293_v21 = vmul.f32 0.01, %v1289_v19 }
 0x3c1   : > { %v1282_v53 = vpop.permute.xlu1 %1281 }
 0x3c2   : > { %v1297_v22 = vmax.f32 %v1289_v19, %v1293_v21  ;;  %v1291_v23 = vadd.f32 %v1282_v53, %v1267_v20 }
 0x3c4   : > { %1301 = vst.msk [vmem:[%s251_s11] sm:$0xff] %vm990_vm1, %v1297_v22  ;;  %v1295_v25 = vmul.f32 0.01, %v1291_v23 }
 0x3c5   : > { %v1287_v26 = vpop.permute.xlu1 %1286 }
 0x3c6   : > { %v1299_v27 = vmax.f32 %v1291_v23, %v1295_v25  ;;  %v1292_v28 = vadd.f32 %v1287_v26, %v1268_v24 }
 0x3c8   : > { %1303 = vst.msk [vmem:[%s251_s11 + $0x10] sm:$0xff] %vm990_vm1, %v1299_v27  ;;  %v1296_v50 = vmul.f32 0.01, %v1292_v28 }
 0x3ca   : > { %v1300_v29 = vmax.f32 %v1292_v28, %v1296_v50 }
 0x3cc   : > { %1304 = vst.msk [vmem:[%s251_s11 + $0x18] sm:$0xff] %vm990_vm1, %v1300_v29 }
 0x3cd PF: > { %s16_s21 = sadd.s32 1, %s1706_s21  }
 0x3ce   : > { %p13_p4 = scmp.ge.s32.totalorder %s16_s21, 4  }
 0x3d0   :  { %15 = sbr.rel (!%p13_p4) target bundleno = 1 (0x1), region = 82 }

// kernel: featurenet_forward.22
= control target key start
LH: loop header
LB: loop body
LE: loop exit
PB: predicated region body
PF: predicated region fallthrough
CT: control target
= control target key end

     0   :  { %s479_s15 = smov 0   ;;  %s527_s0 = inlined_call_operand.vmem [shape: bf16[2,16,64], index: 0, kind: input, shape index: {}]   ;;  %s528_s1 = inlined_call_operand.vmem [shape: bf16[1,32,16], index: 1, kind: input, shape index: {}]   ;;  %s529_s2 = inlined_call_operand.vmem [shape: f32[32,1], index: 2, kind: input, shape index: {}]   ;;  %s530_s3 = inlined_call_operand.vmem [shape: f32[2,32,64], index: 3, kind: input, shape index: {}]   ;;  %s531_s4 = inlined_call_operand.vmem [shape: f32[2,32,64], index: 4, kind: output, shape index: {}]  }
   0x1 LB: > { %s401_s16 = sadd.s32 4294967295, %s451_s15   ;;  %p405_p0 = scmp.ge.s32.totalorder %s451_s15, 1  ;;  %s451_s15 = sphi %s479_s15, %s14_s15  }
   0x2   : > { %p172_p1 = scmp.lt.s32.totalorder %s451_s15, 3 }
   0x4   : > { %p173_p2 = pnand %p405_p0, %p172_p1 }
   0x5   : > { %p203_p3 = scmp.lt.s32.totalorder (!%p173_p2), %s401_s16, 1  ;;  %v443_v0 = vld [vmem:[%s528_s1] sm:$0xff] (!%p173_p2)   ;;  %vm265_vm0 = vcmask (!%p173_p2), 130048   ;;  %v227_v1 = vld [vmem:[%s529_s2 + $0x10] sm:$0xff] (!%p173_p2)  ;;  %v453_v3 = vmov (!%p173_p2), 0   ;;  %v228_v4 = vld [vmem:[%s529_s2 + $0x18] sm:$0xff] (!%p173_p2) }
   0x6   : > { %176 = sbr.rel (%p173_p2) target bundleno = 241 (0xf1), region = 36  ;;  %427 = vmatprep.mubr.msk.bf16.mxu0 (!%p173_p2), %vm265_vm0, %v443_v0  ;;  %v225_v2 = vld [vmem:[%s529_s2] sm:$0xff] (!%p173_p2)  ;;  %441 = vset.pattern.permute.xlu1 (!%p173_p2), %v453_v3  ;;  %v226_v5 = vld [vmem:[%s529_s2 + $0x8] sm:$0xff] (!%p173_p2)  ;;  %vm329_vm1 = vcmask (!%p173_p2), 523264  }
   0x7   : > { %440 = vset.pattern.permute.xlu0 (!%p173_p2), %v453_v3  ;;  %241 = vperm.xlu1 (!%p173_p2), %441, %v227_v1   ;;  %v444_v7 = vld [vmem:[%s528_s1 + $0x8] sm:$0xff] (!%p173_p2)  }
   0x8   : > { %231 = vperm.xlu0 (!%p173_p2), %440, %v225_v2  }
   0xb   : > { %246 = vperm.xlu1 (!%p173_p2), %441, %v228_v4  }
   0xc   : > { %236 = vperm.xlu0 (!%p173_p2), %440, %v226_v5  }
   0xd   : > { %s533_s16 = smov (!%p203_p3, %s401_s16), 1 }
   0xe   : > { %s419_s23 = sshll.u32 %s533_s16, 3  ;;  %s420_s7 = sshll.u32 %s533_s16, 5 }
   0xf   : > { %s207_s26 = scalar_lea.vmem %s527_s0, %s419_s23  ;;  %s212_s10 = scalar_lea.vmem %s530_s3, %s420_s7 }
  0x10   : > { %v442_v6 = vld [vmem:[%s207_s26] sm:$0xff]   ;;  %v323_v11 = vld [vmem:[%s212_s10 + $0x10] sm:$0xff]  ;;  %s217_s13 = scalar_lea.vmem %s531_s4, %s420_s7  ;;  %v324_v18 = vld [vmem:[%s212_s10 + $0x18] sm:$0xff] }
  0x11   : > { %425 = vmatprep.subr.bf16.mxu0 %v442_v6  ;;  %v321_v14 = vld [vmem:[%s212_s10] sm:$0xff]  ;;  %v322_v23 = vld [vmem:[%s212_s10 + $0x8] sm:$0xff] }
  0x12   : > { %426 = vmatpush3.bf16.msra.mxu0 %v442_v6 }
  0x15   : > { %428 = vmatmul.mubr.msk.bf16.vlgmr.msra.gmra.mrb[0].mxu0 %vm265_vm0, %v444_v7 }
  0x86   : > { %v242_v8 = vpop.permute.xlu1 %241 }
  0x87   : > { %v232_v9 = vpop.permute.xlu0 %231 }
  0x8a   : > { %v247_v15 = vpop.permute.xlu1 %246 }
  0x8b   : > { %v237_v19 = vpop.permute.xlu0 %236 }
  0xe8   : > { %v429_v10 = vpop.f32.mrb[0].mxu0 }
  0xe9   : > { %v315_v12 = vadd.f32 %v429_v10, %v242_v8  ;;  %v306_v13 = vpop.f32.mrb[1].mxu0 }
  0xea   : > { %v307_v16 = vadd.f32 %v306_v13, %v232_v9  ;;  %v430_v17 = vpop.f32.mrb[2].mxu0 }
  0xeb   : > { %v327_v20 = vadd.f32 %v323_v11, %v315_v12  ;;  %v318_v21 = vadd.f32 %v430_v17, %v247_v15  ;;  %v309_v22 = vpop.f32.mrb[3].mxu0 }
  0xec   : > { %v325_v24 = vadd.f32 %v321_v14, %v307_v16  ;;  %v310_v25 = vadd.f32 %v309_v22, %v237_v19 }
  0xed   : > { %332 = vst.msk [vmem:[%s217_s13 + $0x10] sm:$0xff] %vm329_vm1, %v327_v20  ;;  %v328_v26 = vadd.f32 %v324_v18, %v318_v21 }
  0xee   : > { %330 = vst.msk [vmem:[%s217_s13] sm:$0xff] %vm329_vm1, %v325_v24  ;;  %v326_v27 = vadd.f32 %v322_v23, %v310_v25 }
  0xef   : > { %333 = vst.msk [vmem:[%s217_s13 + $0x18] sm:$0xff] %vm329_vm1, %v328_v26 }
  0xf0   : > { %331 = vst.msk [vmem:[%s217_s13 + $0x8] sm:$0xff] %vm329_vm1, %v326_v27 }
  0xf1 PF: > { %s14_s15 = sadd.s32 1, %s451_s15  }
  0xf2   : > { %p11_p4 = scmp.ge.s32.totalorder %s14_s15, 4  }
  0xf4   :  { %13 = sbr.rel (!%p11_p4) target bundleno = 1 (0x1), region = 69 }

// kernel: featurenet_forward.23
= control target key start
LH: loop header
LB: loop body
LE: loop exit
PB: predicated region body
PF: predicated region fallthrough
CT: control target
= control target key end

     0   :  { %s495_s15 = smov 0   ;;  %s537_s0 = inlined_call_operand.vmem [shape: bf16[2,8,256], index: 0, kind: input, shape index: {}]   ;;  %s538_s1 = inlined_call_operand.vmem [shape: bf16[1,32,8], index: 1, kind: input, shape index: {}]   ;;  %s539_s2 = inlined_call_operand.vmem [shape: f32[32,1], index: 2, kind: input, shape index: {}]   ;;  %s540_s3 = inlined_call_operand.vmem [shape: f32[2,32,256], index: 3, kind: input, shape index: {}]   ;;  %s541_s4 = inlined_call_operand.vmem [shape: f32[2,32,256], index: 4, kind: output, shape index: {}]  }
   0x1 LB: > { %s421_s16 = sadd.s32 4294967295, %s467_s15   ;;  %p425_p0 = scmp.ge.s32.totalorder %s467_s15, 1  ;;  %s467_s15 = sphi %s495_s15, %s14_s15  }
   0x2   : > { %p172_p1 = scmp.lt.s32.totalorder %s467_s15, 3 }
   0x4   : > { %p173_p2 = pnand %p425_p0, %p172_p1 }
   0x5   : > { %p203_p3 = scmp.lt.s32.totalorder (!%p173_p2), %s421_s16, 1  ;;  %v469_v0 = vmov (!%p173_p2), 0   ;;  %v226_v1 = vld [vmem:[%s539_s2 + $0x10] sm:$0xff] (!%p173_p2)  ;;  %v224_v2 = vld [vmem:[%s539_s2] sm:$0xff] (!%p173_p2)  ;;  %v227_v3 = vld [vmem:[%s539_s2 + $0x18] sm:$0xff] (!%p173_p2)  ;;  %vm270_vm0 = vcmask (!%p173_p2), 1043456  }
   0x6   : > { %176 = sbr.rel (%p173_p2) target bundleno = 243 (0xf3), region = 36  ;;  %309 = vmatprep.mubr.bf16.mxu0 (!%p173_p2), %v469_v0  ;;  %319 = vmatprep.mubr.bf16.mxu1 (!%p173_p2), %v469_v0  ;;  %v225_v4 = vld [vmem:[%s539_s2 + $0x8] sm:$0xff] (!%p173_p2)  ;;  %v459_v9 = vld [vmem:[%s538_s1] sm:$0xff] (!%p173_p2)   ;;  %vm263_vm1 = vcmask (!%p173_p2), 64512  }
   0x7   : > { %456 = vset.pattern.permute.xlu1 (!%p173_p2), %v469_v0  ;;  %455 = vset.pattern.permute.xlu0 (!%p173_p2), %v469_v0  ;;  %v460_v10 = vld [vmem:[%s538_s1 + $0x8] sm:$0xff] (!%p173_p2)  }
   0x8   : > { %240 = vperm.xlu1 (!%p173_p2), %456, %v226_v1   ;;  %230 = vperm.xlu0 (!%p173_p2), %455, %v224_v2  }
   0xc   : > { %245 = vperm.xlu1 (!%p173_p2), %456, %v227_v3   ;;  %235 = vperm.xlu0 (!%p173_p2), %455, %v225_v4  }
   0xd   : > { %s543_s16 = smov (!%p203_p3, %s421_s16), 1 }
   0xe   : > { %s441_s21 = sshll.u32 %s543_s16, 3  ;;  %s442_s7 = sshll.u32 %s543_s16, 6 }
   0xf   : > { %s207_s28 = scalar_lea.vmem %s537_s0, %s441_s21  ;;  %s212_s10 = scalar_lea.vmem %s540_s3, %s442_s7 }
  0x10   : > { %v223_v5 = vld [vmem:[%s207_s28] sm:$0xff]  ;;  %v331_v22 = vld [vmem:[%s212_s10 + $0x8] sm:$0xff]  ;;  %s217_s13 = scalar_lea.vmem %s541_s4, %s442_s7  ;;  %v332_v28 = vld [vmem:[%s212_s10 + $0x10] sm:$0xff] }
  0x11   : > { %v435_v6 = vcombine.high %v223_v5, %v223_v5  ;;  %v434_v7 = vcombine.low %v223_v5, %v223_v5  ;;  %v330_v16 = vld [vmem:[%s212_s10] sm:$0xff]  ;;  %v335_v24 = vld [vmem:[%s212_s10 + $0x28] sm:$0xff]  ;;  %v336_v30 = vld [vmem:[%s212_s10 + $0x30] sm:$0xff] }
  0x12   : > { %v334_v18 = vld [vmem:[%s212_s10 + $0x20] sm:$0xff]  ;;  %v333_v36 = vld [vmem:[%s212_s10 + $0x18] sm:$0xff] }
  0x13   : > { %436 = vmatprep.subr.msk.bf16.mxu0 %vm270_vm0, %v435_v6  ;;  %444 = vmatprep.subr.msk.bf16.mxu1 %vm270_vm0, %v435_v6  ;;  %v272_v8 = vsel %vm270_vm0, %v434_v7, 0  ;;  %v337_v38 = vld [vmem:[%s212_s10 + $0x38] sm:$0xff] }
  0x14   : > { %278 = vmatpush1.bf16.msra.mxu0 %v272_v8  ;;  %445 = vmatpush1.bf16.msra.mxu1 %v272_v8 }
  0x17   : > { %437 = vmatmul.mubr.msk.bf16.vlgmr.msra.gmra.mrb[0].mxu0 %vm263_vm1, %v459_v9  ;;  %438 = vmatmul.mubr.msk.bf16.vlgmr.msra.gmra.mrb[0].mxu1 %vm263_vm1, %v460_v10 }
  0x87   : > { %v241_v11 = vpop.permute.xlu1 %240  ;;  %v231_v12 = vpop.permute.xlu0 %230 }
  0x8b   : > { %v246_v13 = vpop.permute.xlu1 %245  ;;  %v236_v14 = vpop.permute.xlu0 %235 }
  0xea   : > { %v311_v15 = vpop.f32.mrb[0].mxu0  ;;  %v321_v17 = vpop.f32.mrb[0].mxu1 }
  0xeb   : > { %v312_v19 = vadd.f32 %v311_v15, %v231_v12  ;;  %v322_v20 = vadd.f32 %v321_v17, %v241_v11  ;;  %v313_v21 = vpop.f32.mrb[1].mxu0  ;;  %v323_v23 = vpop.f32.mrb[1].mxu1 }
  0xec   : > { %v314_v25 = vadd.f32 %v313_v21, %v231_v12  ;;  %v324_v26 = vadd.f32 %v323_v23, %v241_v11  ;;  %v315_v27 = vpop.f32.mrb[2].mxu0  ;;  %v325_v29 = vpop.f32.mrb[2].mxu1 }
  0xed   : > { %v338_v31 = vadd.f32 %v330_v16, %v312_v19  ;;  %v342_v32 = vadd.f32 %v334_v18, %v322_v20  ;;  %v316_v33 = vadd.f32 %v315_v27, %v236_v14  ;;  %v326_v34 = vadd.f32 %v325_v29, %v246_v13  ;;  %v317_v35 = vpop.f32.mrb[3].mxu0  ;;  %v327_v37 = vpop.f32.mrb[3].mxu1 }
  0xee   : > { %v339_v39 = vadd.f32 %v331_v22, %v314_v25  ;;  %v343_v40 = vadd.f32 %v335_v24, %v324_v26  ;;  %v318_v41 = vadd.f32 %v317_v35, %v236_v14  ;;  %v328_v42 = vadd.f32 %v327_v37, %v246_v13 }
  0xef   : > { %346 = vst [vmem:[%s217_s13] sm:$0xff] %v338_v31  ;;  %350 = vst [vmem:[%s217_s13 + $0x20] sm:$0xff] %v342_v32  ;;  %v340_v43 = vadd.f32 %v332_v28, %v316_v33  ;;  %v344_v44 = vadd.f32 %v336_v30, %v326_v34 }
  0xf0   : > { %347 = vst [vmem:[%s217_s13 + $0x8] sm:$0xff] %v339_v39  ;;  %351 = vst [vmem:[%s217_s13 + $0x28] sm:$0xff] %v343_v40  ;;  %v341_v45 = vadd.f32 %v333_v36, %v318_v41  ;;  %v345_v46 = vadd.f32 %v337_v38, %v328_v42 }
  0xf1   : > { %348 = vst [vmem:[%s217_s13 + $0x10] sm:$0xff] %v340_v43  ;;  %352 = vst [vmem:[%s217_s13 + $0x30] sm:$0xff] %v344_v44 }
  0xf2   : > { %349 = vst [vmem:[%s217_s13 + $0x18] sm:$0xff] %v341_v45  ;;  %353 = vst [vmem:[%s217_s13 + $0x38] sm:$0xff] %v345_v46 }
  0xf3 PF: > { %s14_s15 = sadd.s32 1, %s467_s15  }
  0xf4   : > { %p11_p4 = scmp.ge.s32.totalorder %s14_s15, 4  }
  0xf6   :  { %13 = sbr.rel (!%p11_p4) target bundleno = 1 (0x1), region = 69 }

// kernel: featurenet_forward.25
= control target key start
LH: loop header
LB: loop body
LE: loop exit
PB: predicated region body
PF: predicated region fallthrough
CT: control target
= control target key end

     0   :  { %s1486_s12 = smov 0   ;;  %s1682_s0 = inlined_call_operand.vmem [shape: bf16[2,32,360], index: 0, kind: input, shape index: {}]   ;;  %s1683_s1 = inlined_call_operand.vmem [shape: bf16[9,8,32], index: 1, kind: input, shape index: {}]   ;;  %s1684_s2 = inlined_call_operand.vmem [shape: f32[8,1], index: 2, kind: input, shape index: {}]   ;;  %s1685_s3 = inlined_call_operand.vmem [shape: f32[2,8,288], index: 3, kind: output, shape index: {}]  }
   0x1 LB: > { %s1275_s13 = sadd.s32 4294967295, %s1452_s12   ;;  %p1279_p0 = scmp.ge.s32.totalorder %s1452_s12, 1  ;;  %s1452_s12 = sphi %s1486_s12, %s13_s12  }
   0x2   : > { %p137_p1 = scmp.lt.s32.totalorder %s1452_s12, 3 }
   0x4   : > { %p138_p2 = pnand %p1279_p0, %p137_p1 }
   0x5   : > { %p161_p3 = scmp.lt.s32.totalorder (!%p138_p2), %s1275_s13, 1  ;;  %v1454_v0 = vmov (!%p138_p2), 0.0   ;;  %s1455_s18 = smov (!%p138_p2), 110   ;;  %vm1456_vm0 = vmmov (!%p138_p2), 0   ;;  %v1457_v6 = vmov (!%p138_p2), 0   ;;  %v1208_v8 = vld [vmem:[%s1684_s2] sm:$0xff] (!%p138_p2) }
   0x6   : > { %141 = sbr.rel (%p138_p2) target bundleno = 460 (0x1cc), region = 32  ;;  %1343 = vmatprep.subr.bf16.mxu1 (!%p138_p2), %v1454_v0  ;;  %1347 = vmatprep.mubr.msk.bf16.mxu1 (!%p138_p2), %vm1456_vm0, %v1454_v0  ;;  %s1458_s19 = smov (!%p138_p2), 111   ;;  %vm221_vm1 = vcmask (!%p138_p2), 900096   ;;  %v1282_v18 = vld [vmem:[%s1683_s1 + $0x4] sm:$0xf] (!%p138_p2)  ;;  %vm232_vm2 = vcmask (!%p138_p2), 261120  }
   0x7   : > { %268 = vmatprep.mubr.bf16.mxu0 (!%p138_p2), %v1457_v6  ;;  %1437 = vset.pattern.permute.xlu0 (!%p138_p2), %v1457_v6  ;;  %s1459_s20 = smov (!%p138_p2), 109   ;;  %s1460_s21 = smov (!%p138_p2), 93   ;;  %vm329_vm3 = vcmask (!%p138_p2), 908288   ;;  %v172_v29 = vld [vmem:[%s1683_s1] sm:$0xf] (!%p138_p2)  ;;  %vm438_vm4 = vcmask (!%p138_p2), 891904  }
   0x8   : > { %s1461_s22 = smov (!%p138_p2), 92   ;;  %s1462_s23 = smov (!%p138_p2), 91   ;;  %v1293_v40 = vld [vmem:[%s1683_s1 + $0x8] sm:$0xf] (!%p138_p2)  ;;  %vm550_vm5 = vcmask (!%p138_p2), 760832   ;;  %vm662_vm6 = vcmask (!%p138_p2), 752640  }
   0x9   : > { %s1463_s24 = smov (!%p138_p2), 75   ;;  %s1464_s25 = smov (!%p138_p2), 74   ;;  %v1296_v51 = vld [vmem:[%s1683_s1 + $0xc] sm:$0xf] (!%p138_p2)  ;;  %v1299_v62 = vld [vmem:[%s1683_s1 + $0x10] sm:$0xf] (!%p138_p2) }
   0xa   : > { %s1465_s26 = smov (!%p138_p2), 73   ;;  %vm774_vm7 = vcmask (!%p138_p2), 744448   ;;  %vm886_vm8 = vcmask (!%p138_p2), 613376   ;;  %vm998_vm9 = vcmask (!%p138_p2), 605184   ;;  %vm1110_vm10 = vcmask (!%p138_p2), 596992  }
   0xd   : > { %s1687_s13 = smov (!%p161_p3, %s1275_s13), 1 }
   0xe   : > { %s1415_s14 = smul.u32 48, %s1687_s13 }
  0x10   : > { %s165_s17 = scalar_lea.vmem %s1682_s0, %s1415_s14 }
  0x11   : > { %v1501_v1 = vld [vmem:[%s165_s17 + $0x4] ss:$12 sps:$4 sm:$0xff]   ;;  %v1503_v2 = vld [vmem:[%s165_s17] ss:$12 sps:$4 sm:$0xff]   ;;  %v1506_v3 = vld [vmem:[%s165_s17 + $0x8] ss:$12 sps:$4 sm:$0xff]  }
  0x12   : > { %211 = vrot.lane.b32.xlu0 %v1501_v1, %s1455_s18  ;;  %209 = vrot.lane.b32.xlu1 %v1503_v2, %s1455_s18  ;;  %v1509_v4 = vld [vmem:[%s165_s17 + $0x1c] ss:$12 sps:$4 sm:$0xff]   ;;  %v1444_v5 = vld [vmem:[%s165_s17 + $0x20] ss:$12 sps:$4 sm:$0xff]  }
  0x13   : > { %v1445_v7 = vld [vmem:[%s165_s17 + $0x18] ss:$12 sps:$4 sm:$0xff]  }
  0x16   : > { %213 = vrot.lane.b32.xlu0 %v1506_v3, %s1455_s18  ;;  %217 = vrot.lane.b32.xlu1 %v1509_v4, %s1455_s18 }
  0x1a   : > { %219 = vrot.lane.b32.xlu0 %v1444_v5, %s1455_s18  ;;  %215 = vrot.lane.b32.xlu1 %v1445_v7, %s1455_s18 }
  0x1e   : > { %319 = vrot.lane.b32.xlu0 %v1501_v1, %s1458_s19  ;;  %321 = vrot.lane.b32.xlu1 %v1506_v3, %s1458_s19 }
  0x22   : > { %317 = vrot.lane.b32.xlu0 %v1503_v2, %s1458_s19  ;;  %325 = vrot.lane.b32.xlu1 %v1509_v4, %s1458_s19 }
  0x26   : > { %327 = vrot.lane.b32.xlu0 %v1444_v5, %s1458_s19  ;;  %323 = vrot.lane.b32.xlu1 %v1445_v7, %s1458_s19 }
  0x2a   : > { %428 = vrot.lane.b32.xlu0 %v1501_v1, %s1459_s20  ;;  %430 = vrot.lane.b32.xlu1 %v1506_v3, %s1459_s20 }
  0x2e   : > { %426 = vrot.lane.b32.xlu0 %v1503_v2, %s1459_s20  ;;  %434 = vrot.lane.b32.xlu1 %v1509_v4, %s1459_s20 }
  0x32   : > { %436 = vrot.lane.b32.xlu0 %v1444_v5, %s1459_s20  ;;  %432 = vrot.lane.b32.xlu1 %v1445_v7, %s1459_s20 }
  0x36   : > { %540 = vrot.lane.b32.xlu0 %v1501_v1, %s1460_s21  ;;  %542 = vrot.lane.b32.xlu1 %v1506_v3, %s1460_s21 }
  0x3a   : > { %538 = vrot.lane.b32.xlu0 %v1503_v2, %s1460_s21  ;;  %546 = vrot.lane.b32.xlu1 %v1509_v4, %s1460_s21 }
  0x3e   : > { %548 = vrot.lane.b32.xlu0 %v1444_v5, %s1460_s21  ;;  %544 = vrot.lane.b32.xlu1 %v1445_v7, %s1460_s21 }
  0x42   : > { %652 = vrot.lane.b32.xlu0 %v1501_v1, %s1461_s22  ;;  %654 = vrot.lane.b32.xlu1 %v1506_v3, %s1461_s22 }
  0x46   : > { %650 = vrot.lane.b32.xlu0 %v1503_v2, %s1461_s22  ;;  %658 = vrot.lane.b32.xlu1 %v1509_v4, %s1461_s22 }
  0x4a   : > { %660 = vrot.lane.b32.xlu0 %v1444_v5, %s1461_s22  ;;  %656 = vrot.lane.b32.xlu1 %v1445_v7, %s1461_s22  ;;  %s1416_s22 = smul.u32 24, %s1687_s13 }
  0x4e   : > { %764 = vrot.lane.b32.xlu0 %v1501_v1, %s1462_s23  ;;  %766 = vrot.lane.b32.xlu1 %v1506_v3, %s1462_s23 }
  0x52   : > { %762 = vrot.lane.b32.xlu0 %v1503_v2, %s1462_s23  ;;  %770 = vrot.lane.b32.xlu1 %v1509_v4, %s1462_s23 }
  0x56   : > { %772 = vrot.lane.b32.xlu0 %v1444_v5, %s1462_s23  ;;  %768 = vrot.lane.b32.xlu1 %v1445_v7, %s1462_s23 }
  0x5a   : > { %876 = vrot.lane.b32.xlu0 %v1501_v1, %s1463_s24  ;;  %878 = vrot.lane.b32.xlu1 %v1506_v3, %s1463_s24 }
  0x5e   : > { %874 = vrot.lane.b32.xlu0 %v1503_v2, %s1463_s24  ;;  %882 = vrot.lane.b32.xlu1 %v1509_v4, %s1463_s24 }
  0x62   : > { %884 = vrot.lane.b32.xlu0 %v1444_v5, %s1463_s24  ;;  %880 = vrot.lane.b32.xlu1 %v1445_v7, %s1463_s24 }
  0x66   : > { %988 = vrot.lane.b32.xlu0 %v1501_v1, %s1464_s25  ;;  %990 = vrot.lane.b32.xlu1 %v1506_v3, %s1464_s25 }
  0x6a   : > { %986 = vrot.lane.b32.xlu0 %v1503_v2, %s1464_s25  ;;  %994 = vrot.lane.b32.xlu1 %v1509_v4, %s1464_s25 }
  0x6e   : > { %996 = vrot.lane.b32.xlu0 %v1444_v5, %s1464_s25  ;;  %992 = vrot.lane.b32.xlu1 %v1445_v7, %s1464_s25  ;;  %s170_s25 = scalar_lea.vmem %s1685_s3, %s1416_s22 }
  0x72   : > { %1100 = vrot.lane.b32.xlu0 %v1501_v1, %s1465_s26  ;;  %1102 = vrot.lane.b32.xlu1 %v1506_v3, %s1465_s26 }
  0x76   : > { %1098 = vrot.lane.b32.xlu0 %v1503_v2, %s1465_s26  ;;  %1106 = vrot.lane.b32.xlu1 %v1509_v4, %s1465_s26 }
  0x7a   : > { %1108 = vrot.lane.b32.xlu0 %v1444_v5, %s1465_s26  ;;  %1104 = vrot.lane.b32.xlu1 %v1445_v7, %s1465_s26 }
  0x7e   : > { %1211 = vperm.xlu0 %1437, %v1208_v8  }
  0x84   : > { %v212_v9 = vpop.permute.xlu0 %211  ;;  %v210_v10 = vpop.permute.xlu1 %209 }
  0x85   : > { %v222_v14 = vsel %vm221_vm1, %v210_v10, %v212_v9 }
  0x88   : > { %v214_v11 = vpop.permute.xlu0 %213  ;;  %v218_v12 = vpop.permute.xlu1 %217 }
  0x89   : > { %1344 = vmatpush3.bf16.msra.mxu1 %v214_v11  ;;  %v223_v13 = vsel %vm221_vm1, %v212_v9, %v214_v11  ;;  %v1302_v11 = vld [vmem:[%s1683_s1 + $0x14] sm:$0xf] }
  0x8a   : > { %236 = vmatprep.subr.bf16.mxu0 %v223_v13  ;;  %1345 = vmatprep.subr.bf16.mxu1 %v1454_v0 }
  0x8b   : > { %237 = vmatpush1.bf16.msra.mxu0 %v222_v14 }
  0x8c   : > { %v220_v15 = vpop.permute.xlu0 %219  ;;  %v216_v16 = vpop.permute.xlu1 %215 }
  0x8d   : > { %1346 = vmatpush3.bf16.msra.mxu1 %v220_v15  ;;  %v225_v17 = vsel %vm221_vm1, %v218_v12, %v220_v15  ;;  %v224_v19 = vsel %vm221_vm1, %v216_v16, %v218_v12 }
  0x8e   : > { %238 = vmatprep.subr.bf16.mxu0 %v225_v17  ;;  %1351 = vmatprep.subr.bf16.mxu1 %v1454_v0 }
  0x8f   : > { %239 = vmatpush1.bf16.msra.mxu0 %v224_v19 }
  0x90   : > { %v320_v20 = vpop.permute.xlu0 %319  ;;  %1348 = vmatmul.mubr.msk.bf16.vlgmr.msra.gmra.mrb[0].mxu1 %vm232_vm2, %v1282_v18  ;;  %v322_v21 = vpop.permute.xlu1 %321 }
  0x91   : > { %1355 = vmatprep.mubr.msk.bf16.mxu1 %vm1456_vm0, %v1454_v0  ;;  %v331_v22 = vsel %vm329_vm3, %v320_v20, %v322_v21  ;;  %1352 = vmatpush3.bf16.msra.mxu1 %v322_v21 }
  0x92   : > { %1289 = vmatmul.mubr.msk.bf16.vlgmr.msra.gmra.mrb[0].mxu0 %vm232_vm2, %v1282_v18  ;;  %343 = vmatprep.subr.bf16.mxu0 %v331_v22  ;;  %v1305_v22 = vld [vmem:[%s1683_s1 + $0x18] sm:$0xf] }
  0x93   : > { %1353 = vmatprep.subr.bf16.mxu1 %v1454_v0  ;;  %375 = vmatprep.mubr.bf16.mxu0 %v1457_v6 }
  0x94   : > { %v318_v23 = vpop.permute.xlu0 %317  ;;  %v326_v25 = vpop.permute.xlu1 %325 }
  0x95   : > { %v330_v24 = vsel %vm329_vm3, %v318_v23, %v320_v20 }
  0x96   : > { %344 = vmatpush1.bf16.msra.mxu0 %v330_v24 }
  0x98   : > { %v328_v26 = vpop.permute.xlu0 %327  ;;  %v324_v27 = vpop.permute.xlu1 %323 }
  0x99   : > { %1354 = vmatpush3.bf16.msra.mxu1 %v328_v26  ;;  %v333_v28 = vsel %vm329_vm3, %v326_v25, %v328_v26  ;;  %v332_v30 = vsel %vm329_vm3, %v324_v27, %v326_v25 }
  0x9a   : > { %345 = vmatprep.subr.bf16.mxu0 %v333_v28  ;;  %1359 = vmatprep.subr.bf16.mxu1 %v1454_v0 }
  0x9b   : > { %346 = vmatpush1.bf16.msra.mxu0 %v332_v30 }
  0x9c   : > { %v429_v31 = vpop.permute.xlu0 %428  ;;  %1356 = vmatmul.mubr.msk.bf16.vlgmr.msra.gmra.mrb[4].mxu1 %vm232_vm2, %v172_v29  ;;  %v431_v32 = vpop.permute.xlu1 %430 }
  0x9d   : > { %1363 = vmatprep.mubr.msk.bf16.mxu1 %vm1456_vm0, %v1454_v0  ;;  %v440_v33 = vsel %vm438_vm4, %v429_v31, %v431_v32  ;;  %1360 = vmatpush3.bf16.msra.mxu1 %v431_v32 }
  0x9e   : > { %1291 = vmatmul.mubr.msk.bf16.vlgmr.msra.gmra.mrb[4].mxu0 %vm232_vm2, %v172_v29  ;;  %452 = vmatprep.subr.bf16.mxu0 %v440_v33  ;;  %v1308_v33 = vld [vmem:[%s1683_s1 + $0x1c] sm:$0xf] }
  0x9f   : > { %1361 = vmatprep.subr.bf16.mxu1 %v1454_v0  ;;  %484 = vmatprep.mubr.bf16.mxu0 %v1457_v6 }
  0xa0   : > { %v427_v34 = vpop.permute.xlu0 %426  ;;  %v435_v36 = vpop.permute.xlu1 %434 }
  0xa1   : > { %v439_v35 = vsel %vm438_vm4, %v427_v34, %v429_v31 }
  0xa2   : > { %453 = vmatpush1.bf16.msra.mxu0 %v439_v35 }
  0xa4   : > { %v437_v37 = vpop.permute.xlu0 %436  ;;  %v433_v38 = vpop.permute.xlu1 %432 }
  0xa5   : > { %1362 = vmatpush3.bf16.msra.mxu1 %v437_v37  ;;  %v442_v39 = vsel %vm438_vm4, %v435_v36, %v437_v37  ;;  %v441_v41 = vsel %vm438_vm4, %v433_v38, %v435_v36 }
  0xa6   : > { %454 = vmatprep.subr.bf16.mxu0 %v442_v39  ;;  %1367 = vmatprep.subr.bf16.mxu1 %v1454_v0 }
  0xa7   : > { %455 = vmatpush1.bf16.msra.mxu0 %v441_v41 }
  0xa8   : > { %v541_v42 = vpop.permute.xlu0 %540  ;;  %1364 = vmatmul.mubr.msk.bf16.vlgmr.msra.gmra.mrb[8].mxu1 %vm232_vm2, %v1293_v40  ;;  %v543_v43 = vpop.permute.xlu1 %542 }
  0xa9   : > { %1371 = vmatprep.mubr.msk.bf16.mxu1 %vm1456_vm0, %v1454_v0  ;;  %v552_v44 = vsel %vm550_vm5, %v541_v42, %v543_v43  ;;  %1368 = vmatpush3.bf16.msra.mxu1 %v543_v43 }
  0xaa   : > { %1294 = vmatmul.mubr.msk.bf16.vlgmr.msra.gmra.mrb[8].mxu0 %vm232_vm2, %v1293_v40  ;;  %564 = vmatprep.subr.bf16.mxu0 %v552_v44  ;;  %v1311_v44 = vld [vmem:[%s1683_s1 + $0x20] sm:$0xf] }
  0xab   : > { %1369 = vmatprep.subr.bf16.mxu1 %v1454_v0  ;;  %596 = vmatprep.mubr.bf16.mxu0 %v1457_v6 }
  0xac   : > { %v539_v45 = vpop.permute.xlu0 %538  ;;  %v547_v47 = vpop.permute.xlu1 %546 }
  0xad   : > { %v551_v46 = vsel %vm550_vm5, %v539_v45, %v541_v42 }
  0xae   : > { %565 = vmatpush1.bf16.msra.mxu0 %v551_v46 }
  0xb0   : > { %v549_v48 = vpop.permute.xlu0 %548  ;;  %v545_v49 = vpop.permute.xlu1 %544 }
  0xb1   : > { %1370 = vmatpush3.bf16.msra.mxu1 %v549_v48  ;;  %v554_v50 = vsel %vm550_vm5, %v547_v47, %v549_v48  ;;  %v553_v52 = vsel %vm550_vm5, %v545_v49, %v547_v47 }
  0xb2   : > { %566 = vmatprep.subr.bf16.mxu0 %v554_v50  ;;  %1375 = vmatprep.subr.bf16.mxu1 %v1454_v0 }
  0xb3   : > { %567 = vmatpush1.bf16.msra.mxu0 %v553_v52 }
  0xb4   : > { %v653_v53 = vpop.permute.xlu0 %652  ;;  %1372 = vmatmul.mubr.msk.bf16.vlgmr.msra.gmra.mrb[12].mxu1 %vm232_vm2, %v1296_v51  ;;  %v655_v54 = vpop.permute.xlu1 %654 }
  0xb5   : > { %1379 = vmatprep.mubr.msk.bf16.mxu1 %vm1456_vm0, %v1454_v0  ;;  %v664_v55 = vsel %vm662_vm6, %v653_v53, %v655_v54  ;;  %1376 = vmatpush3.bf16.msra.mxu1 %v655_v54 }
  0xb6   : > { %1297 = vmatmul.mubr.msk.bf16.vlgmr.msra.gmra.mrb[12].mxu0 %vm232_vm2, %v1296_v51  ;;  %676 = vmatprep.subr.bf16.mxu0 %v664_v55 }
  0xb7   : > { %1377 = vmatprep.subr.bf16.mxu1 %v1454_v0  ;;  %708 = vmatprep.mubr.bf16.mxu0 %v1457_v6 }
  0xb8   : > { %v651_v56 = vpop.permute.xlu0 %650  ;;  %v659_v58 = vpop.permute.xlu1 %658 }
  0xb9   : > { %v663_v57 = vsel %vm662_vm6, %v651_v56, %v653_v53 }
  0xba   : > { %677 = vmatpush1.bf16.msra.mxu0 %v663_v57 }
  0xbc   : > { %v661_v59 = vpop.permute.xlu0 %660  ;;  %v657_v60 = vpop.permute.xlu1 %656 }
  0xbd   : > { %1378 = vmatpush3.bf16.msra.mxu1 %v661_v59  ;;  %v666_v61 = vsel %vm662_vm6, %v659_v58, %v661_v59  ;;  %v665_v63 = vsel %vm662_vm6, %v657_v60, %v659_v58 }
  0xbe   : > { %678 = vmatprep.subr.bf16.mxu0 %v666_v61  ;;  %1383 = vmatprep.subr.bf16.mxu1 %v1454_v0 }
  0xbf   : > { %679 = vmatpush1.bf16.msra.mxu0 %v665_v63 }
  0xc0   : > { %v765_v1 = vpop.permute.xlu0 %764  ;;  %1380 = vmatmul.mubr.msk.bf16.vlgmr.msra.gmra.mrb[16].mxu1 %vm232_vm2, %v1299_v62  ;;  %v767_v2 = vpop.permute.xlu1 %766 }
  0xc1   : > { %1387 = vmatprep.mubr.msk.bf16.mxu1 %vm1456_vm0, %v1454_v0  ;;  %v776_v3 = vsel %vm774_vm7, %v765_v1, %v767_v2  ;;  %1384 = vmatpush3.bf16.msra.mxu1 %v767_v2 }
  0xc2   : > { %1300 = vmatmul.mubr.msk.bf16.vlgmr.msra.gmra.mrb[16].mxu0 %vm232_vm2, %v1299_v62  ;;  %788 = vmatprep.subr.bf16.mxu0 %v776_v3 }
  0xc3   : > { %1385 = vmatprep.subr.bf16.mxu1 %v1454_v0  ;;  %820 = vmatprep.mubr.bf16.mxu0 %v1457_v6 }
  0xc4   : > { %v763_v4 = vpop.permute.xlu0 %762  ;;  %v771_v7 = vpop.permute.xlu1 %770 }
  0xc5   : > { %v775_v5 = vsel %vm774_vm7, %v763_v4, %v765_v1 }
  0xc6   : > { %789 = vmatpush1.bf16.msra.mxu0 %v775_v5 }
  0xc8   : > { %v773_v8 = vpop.permute.xlu0 %772  ;;  %v769_v9 = vpop.permute.xlu1 %768 }
  0xc9   : > { %1386 = vmatpush3.bf16.msra.mxu1 %v773_v8  ;;  %v778_v10 = vsel %vm774_vm7, %v771_v7, %v773_v8  ;;  %v777_v12 = vsel %vm774_vm7, %v769_v9, %v771_v7 }
  0xca   : > { %790 = vmatprep.subr.bf16.mxu0 %v778_v10  ;;  %1391 = vmatprep.subr.bf16.mxu1 %v1454_v0 }
  0xcb   : > { %791 = vmatpush1.bf16.msra.mxu0 %v777_v12 }
  0xcc   : > { %v877_v13 = vpop.permute.xlu0 %876  ;;  %1388 = vmatmul.mubr.msk.bf16.vlgmr.msra.gmra.mrb[20].mxu1 %vm232_vm2, %v1302_v11  ;;  %v879_v14 = vpop.permute.xlu1 %878 }
  0xcd   : > { %1395 = vmatprep.mubr.msk.bf16.mxu1 %vm1456_vm0, %v1454_v0  ;;  %v888_v15 = vsel %vm886_vm8, %v877_v13, %v879_v14  ;;  %1392 = vmatpush3.bf16.msra.mxu1 %v879_v14 }
  0xce   : > { %1303 = vmatmul.mubr.msk.bf16.vlgmr.msra.gmra.mrb[20].mxu0 %vm232_vm2, %v1302_v11  ;;  %900 = vmatprep.subr.bf16.mxu0 %v888_v15 }
  0xcf   : > { %1393 = vmatprep.subr.bf16.mxu1 %v1454_v0  ;;  %932 = vmatprep.mubr.bf16.mxu0 %v1457_v6 }
  0xd0   : > { %v875_v16 = vpop.permute.xlu0 %874  ;;  %v883_v18 = vpop.permute.xlu1 %882 }
  0xd1   : > { %v887_v17 = vsel %vm886_vm8, %v875_v16, %v877_v13 }
  0xd2   : > { %901 = vmatpush1.bf16.msra.mxu0 %v887_v17 }
  0xd4   : > { %v885_v19 = vpop.permute.xlu0 %884  ;;  %v881_v20 = vpop.permute.xlu1 %880 }
  0xd5   : > { %1394 = vmatpush3.bf16.msra.mxu1 %v885_v19  ;;  %v890_v21 = vsel %vm886_vm8, %v883_v18, %v885_v19  ;;  %v889_v23 = vsel %vm886_vm8, %v881_v20, %v883_v18 }
  0xd6   : > { %902 = vmatprep.subr.bf16.mxu0 %v890_v21  ;;  %1399 = vmatprep.subr.bf16.mxu1 %v1454_v0 }
  0xd7   : > { %903 = vmatpush1.bf16.msra.mxu0 %v889_v23 }
  0xd8   : > { %v989_v24 = vpop.permute.xlu0 %988  ;;  %1396 = vmatmul.mubr.msk.bf16.vlgmr.msra.gmra.mrb[24].mxu1 %vm232_vm2, %v1305_v22  ;;  %v991_v25 = vpop.permute.xlu1 %990 }
  0xd9   : > { %1403 = vmatprep.mubr.msk.bf16.mxu1 %vm1456_vm0, %v1454_v0  ;;  %v1000_v26 = vsel %vm998_vm9, %v989_v24, %v991_v25  ;;  %1400 = vmatpush3.bf16.msra.mxu1 %v991_v25 }
  0xda   : > { %1306 = vmatmul.mubr.msk.bf16.vlgmr.msra.gmra.mrb[24].mxu0 %vm232_vm2, %v1305_v22  ;;  %1012 = vmatprep.subr.bf16.mxu0 %v1000_v26 }
  0xdb   : > { %1401 = vmatprep.subr.bf16.mxu1 %v1454_v0  ;;  %1044 = vmatprep.mubr.bf16.mxu0 %v1457_v6 }
  0xdc   : > { %v987_v27 = vpop.permute.xlu0 %986  ;;  %v995_v29 = vpop.permute.xlu1 %994 }
  0xdd   : > { %v999_v28 = vsel %vm998_vm9, %v987_v27, %v989_v24 }
  0xde   : > { %1013 = vmatpush1.bf16.msra.mxu0 %v999_v28 }
  0xe0   : > { %v997_v30 = vpop.permute.xlu0 %996  ;;  %v993_v31 = vpop.permute.xlu1 %992 }
  0xe1   : > { %1402 = vmatpush3.bf16.msra.mxu1 %v997_v30  ;;  %v1002_v32 = vsel %vm998_vm9, %v995_v29, %v997_v30  ;;  %v1001_v34 = vsel %vm998_vm9, %v993_v31, %v995_v29 }
  0xe2   : > { %1014 = vmatprep.subr.bf16.mxu0 %v1002_v32  ;;  %1407 = vmatprep.subr.bf16.mxu1 %v1454_v0 }
  0xe3   : > { %1015 = vmatpush1.bf16.msra.mxu0 %v1001_v34 }
  0xe4   : > { %v1101_v35 = vpop.permute.xlu0 %1100  ;;  %1404 = vmatmul.mubr.msk.bf16.vlgmr.msra.gmra.mrb[28].mxu1 %vm232_vm2, %v1308_v33  ;;  %v1103_v36 = vpop.permute.xlu1 %1102 }
  0xe5   : > { %1411 = vmatprep.mubr.msk.bf16.mxu1 %vm1456_vm0, %v1454_v0  ;;  %v1112_v37 = vsel %vm1110_vm10, %v1101_v35, %v1103_v36  ;;  %1408 = vmatpush3.bf16.msra.mxu1 %v1103_v36 }
  0xe6   : > { %1309 = vmatmul.mubr.msk.bf16.vlgmr.msra.gmra.mrb[28].mxu0 %vm232_vm2, %v1308_v33  ;;  %1124 = vmatprep.subr.bf16.mxu0 %v1112_v37 }
  0xe7   : > { %1409 = vmatprep.subr.bf16.mxu1 %v1454_v0  ;;  %1156 = vmatprep.mubr.bf16.mxu0 %v1457_v6 }
  0xe8   : > { %v1099_v38 = vpop.permute.xlu0 %1098  ;;  %v1107_v40 = vpop.permute.xlu1 %1106 }
  0xe9   : > { %v1111_v39 = vsel %vm1110_vm10, %v1099_v38, %v1101_v35 }
  0xea   : > { %1125 = vmatpush1.bf16.msra.mxu0 %v1111_v39 }
  0xec   : > { %v1109_v41 = vpop.permute.xlu0 %1108  ;;  %v1105_v42 = vpop.permute.xlu1 %1104 }
  0xed   : > { %1410 = vmatpush3.bf16.msra.mxu1 %v1109_v41  ;;  %v1114_v43 = vsel %vm1110_vm10, %v1107_v40, %v1109_v41  ;;  %v1113_v45 = vsel %vm1110_vm10, %v1105_v42, %v1107_v40 }
  0xee   : > { %1126 = vmatprep.subr.bf16.mxu0 %v1114_v43 }
  0xef   : > { %1127 = vmatpush1.bf16.msra.mxu0 %v1113_v45 }
  0xf0   : > { %1412 = vmatmul.mubr.msk.bf16.vlgmr.msra.gmra.mrb[32].mxu1 %vm232_vm2, %v1311_v44 }
  0xf2   : > { %1312 = vmatmul.mubr.msk.bf16.vlgmr.msra.gmra.mrb[32].mxu0 %vm232_vm2, %v1311_v44 }
 0x163   : > { %v311_v0 = vpop.f32.mrb[0].mxu1 }
 0x164   : > { %v1349_v6 = vpop.f32.mrb[1].mxu1 }
 0x165   : > { %v270_v46 = vpop.f32.mrb[0].mxu0  ;;  %v314_v47 = vpop.f32.mrb[2].mxu1 }
 0x166   : > { %v272_v48 = vpop.f32.mrb[1].mxu0  ;;  %v1350_v49 = vpop.f32.mrb[3].mxu1 }
 0x167   : > { %v274_v50 = vpop.f32.mrb[2].mxu0 }
 0x168   : > { %v275_v51 = vpop.f32.mrb[3].mxu0 }
 0x16f   : > { %v418_v52 = vpop.f32.mrb[4].mxu1 }
 0x170   : > { %v419_v53 = vadd.f32 %v418_v52, %v311_v0  ;;  %v1357_v54 = vpop.f32.mrb[5].mxu1 }
 0x171   : > { %v377_v55 = vpop.f32.mrb[4].mxu0  ;;  %v421_v56 = vpop.f32.mrb[6].mxu1 }
 0x172   : > { %v378_v57 = vadd.f32 %v377_v55, %v270_v46  ;;  %v379_v58 = vpop.f32.mrb[5].mxu0  ;;  %v1358_v59 = vpop.f32.mrb[7].mxu1 }
 0x173   : > { %v380_v60 = vadd.f32 %v379_v58, %v272_v48  ;;  %v381_v61 = vpop.f32.mrb[6].mxu0 }
 0x174   : > { %v382_v62 = vpop.f32.mrb[7].mxu0 }
 0x17b   : > { %v527_v63 = vpop.f32.mrb[8].mxu1 }
 0x17c   : > { %v535_v1 = vadd.f32 %v527_v63, %v419_v53  ;;  %v1365_v2 = vpop.f32.mrb[9].mxu1 }
 0x17d   : > { %v486_v3 = vpop.f32.mrb[8].mxu0  ;;  %v530_v4 = vpop.f32.mrb[10].mxu1 }
 0x17e   : > { %v533_v5 = vadd.f32 %v486_v3, %v378_v57  ;;  %v488_v7 = vpop.f32.mrb[9].mxu0  ;;  %v1366_v8 = vpop.f32.mrb[11].mxu1 }
 0x17f   : > { %v534_v9 = vadd.f32 %v488_v7, %v380_v60  ;;  %v490_v10 = vpop.f32.mrb[10].mxu0  ;;  %v1212_v3 = vpop.permute.xlu0 %1211 }
 0x180   : > { %v491_v11 = vpop.f32.mrb[11].mxu0 }
 0x187   : > { %v639_v12 = vpop.f32.mrb[12].mxu1 }
 0x188   : > { %v647_v13 = vadd.f32 %v639_v12, %v535_v1  ;;  %v1373_v14 = vpop.f32.mrb[13].mxu1 }
 0x189   : > { %v598_v15 = vpop.f32.mrb[12].mxu0  ;;  %v642_v16 = vpop.f32.mrb[14].mxu1 }
 0x18a   : > { %v645_v17 = vadd.f32 %v598_v15, %v533_v5  ;;  %v600_v18 = vpop.f32.mrb[13].mxu0  ;;  %v1374_v19 = vpop.f32.mrb[15].mxu1 }
 0x18b   : > { %v646_v20 = vadd.f32 %v600_v18, %v534_v9  ;;  %v602_v21 = vpop.f32.mrb[14].mxu0 }
 0x18c   : > { %v603_v22 = vpop.f32.mrb[15].mxu0 }
 0x193   : > { %v751_v23 = vpop.f32.mrb[16].mxu1 }
 0x194   : > { %v759_v24 = vadd.f32 %v751_v23, %v647_v13  ;;  %v1381_v25 = vpop.f32.mrb[17].mxu1 }
 0x195   : > { %v710_v26 = vpop.f32.mrb[16].mxu0  ;;  %v754_v27 = vpop.f32.mrb[18].mxu1 }
 0x196   : > { %v757_v28 = vadd.f32 %v710_v26, %v645_v17  ;;  %v712_v29 = vpop.f32.mrb[17].mxu0  ;;  %v1382_v30 = vpop.f32.mrb[19].mxu1 }
 0x197   : > { %v758_v31 = vadd.f32 %v712_v29, %v646_v20  ;;  %v714_v32 = vpop.f32.mrb[18].mxu0 }
 0x198   : > { %v715_v33 = vpop.f32.mrb[19].mxu0 }
 0x19f   : > { %v863_v34 = vpop.f32.mrb[20].mxu1 }
 0x1a0   : > { %v871_v35 = vadd.f32 %v863_v34, %v759_v24  ;;  %v1389_v36 = vpop.f32.mrb[21].mxu1 }
 0x1a1   : > { %v822_v37 = vpop.f32.mrb[20].mxu0  ;;  %v866_v38 = vpop.f32.mrb[22].mxu1 }
 0x1a2   : > { %v869_v39 = vadd.f32 %v822_v37, %v757_v28  ;;  %v824_v40 = vpop.f32.mrb[21].mxu0  ;;  %v1390_v41 = vpop.f32.mrb[23].mxu1 }
 0x1a3   : > { %v870_v42 = vadd.f32 %v824_v40, %v758_v31  ;;  %v826_v43 = vpop.f32.mrb[22].mxu0 }
 0x1a4   : > { %v827_v44 = vpop.f32.mrb[23].mxu0 }
 0x1ab   : > { %v975_v45 = vpop.f32.mrb[24].mxu1 }
 0x1ac   : > { %v983_v0 = vadd.f32 %v975_v45, %v871_v35  ;;  %v1397_v6 = vpop.f32.mrb[25].mxu1 }
 0x1ad   : > { %v934_v46 = vpop.f32.mrb[24].mxu0  ;;  %v978_v47 = vpop.f32.mrb[26].mxu1 }
 0x1ae   : > { %v981_v48 = vadd.f32 %v934_v46, %v869_v39  ;;  %v936_v49 = vpop.f32.mrb[25].mxu0  ;;  %v1398_v50 = vpop.f32.mrb[27].mxu1 }
 0x1af   : > { %v982_v51 = vadd.f32 %v936_v49, %v870_v42  ;;  %v938_v52 = vpop.f32.mrb[26].mxu0 }
 0x1b0   : > { %v939_v53 = vpop.f32.mrb[27].mxu0 }
 0x1b7   : > { %v1087_v54 = vpop.f32.mrb[28].mxu1 }
 0x1b8   : > { %v1095_v55 = vadd.f32 %v1087_v54, %v983_v0  ;;  %v1405_v56 = vpop.f32.mrb[29].mxu1 }
 0x1b9   : > { %v1046_v57 = vpop.f32.mrb[28].mxu0  ;;  %v1090_v58 = vpop.f32.mrb[30].mxu1 }
 0x1ba   : > { %v1093_v59 = vadd.f32 %v1046_v57, %v981_v48  ;;  %v1048_v60 = vpop.f32.mrb[29].mxu0  ;;  %v1406_v61 = vpop.f32.mrb[31].mxu1 }
 0x1bb   : > { %v1094_v62 = vadd.f32 %v1048_v60, %v982_v51  ;;  %v1050_v63 = vpop.f32.mrb[30].mxu0 }
 0x1bc   : > { %v1051_v1 = vpop.f32.mrb[31].mxu0 }
 0x1c3   : > { %v1199_v2 = vpop.f32.mrb[32].mxu1 }
 0x1c4   : > { %v1207_v4 = vadd.f32 %v1199_v2, %v1095_v55  ;;  %v1413_v5 = vpop.f32.mrb[33].mxu1 }
 0x1c5   : > { %v1158_v7 = vpop.f32.mrb[32].mxu0  ;;  %v1202_v8 = vpop.f32.mrb[34].mxu1 }
 0x1c6   : > { %v1216_v9 = vadd.f32 %v1212_v3, %v1207_v4  ;;  %v1205_v10 = vadd.f32 %v1158_v7, %v1093_v59  ;;  %v1160_v11 = vpop.f32.mrb[33].mxu0  ;;  %v1414_v12 = vpop.f32.mrb[35].mxu1 }
 0x1c7   : > { %v1206_v13 = vadd.f32 %v1160_v11, %v1094_v62  ;;  %v1162_v14 = vpop.f32.mrb[34].mxu0 }
 0x1c8   : > { %1219 = vst.msk [vmem:[%s170_s25 + $0x10] sm:$0xff] %vm232_vm2, %v1216_v9  ;;  %v1214_v15 = vadd.f32 %v1212_v3, %v1205_v10  ;;  %v1163_v16 = vpop.f32.mrb[35].mxu0 }
 0x1c9   : > { %v1215_v17 = vadd.f32 %v1212_v3, %v1206_v13 }
 0x1ca   : > { %1217 = vst [vmem:[%s170_s25] sm:$0xff] %v1214_v15 }
 0x1cb   : > { %1218 = vst [vmem:[%s170_s25 + $0x8] sm:$0xff] %v1215_v17 }
 0x1cc PF: > { %s13_s12 = sadd.s32 1, %s1452_s12  }
 0x1cd   : > { %p10_p4 = scmp.ge.s32.totalorder %s13_s12, 4  }
 0x1cf   :  { %12 = sbr.rel (!%p10_p4) target bundleno = 1 (0x1), region = 70 }

// kernel: featurenet_forward.24
= control target key start
LH: loop header
LB: loop body
LE: loop exit
PB: predicated region body
PF: predicated region fallthrough
CT: control target
= control target key end

     0   :  { %s1015_s12 = smov 0   ;;  %s1117_s0 = inlined_call_operand.vmem [shape: bf16[2,32,120], index: 0, kind: input, shape index: {}]   ;;  %s1118_s1 = inlined_call_operand.vmem [shape: bf16[9,16,32], index: 1, kind: input, shape index: {}]   ;;  %s1119_s2 = inlined_call_operand.vmem [shape: f32[16,1], index: 2, kind: input, shape index: {}]   ;;  %s1120_s3 = inlined_call_operand.vmem [shape: f32[2,16,80], index: 3, kind: output, shape index: {}]  }
   0x1 LB: > { %s794_s13 = sadd.s32 4294967295, %s981_s12   ;;  %p798_p0 = scmp.ge.s32.totalorder %s981_s12, 1  ;;  %s981_s12 = sphi %s1015_s12, %s13_s12  }
   0x2   : > { %p137_p1 = scmp.lt.s32.totalorder %s981_s12, 3 }
   0x4   : > { %p138_p2 = pnand %p798_p0, %p137_p1 }
   0x5   : > { %p161_p3 = scmp.lt.s32.totalorder (!%p138_p2), %s794_s13, 1  ;;  %v983_v0 = vmov (!%p138_p2), 0.0   ;;  %vm984_vm0 = vmmov (!%p138_p2), 0   ;;  %s985_s18 = smov (!%p138_p2), 118   ;;  %v992_v3 = vmov (!%p138_p2), 0   ;;  %v722_v4 = vld [vmem:[%s1119_s2] sm:$0xff] (!%p138_p2) }
   0x6   : > { %141 = sbr.rel (%p138_p2) target bundleno = 390 (0x186), region = 32  ;;  %870 = vmatprep.subr.bf16.mxu0 (!%p138_p2), %v983_v0  ;;  %878 = vmatprep.subr.bf16.mxu1 (!%p138_p2), %v983_v0  ;;  %s986_s19 = smov (!%p138_p2), 119   ;;  %v723_v5 = vld [vmem:[%s1119_s2 + $0x8] sm:$0xff] (!%p138_p2)  ;;  %vm202_vm1 = vcmask (!%p138_p2), 261120   ;;  %v967_v13 = vld [vmem:[%s1118_s1] sm:$0xff] (!%p138_p2)   ;;  %v968_v16 = vld [vmem:[%s1118_s1 + $0x10] sm:$0xff] (!%p138_p2)  }
   0x7   : > { %874 = vmatprep.mubr.msk.bf16.mxu0 (!%p138_p2), %vm984_vm0, %v983_v0  ;;  %882 = vmatprep.mubr.msk.bf16.mxu1 (!%p138_p2), %vm984_vm0, %v983_v0  ;;  %s987_s20 = smov (!%p138_p2), 117   ;;  %s988_s21 = smov (!%p138_p2), 109   ;;  %v966_v10 = vld [vmem:[%s1118_s1 + $0x8] sm:$0xff] (!%p138_p2)   ;;  %v969_v19 = vld [vmem:[%s1118_s1 + $0x18] sm:$0xff] (!%p138_p2)   ;;  %v970_v22 = vld [vmem:[%s1118_s1 + $0x20] sm:$0xff] (!%p138_p2)   ;;  %vm736_vm2 = vcmask (!%p138_p2), 654336  }
   0x8   : > { %s989_s22 = smov (!%p138_p2), 108   ;;  %s990_s23 = smov (!%p138_p2), 107   ;;  %962 = vset.pattern.permute.xlu0 (!%p138_p2), %v992_v3  ;;  %963 = vset.pattern.permute.xlu1 (!%p138_p2), %v992_v3  ;;  %v971_v25 = vld [vmem:[%s1118_s1 + $0x28] sm:$0xff] (!%p138_p2)   ;;  %v972_v28 = vld [vmem:[%s1118_s1 + $0x30] sm:$0xff] (!%p138_p2)   ;;  %v973_v30 = vld [vmem:[%s1118_s1 + $0x38] sm:$0xff] (!%p138_p2)  }
   0x9   : > { %s991_s24 = smov (!%p138_p2), 99   ;;  %s993_s25 = smov (!%p138_p2), 98   ;;  %v974_v32 = vld [vmem:[%s1118_s1 + $0x40] sm:$0xff] (!%p138_p2)  }
   0xa   : > { %s994_s26 = smov (!%p138_p2), 97  }
   0xd   : > { %s1122_s13 = smov (!%p161_p3, %s794_s13), 1 }
   0xe   : > { %s841_s14 = sshll.u32 %s1122_s13, 4 }
   0xf   : > { %s165_s17 = scalar_lea.vmem %s1117_s0, %s841_s14  ;;  %s170_s27 = scalar_lea.vmem %s1120_s3, %s841_s14 }
  0x10   : > { %v964_v1 = vld [vmem:[%s165_s17] sm:$0xff]   ;;  %v965_v2 = vld [vmem:[%s165_s17 + $0x8] sm:$0xff]  }
  0x11   : > { %196 = vrot.lane.b32.xlu0 %v964_v1, %s985_s18  ;;  %252 = vrot.lane.b32.xlu1 %v964_v1, %s986_s19 }
  0x15   : > { %198 = vrot.lane.b32.xlu0 %v965_v2, %s985_s18  ;;  %310 = vrot.lane.b32.xlu1 %v964_v1, %s987_s20 }
  0x19   : > { %254 = vrot.lane.b32.xlu0 %v965_v2, %s986_s19  ;;  %312 = vrot.lane.b32.xlu1 %v965_v2, %s987_s20 }
  0x1d   : > { %370 = vrot.lane.b32.xlu0 %v964_v1, %s988_s21  ;;  %430 = vrot.lane.b32.xlu1 %v964_v1, %s989_s22 }
  0x21   : > { %372 = vrot.lane.b32.xlu0 %v965_v2, %s988_s21  ;;  %432 = vrot.lane.b32.xlu1 %v965_v2, %s989_s22 }
  0x25   : > { %490 = vrot.lane.b32.xlu0 %v964_v1, %s990_s23  ;;  %550 = vrot.lane.b32.xlu1 %v964_v1, %s991_s24 }
  0x29   : > { %492 = vrot.lane.b32.xlu0 %v965_v2, %s990_s23  ;;  %552 = vrot.lane.b32.xlu1 %v965_v2, %s991_s24 }
  0x2d   : > { %610 = vrot.lane.b32.xlu0 %v964_v1, %s993_s25  ;;  %670 = vrot.lane.b32.xlu1 %v964_v1, %s994_s26 }
  0x31   : > { %612 = vrot.lane.b32.xlu0 %v965_v2, %s993_s25  ;;  %672 = vrot.lane.b32.xlu1 %v965_v2, %s994_s26 }
  0x35   : > { %726 = vperm.xlu0 %962, %v722_v4   ;;  %731 = vperm.xlu1 %963, %v723_v5  }
  0x83   : > { %v197_v6 = vpop.permute.xlu0 %196  ;;  %v253_v7 = vpop.permute.xlu1 %252 }
  0x84   : > { %871 = vmatpush3.bf16.msra.mxu0 %v197_v6  ;;  %879 = vmatpush3.bf16.msra.mxu1 %v253_v7 }
  0x85   : > { %872 = vmatprep.subr.bf16.mxu0 %v983_v0  ;;  %880 = vmatprep.subr.bf16.mxu1 %v983_v0 }
  0x87   : > { %v199_v8 = vpop.permute.xlu0 %198  ;;  %v311_v9 = vpop.permute.xlu1 %310 }
  0x88   : > { %873 = vmatpush3.bf16.msra.mxu0 %v199_v8 }
  0x89   : > { %886 = vmatprep.subr.bf16.mxu0 %v983_v0 }
  0x8b   : > { %875 = vmatmul.mubr.msk.bf16.vlgmr.msra.gmra.mrb[0].mxu0 %vm202_vm1, %v966_v10  ;;  %v255_v11 = vpop.permute.xlu0 %254  ;;  %v313_v12 = vpop.permute.xlu1 %312 }
  0x8c   : > { %881 = vmatpush3.bf16.msra.mxu1 %v255_v11  ;;  %887 = vmatpush3.bf16.msra.mxu0 %v311_v9 }
  0x8d   : > { %888 = vmatprep.subr.bf16.mxu0 %v983_v0  ;;  %894 = vmatprep.subr.bf16.mxu1 %v983_v0 }
  0x8e   : > { %890 = vmatprep.mubr.msk.bf16.mxu0 %vm984_vm0, %v983_v0 }
  0x8f   : > { %883 = vmatmul.mubr.msk.bf16.vlgmr.msra.gmra.mrb[0].mxu1 %vm202_vm1, %v967_v13  ;;  %v371_v14 = vpop.permute.xlu0 %370  ;;  %v431_v15 = vpop.permute.xlu1 %430 }
  0x90   : > { %889 = vmatpush3.bf16.msra.mxu0 %v313_v12  ;;  %895 = vmatpush3.bf16.msra.mxu1 %v371_v14 }
  0x91   : > { %896 = vmatprep.subr.bf16.mxu1 %v983_v0  ;;  %902 = vmatprep.subr.bf16.mxu0 %v983_v0 }
  0x92   : > { %898 = vmatprep.mubr.msk.bf16.mxu1 %vm984_vm0, %v983_v0 }
  0x93   : > { %891 = vmatmul.mubr.msk.bf16.vlgmr.msra.gmra.mrb[4].mxu0 %vm202_vm1, %v968_v16  ;;  %v373_v17 = vpop.permute.xlu0 %372  ;;  %v433_v18 = vpop.permute.xlu1 %432 }
  0x94   : > { %897 = vmatpush3.bf16.msra.mxu1 %v373_v17  ;;  %903 = vmatpush3.bf16.msra.mxu0 %v431_v15 }
  0x95   : > { %904 = vmatprep.subr.bf16.mxu0 %v983_v0  ;;  %910 = vmatprep.subr.bf16.mxu1 %v983_v0 }
  0x96   : > { %906 = vmatprep.mubr.msk.bf16.mxu0 %vm984_vm0, %v983_v0 }
  0x97   : > { %899 = vmatmul.mubr.msk.bf16.vlgmr.msra.gmra.mrb[4].mxu1 %vm202_vm1, %v969_v19  ;;  %v491_v20 = vpop.permute.xlu0 %490  ;;  %v551_v21 = vpop.permute.xlu1 %550 }
  0x98   : > { %905 = vmatpush3.bf16.msra.mxu0 %v433_v18  ;;  %911 = vmatpush3.bf16.msra.mxu1 %v491_v20 }
  0x99   : > { %912 = vmatprep.subr.bf16.mxu1 %v983_v0  ;;  %918 = vmatprep.subr.bf16.mxu0 %v983_v0 }
  0x9a   : > { %914 = vmatprep.mubr.msk.bf16.mxu1 %vm984_vm0, %v983_v0 }
  0x9b   : > { %907 = vmatmul.mubr.msk.bf16.vlgmr.msra.gmra.mrb[8].mxu0 %vm202_vm1, %v970_v22  ;;  %v493_v23 = vpop.permute.xlu0 %492  ;;  %v553_v24 = vpop.permute.xlu1 %552 }
  0x9c   : > { %913 = vmatpush3.bf16.msra.mxu1 %v493_v23  ;;  %919 = vmatpush3.bf16.msra.mxu0 %v551_v21 }
  0x9d   : > { %920 = vmatprep.subr.bf16.mxu0 %v983_v0  ;;  %926 = vmatprep.subr.bf16.mxu1 %v983_v0 }
  0x9e   : > { %922 = vmatprep.mubr.msk.bf16.mxu0 %vm984_vm0, %v983_v0 }
  0x9f   : > { %915 = vmatmul.mubr.msk.bf16.vlgmr.msra.gmra.mrb[8].mxu1 %vm202_vm1, %v971_v25  ;;  %v611_v26 = vpop.permute.xlu0 %610  ;;  %v671_v27 = vpop.permute.xlu1 %670 }
  0xa0   : > { %921 = vmatpush3.bf16.msra.mxu0 %v553_v24  ;;  %927 = vmatpush3.bf16.msra.mxu1 %v611_v26 }
  0xa1   : > { %928 = vmatprep.subr.bf16.mxu1 %v983_v0  ;;  %934 = vmatprep.subr.bf16.mxu0 %v983_v0 }
  0xa2   : > { %930 = vmatprep.mubr.msk.bf16.mxu1 %vm984_vm0, %v983_v0 }
  0xa3   : > { %923 = vmatmul.mubr.msk.bf16.vlgmr.msra.gmra.mrb[12].mxu0 %vm202_vm1, %v972_v28  ;;  %v613_v29 = vpop.permute.xlu0 %612  ;;  %v673_v31 = vpop.permute.xlu1 %672 }
  0xa4   : > { %929 = vmatpush3.bf16.msra.mxu1 %v613_v29  ;;  %935 = vmatpush3.bf16.msra.mxu0 %v671_v27 }
  0xa5   : > { %936 = vmatprep.subr.bf16.mxu0 %v983_v0  ;;  %938 = vmatprep.mubr.msk.bf16.mxu0 %vm984_vm0, %v983_v0 }
  0xa7   : > { %931 = vmatmul.mubr.msk.bf16.vlgmr.msra.gmra.mrb[12].mxu1 %vm202_vm1, %v973_v30 }
  0xa8   : > { %937 = vmatpush3.bf16.msra.mxu0 %v673_v31 }
  0xab   : > { %939 = vmatmul.mubr.msk.bf16.vlgmr.msra.gmra.mrb[16].mxu0 %vm202_vm1, %v974_v32 }
  0xb4   : > { %v727_v16 = vpop.permute.xlu0 %726  ;;  %v732_v20 = vpop.permute.xlu1 %731 }
 0x15e   : > { %v240_v33 = vpop.f32.mrb[0].mxu0 }
 0x15f   : > { %v876_v34 = vpop.f32.mrb[1].mxu0 }
 0x160   : > { %v243_v35 = vpop.f32.mrb[2].mxu0 }
 0x161   : > { %v877_v36 = vpop.f32.mrb[3].mxu0 }
 0x162   : > { %v295_v37 = vpop.f32.mrb[0].mxu1 }
 0x163   : > { %v296_v38 = vadd.f32 %v295_v37, %v240_v33  ;;  %v884_v39 = vpop.f32.mrb[1].mxu1 }
 0x164   : > { %v298_v40 = vpop.f32.mrb[2].mxu1 }
 0x165   : > { %v299_v41 = vadd.f32 %v298_v40, %v243_v35  ;;  %v885_v42 = vpop.f32.mrb[3].mxu1 }
 0x166   : > { %v353_v43 = vpop.f32.mrb[4].mxu0 }
 0x167   : > { %v360_v44 = vadd.f32 %v353_v43, %v296_v38  ;;  %v892_v45 = vpop.f32.mrb[5].mxu0 }
 0x168   : > { %v356_v46 = vpop.f32.mrb[6].mxu0 }
 0x169   : > { %v361_v47 = vadd.f32 %v356_v46, %v299_v41  ;;  %v893_v48 = vpop.f32.mrb[7].mxu0 }
 0x16a   : > { %v413_v49 = vpop.f32.mrb[4].mxu1 }
 0x16b   : > { %v420_v50 = vadd.f32 %v413_v49, %v360_v44  ;;  %v900_v51 = vpop.f32.mrb[5].mxu1 }
 0x16c   : > { %v416_v52 = vpop.f32.mrb[6].mxu1 }
 0x16d   : > { %v421_v53 = vadd.f32 %v416_v52, %v361_v47  ;;  %v901_v54 = vpop.f32.mrb[7].mxu1 }
 0x16e   : > { %v473_v55 = vpop.f32.mrb[8].mxu0 }
 0x16f   : > { %v480_v56 = vadd.f32 %v473_v55, %v420_v50  ;;  %v908_v57 = vpop.f32.mrb[9].mxu0 }
 0x170   : > { %v476_v58 = vpop.f32.mrb[10].mxu0 }
 0x171   : > { %v481_v59 = vadd.f32 %v476_v58, %v421_v53  ;;  %v909_v60 = vpop.f32.mrb[11].mxu0 }
 0x172   : > { %v533_v61 = vpop.f32.mrb[8].mxu1 }
 0x173   : > { %v540_v62 = vadd.f32 %v533_v61, %v480_v56  ;;  %v916_v63 = vpop.f32.mrb[9].mxu1 }
 0x174   : > { %v536_v0 = vpop.f32.mrb[10].mxu1 }
 0x175   : > { %v541_v1 = vadd.f32 %v536_v0, %v481_v59  ;;  %v917_v2 = vpop.f32.mrb[11].mxu1 }
 0x176   : > { %v593_v3 = vpop.f32.mrb[12].mxu0 }
 0x177   : > { %v600_v4 = vadd.f32 %v593_v3, %v540_v62  ;;  %v924_v5 = vpop.f32.mrb[13].mxu0 }
 0x178   : > { %v596_v6 = vpop.f32.mrb[14].mxu0 }
 0x179   : > { %v601_v7 = vadd.f32 %v596_v6, %v541_v1  ;;  %v925_v8 = vpop.f32.mrb[15].mxu0 }
 0x17a   : > { %v653_v9 = vpop.f32.mrb[12].mxu1 }
 0x17b   : > { %v660_v10 = vadd.f32 %v653_v9, %v600_v4  ;;  %v932_v11 = vpop.f32.mrb[13].mxu1 }
 0x17c   : > { %v656_v12 = vpop.f32.mrb[14].mxu1 }
 0x17d   : > { %v661_v13 = vadd.f32 %v656_v12, %v601_v7  ;;  %v933_v14 = vpop.f32.mrb[15].mxu1 }
 0x17e   : > { %v713_v15 = vpop.f32.mrb[16].mxu0 }
 0x17f   : > { %v720_v17 = vadd.f32 %v713_v15, %v660_v10  ;;  %v940_v18 = vpop.f32.mrb[17].mxu0 }
 0x180   : > { %v716_v19 = vpop.f32.mrb[18].mxu0 }
 0x181   : > { %v721_v21 = vadd.f32 %v716_v19, %v661_v13  ;;  %v734_v22 = vadd.f32 %v727_v16, %v720_v17  ;;  %v941_v23 = vpop.f32.mrb[19].mxu0 }
 0x183   : > { %737 = vst.msk [vmem:[%s170_s27] sm:$0xff] %vm736_vm2, %v734_v22  ;;  %v735_v24 = vadd.f32 %v732_v20, %v721_v21 }
 0x185   : > { %738 = vst.msk [vmem:[%s170_s27 + $0x8] sm:$0xff] %vm736_vm2, %v735_v24 }
 0x186 PF: > { %s13_s12 = sadd.s32 1, %s981_s12  }
 0x187   : > { %p10_p4 = scmp.ge.s32.totalorder %s13_s12, 4  }
 0x189   :  { %12 = sbr.rel (!%p10_p4) target bundleno = 1 (0x1), region = 70 }

</bundles_post_ra>
